<compile_context>
chip_gen: v7x
topology: tpu7x:2x2x1
jax: 0.10.0
libtpu: 0.0.40
codegen_flags: <defaults>
</compile_context>

<pallas_src>
import math

import numpy as np
import jax
import jax.numpy as jnp
from jax.experimental import pallas as pl
from jax.experimental.pallas import tpu as pltpu

# MXU operand dtype. float32 keeps the closest match to the PyTorch reference; set to
# jnp.bfloat16 on v6e/v7x once bit-level parity is not required.
MXU_DTYPE = jnp.float32

_LANE = 128
_SUBLANE = 8


def _round_up(x, m):
    return ((x + m - 1) // m) * m


# ----------------------------------------------------------------------------
# numpy references of the module's spatial ops.  Used (a) to fold the conv stage
# into dense matrices at prepare time and (b) as the correctness reference.
# ----------------------------------------------------------------------------
def _np_upsample_nearest(x, out_h, out_w):
    """nn.Upsample(mode='nearest') on NCHW input (index rule: floor(i * in / out))."""
    h, w = x.shape[2], x.shape[3]
    ri = np.minimum((np.arange(out_h) * h) // out_h, h - 1)
    ci = np.minimum((np.arange(out_w) * w) // out_w, w - 1)
    return x[:, :, ri[:, None], ci[None, :]]


def _np_conv_transpose2d(x, w, padding):
    """nn.ConvTranspose2d (stride=1, no bias) on NCHW input.
    x: (N, C_in, H, W);  w: (C_in, C_out, k, k)  (PyTorch ConvTranspose2d weight layout)."""
    n, c_in, h, wd = x.shape
    k = w.shape[2]
    eff = k - 1 - padding
    assert eff >= 0, "padding must be <= kernel-1"
    h_out = h - 1 + k - 2 * padding
    w_out = wd - 1 + k - 2 * padding
    xp = np.zeros((n, c_in, h + 2 * eff, wd + 2 * eff), dtype=np.float64)
    xp[:, :, eff:eff + h, eff:eff + wd] = x
    # conv-transpose (stride=1) == correlation of the (k-1-p)-padded input with the flipped kernel
    wf = np.asarray(w, np.float64)[:, :, ::-1, ::-1]
    out = np.zeros((n, w.shape[1], h_out, w_out), dtype=np.float64)
    for a in range(k):
        for b in range(k):
            out += np.einsum("ncij,co->noij",
                             xp[:, :, a:a + h_out, b:b + w_out], wf[:, :, a, b])
    return out


def _linear_map_matrix(op, in_shape):
    """Dense (prod(in_shape), prod(out_shape)) matrix of a linear op via the identity basis."""
    n = int(np.prod(in_shape))
    basis = np.eye(n, dtype=np.float64).reshape((n,) + tuple(in_shape))
    return np.asarray(op(basis), np.float64).reshape(n, -1)


# ----------------------------------------------------------------------------
# Deterministic parameter construction (mirrors the module's __init__ shapes / init).
# ----------------------------------------------------------------------------
def _init_linear(key, fan_in, fan_out):
    k1, k2 = jax.random.split(key)
    bound = 1.0 / math.sqrt(fan_in)
    w = jax.random.uniform(k1, (fan_in, fan_out), jnp.float32, -bound, bound)
    b = jax.random.uniform(k2, (fan_out,), jnp.float32, -bound, bound)
    return np.asarray(w), np.asarray(b)


def _init_convT(key, c_in, c_out, k):
    k1, k2 = jax.random.split(key)
    bound = 1.0 / math.sqrt(c_out * k * k)
    w = jax.random.uniform(k1, (c_in, c_out, k, k), jnp.float32, -bound, bound)
    b = jax.random.uniform(k2, (c_out,), jnp.float32, -bound, bound)
    return np.asarray(w), np.asarray(b)


def build_params(key, n_in, flat_layers, conv_layers, out_size):
    keys = jax.random.split(key, len(flat_layers) + len(conv_layers) + 1)
    kidx = 0

    flat_params = []
    fan_in = n_in
    for f in flat_layers:
        flat_params.append(_init_linear(keys[kidx], fan_in, f)); kidx += 1
        fan_in = f

    n_ch = int(round(fan_in / (5 * 5)))                 # module: in_channels = round(n_in / 25)
    conv_params = []
    in_ch = n_ch
    for (out_ch, k, s, p, us) in conv_layers:
        conv_params.append(_init_convT(keys[kidx], in_ch, out_ch, k)); kidx += 1
        in_ch = out_ch
    _, k_last, _, _, _ = conv_layers[-1]
    conv_params.append(_init_convT(keys[kidx], in_ch, out_size[2], k_last)); kidx += 1

    cfg = dict(n_ch=n_ch, conv_layers=conv_layers, out_size=out_size)
    return dict(flat=flat_params, conv=conv_params), cfg


# ----------------------------------------------------------------------------
# One-time prepare: fold the whole network into a chain of dense lane-padded layers.
# ----------------------------------------------------------------------------
def prepare_fused_layers(params, cfg):
    n_ch = cfg["n_ch"]
    conv_layers = cfg["conv_layers"]
    out_size = cfg["out_size"]

    mats = []  # list of (W float64 np, bias float64 np, relu bool) in NCHW-flat ordering

    # flat Linear + ReLU layers
    for (w, b) in params["flat"]:
        mats.append((np.asarray(w, np.float64), np.asarray(b, np.float64), True))

    # conv stage: Upsample(scale) -> ConvTranspose2d -> ReLU, folded into dense matrices.
    c, h, w_sp = n_ch, 5, 5
    assert mats[-1][0].shape[1] == c * h * w_sp, "last flat layer must equal n_ch * 5 * 5"
    conv_params = params["conv"]
    for (w_ct, b_ct), (out_ch, k, s, p, us) in zip(conv_params[:-1], conv_layers):
        assert s == 1, "stride>1 conv-transpose not implemented"  # TODO(synk)
        hu, wu = int(math.floor(h * us)), int(math.floor(w_sp * us))

        def op(z, _w=w_ct, _hu=hu, _wu=wu, _p=p):
            return _np_conv_transpose2d(_np_upsample_nearest(z, _hu, _wu), _w, _p)

        m = _linear_map_matrix(op, (c, h, w_sp))
        ho, wo = hu - 1 + k - 2 * p, wu - 1 + k - 2 * p
        mats.append((m, np.repeat(np.asarray(b_ct, np.float64), ho * wo), True))
        c, h, w_sp = out_ch, ho, wo

    # trailing ConvTranspose2d(in, out_size[2]) + ReLU (reuses last layer's k/s/p, as in the module)
    _, k, s, p, _ = conv_layers[-1]
    assert s == 1, "stride>1 conv-transpose not implemented"  # TODO(synk)
    w_ct, b_ct = conv_params[-1]

    def op_last(z, _w=w_ct, _p=p):
        return _np_conv_transpose2d(z, _w, _p)

    m = _linear_map_matrix(op_last, (c, h, w_sp))
    ho, wo = h - 1 + k - 2 * p, w_sp - 1 + k - 2 * p
    mats.append((m, np.repeat(np.asarray(b_ct, np.float64), ho * wo), True))
    c, h, w_sp = out_size[2], ho, wo

    # final Upsample(size=out_size[:2]): pure 0/1 selection matrix, no bias, no ReLU
    m_up = _linear_map_matrix(lambda z: _np_upsample_nearest(z, out_size[0], out_size[1]),
                              (c, h, w_sp))
    mats.append((m_up, np.zeros(c * out_size[0] * out_size[1]), False))
    h, w_sp = out_size[0], out_size[1]

    # lane-dense zero padding (outside jit => never on the runtime critical path)
    fused_w, fused_b, relus = [], [], []
    k_prev_pad = mats[0][0].shape[0]          # n_in: full-array lane dim, no padding needed
    for (wm, bm, r) in mats:
        kk, nn = wm.shape
        assert kk <= k_prev_pad
        npad = _round_up(nn, _LANE)
        wp = np.zeros((k_prev_pad, npad), np.float32)
        wp[:kk, :nn] = wm
        bp = np.zeros((1, npad), np.float32)
        bp[0, :nn] = bm
        fused_w.append(jnp.asarray(wp, dtype=MXU_DTYPE))
        fused_b.append(jnp.asarray(bp, dtype=jnp.float32))
        relus.append(bool(r))
        k_prev_pad = npad

    n_valid_out = c * h * w_sp
    return dict(w=fused_w, b=fused_b, relu=tuple(relus),
                out_chw=(c, h, w_sp), n_valid_out=n_valid_out)


# ----------------------------------------------------------------------------
# The single fused Pallas kernel: chain of matmul + bias + ReLU, all in vregs.
# ----------------------------------------------------------------------------
def _make_fused_kernel(n_layers, relus, mxu_dtype):
    def kernel(*refs):
        x_ref, o_ref = refs[0], refs[-1]
        h = x_ref[...]
        for li in range(n_layers):
            w_ref = refs[1 + 2 * li]
            b_ref = refs[2 + 2 * li]
            lhs = h if h.dtype == mxu_dtype else h.astype(mxu_dtype)
            h = jnp.dot(lhs, w_ref[...], preferred_element_type=jnp.float32) + b_ref[...]
            if relus[li]:
                h = jnp.maximum(h, 0.0)
        o_ref[...] = h                                   # lane-dense (multiple of 128) store
    return kernel


def forward(fused, x):
    """x: (B, n_in) float32 -> (B, C_out, H_out, W_out) NCHW, matching the PyTorch module."""
    weights, biases, relus = fused["w"], fused["b"], fused["relu"]
    c, h, w_sp = fused["out_chw"]
    n_valid = fused["n_valid_out"]

    x = x.astype(jnp.float32)
    b_total, k0 = x.shape
    bb = b_total if b_total <= _SUBLANE else _SUBLANE     # batch block (sublane tile)
    grid = (pl.cdiv(b_total, bb),)

    ops = [x]
    in_specs = [pl.BlockSpec((bb, k0), lambda i: (i, 0))]
    for wgt, bias in zip(weights, biases):
        ops += [wgt, bias]
        in_specs += [pl.BlockSpec(wgt.shape, lambda i: (0, 0)),
                     pl.BlockSpec(bias.shape, lambda i: (0, 0))]

    n_last = weights[-1].shape[1]
    flops = int(2 * b_total * sum(int(wgt.shape[0]) * int(wgt.shape[1]) for wgt in weights))
    bytes_accessed = int(sum(int(a.size) * a.dtype.itemsize for a in ops)
                         + b_total * n_last * 4)

    out = pl.pallas_call(
        _make_fused_kernel(len(weights), relus, MXU_DTYPE),
        out_shape=jax.ShapeDtypeStruct((b_total, n_last), jnp.float32),
        grid=grid,
        in_specs=in_specs,
        out_specs=pl.BlockSpec((bb, n_last), lambda i: (i, 0)),
        compiler_params=pltpu.CompilerParams(dimension_semantics=("parallel",)),
        cost_estimate=pl.CostEstimate(flops=flops, transcendentals=0,
                                      bytes_accessed=bytes_accessed),
    )(*ops)

    # module boundary only: drop lane padding (no-op when n_valid == n_last) and view as NCHW
    return out[:, :n_valid].reshape(b_total, c, h, w_sp)


# ----------------------------------------------------------------------------
# Pure-numpy reference of the original module forward (for the correctness check).
# ----------------------------------------------------------------------------
def reference_forward_np(params, cfg, x):
    h = np.asarray(x, np.float64)
    for (w, b) in params["flat"]:
        h = np.maximum(h @ np.asarray(w, np.float64) + np.asarray(b, np.float64), 0.0)
    z = h.reshape(-1, cfg["n_ch"], 5, 5)
    conv_params = params["conv"]
    for (w, b), (out_ch, k, s, p, us) in zip(conv_params[:-1], cfg["conv_layers"]):
        hh, ww = z.shape[2], z.shape[3]
        z = _np_upsample_nearest(z, int(math.floor(hh * us)), int(math.floor(ww * us)))
        z = np.maximum(_np_conv_transpose2d(z, w, p)
                       + np.asarray(b, np.float64)[None, :, None, None], 0.0)
    _, k, s, p, _ = cfg["conv_layers"][-1]
    w, b = conv_params[-1]
    z = np.maximum(_np_conv_transpose2d(z, w, p)
                   + np.asarray(b, np.float64)[None, :, None, None], 0.0)
    return _np_upsample_nearest(z, cfg["out_size"][0], cfg["out_size"][1])


if __name__ == "__main__":
    key = jax.random.PRNGKey(0)
    k_params, k_x = jax.random.split(key)

    # Module-consistent small config:
    #   n_in=32, flat_layers=[64, 100] (n_ch = 100/25 = 4 -> view(-1,4,5,5)),
    #   conv_layers = [[channels=8, kernel=3, stride=1, padding=1, upscale=2.0]],
    #   out_size = (16, 16, 3), activationFunc = ReLU.
    n_in = 32
    flat_layers = [64, 100]
    conv_layers = [(8, 3, 1, 1, 2.0)]
    out_size = (16, 16, 3)

    params, cfg = build_params(k_params, n_in, flat_layers, conv_layers, out_size)
    fused = prepare_fused_layers(params, cfg)          # one-time prep, outside jit

    x = jax.random.normal(k_x, (2, n_in), jnp.float32)

    fwd = jax.jit(lambda inp: forward(fused, inp))
    y = jax.block_until_ready(fwd(x))

    assert y.shape == (2, out_size[2], out_size[0], out_size[1]), y.shape
    assert bool(jnp.all(jnp.isfinite(y)))

    ref = reference_forward_np(params, cfg, np.asarray(x))
    if MXU_DTYPE == jnp.float32:
        np.testing.assert_allclose(np.asarray(y), ref, rtol=1e-4, atol=1e-4)
    else:  # bf16 MXU operands: relaxed tolerance
        np.testing.assert_allclose(np.asarray(y), ref, rtol=5e-2, atol=5e-2)

    print("KERNEL_OK")
</pallas_src>

<mosaic_0001>
module attributes {stable_mosaic.version = 11 : i64} {
  func.func @kernel(%arg0: i32, %arg1: memref<2x32xf32, #tpu.memory_space<vmem>>, %arg2: memref<32x128xf32, #tpu.memory_space<vmem>>, %arg3: memref<1x128xf32, #tpu.memory_space<vmem>>, %arg4: memref<128x128xf32, #tpu.memory_space<vmem>>, %arg5: memref<1x128xf32, #tpu.memory_space<vmem>>, %arg6: memref<128x896xf32, #tpu.memory_space<vmem>>, %arg7: memref<1x896xf32, #tpu.memory_space<vmem>>, %arg8: memref<896x384xf32, #tpu.memory_space<vmem>>, %arg9: memref<1x384xf32, #tpu.memory_space<vmem>>, %arg10: memref<384x768xf32, #tpu.memory_space<vmem>>, %arg11: memref<1x768xf32, #tpu.memory_space<vmem>>, %arg12: memref<2x768xf32, #tpu.memory_space<vmem>>) attributes {dimension_semantics = [#tpu.dimension_semantics<parallel>], iteration_bounds = array<i64: 1>, scalar_prefetch = 0 : i64, scratch_operands = 0 : i64, tpu.core_type = #tpu.core_type<tc>, window_params = [{transform_indices = @transform_0, window_bounds = array<i64: 2, 32>}, {pipeline_mode = #tpu.pipeline_mode<synchronous>, transform_indices = @transform_1, window_bounds = array<i64: 32, 128>}, {pipeline_mode = #tpu.pipeline_mode<synchronous>, transform_indices = @transform_2, window_bounds = array<i64: 1, 128>}, {pipeline_mode = #tpu.pipeline_mode<synchronous>, transform_indices = @transform_3, window_bounds = array<i64: 128, 128>}, {pipeline_mode = #tpu.pipeline_mode<synchronous>, transform_indices = @transform_4, window_bounds = array<i64: 1, 128>}, {pipeline_mode = #tpu.pipeline_mode<synchronous>, transform_indices = @transform_5, window_bounds = array<i64: 128, 896>}, {pipeline_mode = #tpu.pipeline_mode<synchronous>, transform_indices = @transform_6, window_bounds = array<i64: 1, 896>}, {pipeline_mode = #tpu.pipeline_mode<synchronous>, transform_indices = @transform_7, window_bounds = array<i64: 896, 384>}, {pipeline_mode = #tpu.pipeline_mode<synchronous>, transform_indices = @transform_8, window_bounds = array<i64: 1, 384>}, {pipeline_mode = #tpu.pipeline_mode<synchronous>, transform_indices = @transform_9, window_bounds = array<i64: 384, 768>}, {pipeline_mode = #tpu.pipeline_mode<synchronous>, transform_indices = @transform_10, window_bounds = array<i64: 1, 768>}, {transform_indices = @transform_11, window_bounds = array<i64: 2, 768>}]} {
    %c0 = arith.constant 0 : index
    %c0_0 = arith.constant 0 : index
    %0 = vector.load %arg1[%c0, %c0_0] : memref<2x32xf32, #tpu.memory_space<vmem>>, vector<2x32xf32>
    %c0_1 = arith.constant 0 : index
    %c0_2 = arith.constant 0 : index
    %1 = vector.load %arg2[%c0_1, %c0_2] : memref<32x128xf32, #tpu.memory_space<vmem>>, vector<32x128xf32>
    %cst = arith.constant dense<0.000000e+00> : vector<2x128xf32>
    %2 = tpu.matmul %0, %1, %cst {dimension_numbers = #tpu.dot_dimension_numbers<[1], [0], [0], [1], [0, 0, 1, 1], [], []>} : vector<2x32xf32>, vector<32x128xf32>, vector<2x128xf32> -> vector<2x128xf32>
    %c0_3 = arith.constant 0 : index
    %c0_4 = arith.constant 0 : index
    %3 = vector.load %arg3[%c0_3, %c0_4] : memref<1x128xf32, #tpu.memory_space<vmem>>, vector<1x128xf32>
    %4 = vector.broadcast %3 : vector<1x128xf32> to vector<2x128xf32>
    %5 = arith.addf %2, %4 : vector<2x128xf32>
    %cst_5 = arith.constant 0.000000e+00 : f32
    %6 = vector.broadcast %cst_5 : f32 to vector<2x128xf32>
    %7 = arith.maximumf %5, %6 : vector<2x128xf32>
    %c0_6 = arith.constant 0 : index
    %c0_7 = arith.constant 0 : index
    %8 = vector.load %arg4[%c0_6, %c0_7] : memref<128x128xf32, #tpu.memory_space<vmem>>, vector<128x128xf32>
    %cst_8 = arith.constant dense<0.000000e+00> : vector<2x128xf32>
    %9 = tpu.matmul %7, %8, %cst_8 {dimension_numbers = #tpu.dot_dimension_numbers<[1], [0], [0], [1], [0, 0, 1, 1], [], []>} : vector<2x128xf32>, vector<128x128xf32>, vector<2x128xf32> -> vector<2x128xf32>
    %c0_9 = arith.constant 0 : index
    %c0_10 = arith.constant 0 : index
    %10 = vector.load %arg5[%c0_9, %c0_10] : memref<1x128xf32, #tpu.memory_space<vmem>>, vector<1x128xf32>
    %11 = vector.broadcast %10 : vector<1x128xf32> to vector<2x128xf32>
    %12 = arith.addf %9, %11 : vector<2x128xf32>
    %cst_11 = arith.constant 0.000000e+00 : f32
    %13 = vector.broadcast %cst_11 : f32 to vector<2x128xf32>
    %14 = arith.maximumf %12, %13 : vector<2x128xf32>
    %c0_12 = arith.constant 0 : index
    %c0_13 = arith.constant 0 : index
    %15 = vector.load %arg6[%c0_12, %c0_13] : memref<128x896xf32, #tpu.memory_space<vmem>>, vector<128x896xf32>
    %cst_14 = arith.constant dense<0.000000e+00> : vector<2x896xf32>
    %16 = tpu.matmul %14, %15, %cst_14 {dimension_numbers = #tpu.dot_dimension_numbers<[1], [0], [0], [1], [0, 0, 1, 1], [], []>} : vector<2x128xf32>, vector<128x896xf32>, vector<2x896xf32> -> vector<2x896xf32>
    %c0_15 = arith.constant 0 : index
    %c0_16 = arith.constant 0 : index
    %17 = vector.load %arg7[%c0_15, %c0_16] : memref<1x896xf32, #tpu.memory_space<vmem>>, vector<1x896xf32>
    %18 = vector.broadcast %17 : vector<1x896xf32> to vector<2x896xf32>
    %19 = arith.addf %16, %18 : vector<2x896xf32>
    %cst_17 = arith.constant 0.000000e+00 : f32
    %20 = vector.broadcast %cst_17 : f32 to vector<2x896xf32>
    %21 = arith.maximumf %19, %20 : vector<2x896xf32>
    %c0_18 = arith.constant 0 : index
    %c0_19 = arith.constant 0 : index
    %22 = vector.load %arg8[%c0_18, %c0_19] : memref<896x384xf32, #tpu.memory_space<vmem>>, vector<896x384xf32>
    %cst_20 = arith.constant dense<0.000000e+00> : vector<2x384xf32>
    %23 = tpu.matmul %21, %22, %cst_20 {dimension_numbers = #tpu.dot_dimension_numbers<[1], [0], [0], [1], [0, 0, 1, 1], [], []>} : vector<2x896xf32>, vector<896x384xf32>, vector<2x384xf32> -> vector<2x384xf32>
    %c0_21 = arith.constant 0 : index
    %c0_22 = arith.constant 0 : index
    %24 = vector.load %arg9[%c0_21, %c0_22] : memref<1x384xf32, #tpu.memory_space<vmem>>, vector<1x384xf32>
    %25 = vector.broadcast %24 : vector<1x384xf32> to vector<2x384xf32>
    %26 = arith.addf %23, %25 : vector<2x384xf32>
    %cst_23 = arith.constant 0.000000e+00 : f32
    %27 = vector.broadcast %cst_23 : f32 to vector<2x384xf32>
    %28 = arith.maximumf %26, %27 : vector<2x384xf32>
    %c0_24 = arith.constant 0 : index
    %c0_25 = arith.constant 0 : index
    %29 = vector.load %arg10[%c0_24, %c0_25] : memref<384x768xf32, #tpu.memory_space<vmem>>, vector<384x768xf32>
    %cst_26 = arith.constant dense<0.000000e+00> : vector<2x768xf32>
    %30 = tpu.matmul %28, %29, %cst_26 {dimension_numbers = #tpu.dot_dimension_numbers<[1], [0], [0], [1], [0, 0, 1, 1], [], []>} : vector<2x384xf32>, vector<384x768xf32>, vector<2x768xf32> -> vector<2x768xf32>
    %c0_27 = arith.constant 0 : index
    %c0_28 = arith.constant 0 : index
    %31 = vector.load %arg11[%c0_27, %c0_28] : memref<1x768xf32, #tpu.memory_space<vmem>>, vector<1x768xf32>
    %32 = vector.broadcast %31 : vector<1x768xf32> to vector<2x768xf32>
    %33 = arith.addf %30, %32 : vector<2x768xf32>
    %c0_29 = arith.constant 0 : index
    %c0_30 = arith.constant 0 : index
    %34 = vector.load %arg12[%c0_29, %c0_30] : memref<2x768xf32, #tpu.memory_space<vmem>>, vector<2x768xf32>
    tpu.vector_store %arg12[%c0_29, %c0_30], %33 {strides = array<i32>} : memref<2x768xf32, #tpu.memory_space<vmem>>, vector<2x768xf32>,
    return
  }
  func.func @transform_0(%arg0: i32) -> (i32, i32) {
    %c0_i32 = arith.constant 0 : i32
    %c0_i32_0 = arith.constant 0 : i32
    return %arg0, %c0_i32 : i32, i32
  }
  func.func @transform_1(%arg0: i32) -> (i32, i32) {
    %c0_i32 = arith.constant 0 : i32
    %c0_i32_0 = arith.constant 0 : i32
    %c0_i32_1 = arith.constant 0 : i32
    return %c0_i32, %c0_i32_0 : i32, i32
  }
  func.func @transform_2(%arg0: i32) -> (i32, i32) {
    %c0_i32 = arith.constant 0 : i32
    %c0_i32_0 = arith.constant 0 : i32
    %c0_i32_1 = arith.constant 0 : i32
    return %c0_i32, %c0_i32_0 : i32, i32
  }
  func.func @transform_3(%arg0: i32) -> (i32, i32) {
    %c0_i32 = arith.constant 0 : i32
    %c0_i32_0 = arith.constant 0 : i32
    %c0_i32_1 = arith.constant 0 : i32
    return %c0_i32, %c0_i32_0 : i32, i32
  }
  func.func @transform_4(%arg0: i32) -> (i32, i32) {
    %c0_i32 = arith.constant 0 : i32
    %c0_i32_0 = arith.constant 0 : i32
    %c0_i32_1 = arith.constant 0 : i32
    return %c0_i32, %c0_i32_0 : i32, i32
  }
  func.func @transform_5(%arg0: i32) -> (i32, i32) {
    %c0_i32 = arith.constant 0 : i32
    %c0_i32_0 = arith.constant 0 : i32
    %c0_i32_1 = arith.constant 0 : i32
    return %c0_i32, %c0_i32_0 : i32, i32
  }
  func.func @transform_6(%arg0: i32) -> (i32, i32) {
    %c0_i32 = arith.constant 0 : i32
    %c0_i32_0 = arith.constant 0 : i32
    %c0_i32_1 = arith.constant 0 : i32
    return %c0_i32, %c0_i32_0 : i32, i32
  }
  func.func @transform_7(%arg0: i32) -> (i32, i32) {
    %c0_i32 = arith.constant 0 : i32
    %c0_i32_0 = arith.constant 0 : i32
    %c0_i32_1 = arith.constant 0 : i32
    return %c0_i32, %c0_i32_0 : i32, i32
  }
  func.func @transform_8(%arg0: i32) -> (i32, i32) {
    %c0_i32 = arith.constant 0 : i32
    %c0_i32_0 = arith.constant 0 : i32
    %c0_i32_1 = arith.constant 0 : i32
    return %c0_i32, %c0_i32_0 : i32, i32
  }
  func.func @transform_9(%arg0: i32) -> (i32, i32) {
    %c0_i32 = arith.constant 0 : i32
    %c0_i32_0 = arith.constant 0 : i32
    %c0_i32_1 = arith.constant 0 : i32
    return %c0_i32, %c0_i32_0 : i32, i32
  }
  func.func @transform_10(%arg0: i32) -> (i32, i32) {
    %c0_i32 = arith.constant 0 : i32
    %c0_i32_0 = arith.constant 0 : i32
    %c0_i32_1 = arith.constant 0 : i32
    return %c0_i32, %c0_i32_0 : i32, i32
  }
  func.func @transform_11(%arg0: i32) -> (i32, i32) {
    %c0_i32 = arith.constant 0 : i32
    %c0_i32_0 = arith.constant 0 : i32
    return %arg0, %c0_i32 : i32, i32
  }
}

</mosaic_0001>

<bundles_post_ra>
// kernel: _lambda_.1
= control target key start
LH: loop header
LB: loop body
LE: loop exit
PB: predicated region body
PF: predicated region fallthrough
CT: control target
= control target key end

     0   :  { %16 = vsyncpa [#allocation3], 0  ;;  %s4201_s0 = inlined_call_operand.hbm [shape: f32[2,32], index: 0, kind: input, shape index: {}]   ;;  %s4202_s1 = inlined_call_operand.hbm [shape: f32[32,128], index: 1, kind: input, shape index: {}]   ;;  %s4203_s2 = inlined_call_operand.hbm [shape: f32[1,128], index: 2, kind: input, shape index: {}]   ;;  %s4204_s3 = inlined_call_operand.hbm [shape: f32[128,128], index: 3, kind: input, shape index: {}]   ;;  %s4205_s4 = inlined_call_operand.hbm [shape: f32[1,128], index: 4, kind: input, shape index: {}]   ;;  %s4206_s5 = inlined_call_operand.hbm [shape: f32[128,896], index: 5, kind: input, shape index: {}]   ;;  %s4207_s6 = inlined_call_operand.hbm [shape: f32[1,896], index: 6, kind: input, shape index: {}]   ;;  %s4208_s7 = inlined_call_operand.hbm [shape: f32[896,384], index: 7, kind: input, shape index: {}]   ;;  %s4209_s8 = inlined_call_operand.hbm [shape: f32[1,384], index: 8, kind: input, shape index: {}]   ;;  %s4210_s9 = inlined_call_operand.hbm [shape: f32[384,768], index: 9, kind: input, shape index: {}]   ;;  %s4211_s10 = inlined_call_operand.vmem [shape: f32[1,768], index: 10, kind: input, shape index: {}]   ;;  %s4212_s11 = inlined_call_operand.vmem [shape: f32[2,768], index: 11, kind: output, shape index: {}]  }
   0x1   :  { %17 = vsyncpa [#allocation5], 0 }
   0x2   :  { %18 = vsyncpa [#allocation8], 0 }
   0x3   :  { %19 = vsyncpa [#allocation11], 0 }
   0x4   :  { %20 = vsyncpa [#allocation14], 0 }
   0x5   :  { %21 = vsyncpa [#allocation17], 0  ;;  %s3832_s17 = smov [#allocation4]   ;;  %s3600_s21 = scalar_lea.hbm %s4202_s1, 512 }
   0x6   :  { %s37_s18 = sshll.u32 %s3832_s17, 4  ;;  %p3601_p0 = scmp.ne.s32.totalorder %s4202_s1, %s3600_s21  ;;  %s38_s18 = int_to_ptr.vmem [resolvable:$true] %s37_s18 }
   0x7   :  { %p3604_p1 = scmp.lt.u32.totalorder %s3600_s21, %s4202_s1 }
   0x9   :  { %p3606_p2 = pnand %p3604_p1, %p3601_p0 }
   0xb   :  { %3609 = shalt.err (!%p3606_p2)
}
   0xc   :  { %s3610_s26 = scalar_lea.vmem %s38_s18, 512  ;;  %p3615_p4 = scmp.lt.s32.totalorder %s38_s18, %s38_s18 }
   0xd   :  { %p3611_p3 = scmp.ne.s32.totalorder %s38_s18, %s3610_s26  ;;  %p3616_p5 = scmp.lt.s32.totalorder %s3610_s26, %s3610_s26 }
   0xf   :  { %p3617_p6 = por %p3616_p5, %p3615_p4 }
  0x11   :  { %p3618_p7 = pnand %p3617_p6, %p3611_p3 }
  0x13   :  { %3621 = shalt.err (!%p3618_p7)
}
  0x14   :  { %s3833_s27 = smov 128   ;;  %s3834_s28 = smov 8  }
  0x15   :  { %43 = dma.hbm_to_vmem [thread:$0]  %s4202_s1, 512, %s38_s18, [#allocation5], %s3833_s27, %s3833_s27, %s3834_s28  }
  0x16   :  { %s3835_s12 = smov [#allocation7]   ;;  %s3836_s14 = smov [#allocation10]  }
  0x17   :  { %s59_s13 = sshll.u32 %s3835_s12, 4  ;;  %s81_s15 = sshll.u32 %s3836_s14, 4  ;;  %s60_s13 = int_to_ptr.vmem [resolvable:$true] %s59_s13  ;;  %s82_s15 = int_to_ptr.vmem [resolvable:$true] %s81_s15 }
  0x18   :  { %s3622_s19 = scalar_lea.hbm %s4204_s3, 2048 }
  0x19   :  { %p3623_p8 = scmp.ne.s32.totalorder %s4204_s3, %s3622_s19  ;;  %p3626_p9 = scmp.lt.u32.totalorder %s3622_s19, %s4204_s3 }
  0x1b   :  { %p3628_p10 = pnand %p3626_p9, %p3623_p8 }
  0x1d   :  { %3631 = shalt.err (!%p3628_p10)
}
  0x1e   :  { %s3632_s1 = scalar_lea.vmem %s60_s13, 2048  ;;  %p3637_p12 = scmp.lt.s32.totalorder %s60_s13, %s60_s13 }
  0x1f   :  { %p3633_p11 = scmp.ne.s32.totalorder %s60_s13, %s3632_s1  ;;  %p3638_p13 = scmp.lt.s32.totalorder %s3632_s1, %s3632_s1 }
  0x21   :  { %p3639_p0 = por %p3638_p13, %p3637_p12 }
  0x23   :  { %p3640_p1 = pnand %p3639_p0, %p3633_p11 }
  0x25   :  { %3643 = shalt.err (!%p3640_p1)
}
  0x26   :  { %65 = dma.hbm_to_vmem [thread:$0]  %s4204_s3, 2048, %s60_s13, [#allocation8], %s3833_s27, %s3833_s27, %s3834_s28  }
  0x27   :  { %s3644_s29 = scalar_lea.hbm %s4206_s5, 14336 }
  0x28   :  { %p3645_p2 = scmp.ne.s32.totalorder %s4206_s5, %s3644_s29  ;;  %p3648_p3 = scmp.lt.u32.totalorder %s3644_s29, %s4206_s5 }
  0x2a   :  { %p3650_p4 = pnand %p3648_p3, %p3645_p2 }
  0x2c   :  { %3653 = shalt.err (!%p3650_p4)
}
  0x2d   :  { %s3654_s17 = scalar_lea.vmem %s82_s15, 14336  ;;  %p3659_p6 = scmp.lt.s32.totalorder %s82_s15, %s82_s15 }
  0x2e   :  { %p3655_p5 = scmp.ne.s32.totalorder %s82_s15, %s3654_s17  ;;  %p3660_p7 = scmp.lt.s32.totalorder %s3654_s17, %s3654_s17 }
  0x30   :  { %p3661_p8 = por %p3660_p7, %p3659_p6 }
  0x32   :  { %p3662_p9 = pnand %p3661_p8, %p3655_p5 }
  0x34   :  { %3665 = shalt.err (!%p3662_p9)
}
  0x35   :  { %s3837_s3 = smov 896   ;;  %s3838_s27 = smov 56  }
  0x36   :  { %87 = dma.hbm_to_vmem [thread:$0]  %s4206_s5, 14336, %s82_s15, [#allocation11], %s3837_s3, %s3837_s3, %s3838_s27  }
  0x37   :  { %s3839_s19 = smov [#allocation13]   ;;  %s3666_s23 = scalar_lea.hbm %s4208_s7, 43008 }
  0x38   :  { %s103_s20 = sshll.u32 %s3839_s19, 4  ;;  %p3667_p10 = scmp.ne.s32.totalorder %s4208_s7, %s3666_s23  ;;  %s104_s20 = int_to_ptr.vmem [resolvable:$true] %s103_s20 }
  0x39   :  { %p3670_p11 = scmp.lt.u32.totalorder %s3666_s23, %s4208_s7 }
  0x3b   :  { %p3672_p12 = pnand %p3670_p11, %p3667_p10 }
  0x3d   :  { %3675 = shalt.err (!%p3672_p12)
}
  0x3e   :  { %s3676_s26 = scalar_lea.vmem %s104_s20, 43008  ;;  %p3681_p0 = scmp.lt.s32.totalorder %s104_s20, %s104_s20 }
  0x3f   :  { %p3677_p13 = scmp.ne.s32.totalorder %s104_s20, %s3676_s26  ;;  %p3682_p1 = scmp.lt.s32.totalorder %s3676_s26, %s3676_s26 }
  0x41   :  { %p3683_p2 = por %p3682_p1, %p3681_p0 }
  0x43   :  { %p3684_p3 = pnand %p3683_p2, %p3677_p13 }
  0x45   :  { %3687 = shalt.err (!%p3684_p3)
}
  0x46   :  { %s3840_s5 = smov 384   ;;  %s3841_s15 = smov 24  }
  0x47   :  { %109 = dma.hbm_to_vmem [thread:$0]  %s4208_s7, 43008, %s104_s20, [#allocation14], %s3840_s5, %s3840_s5, %s3841_s15  }
  0x48   :  { %s3842_s12 = smov [#allocation2]   ;;  %s3843_s16 = smov [#allocation6]  }
  0x49   :  { %s28_s14 = sshll.u32 %s3842_s12, 4  ;;  %s50_s17 = sshll.u32 %s3843_s16, 4  ;;  %s29_s14 = int_to_ptr.vmem [resolvable:$true] %s28_s14  ;;  %s51_s17 = int_to_ptr.vmem [resolvable:$true] %s50_s17 }
  0x4a   :  { %s3688_s28 = scalar_lea.hbm %s4201_s0, 32 }
  0x4b   :  { %p3689_p4 = scmp.ne.s32.totalorder %s4201_s0, %s3688_s28  ;;  %p3692_p5 = scmp.lt.u32.totalorder %s3688_s28, %s4201_s0 }
  0x4d   :  { %p3694_p6 = pnand %p3692_p5, %p3689_p4 }
  0x4f   :  { %3697 = shalt.err (!%p3694_p6)
}
  0x50   :  { %s3698_s7 = scalar_lea.vmem %s29_s14, 32  ;;  %p3703_p8 = scmp.lt.s32.totalorder %s29_s14, %s29_s14 }
  0x51   :  { %p3699_p7 = scmp.ne.s32.totalorder %s29_s14, %s3698_s7  ;;  %p3704_p9 = scmp.lt.s32.totalorder %s3698_s7, %s3698_s7 }
  0x53   :  { %p3705_p10 = por %p3704_p9, %p3703_p8 }
  0x55   :  { %p3706_p11 = pnand %p3705_p10, %p3699_p7 }
  0x57   :  { %3709 = shalt.err (!%p3706_p11)
}
  0x58   :  { %31 = dma.hbm_to_vmem [thread:$0]  %s4201_s0, 32, %s29_s14, [#allocation3]  }
  0x59   :  { %s3710_s24 = scalar_lea.hbm %s4203_s2, 16 }
  0x5a   :  { %p3711_p12 = scmp.ne.s32.totalorder %s4203_s2, %s3710_s24  ;;  %p3714_p13 = scmp.lt.u32.totalorder %s3710_s24, %s4203_s2 }
  0x5c   :  { %p3716_p0 = pnand %p3714_p13, %p3711_p12 }
  0x5e   :  { %3719 = shalt.err (!%p3716_p0)
}
  0x5f   :  { %s3720_s29 = scalar_lea.vmem %s51_s17, 16  ;;  %s3724_s30 = scalar_lea.vmem %s51_s17, 32 }
  0x60   :  { %p3721_p1 = scmp.ne.s32.totalorder %s51_s17, %s3720_s29  ;;  %p3725_p2 = scmp.lt.s32.totalorder %s51_s17, %s51_s17 }
  0x61   :  { %p3726_p3 = scmp.lt.s32.totalorder %s3724_s30, %s3720_s29 }
  0x63   :  { %p3727_p4 = por %p3726_p3, %p3725_p2 }
  0x65   :  { %p3728_p5 = pnand %p3727_p4, %p3721_p1 }
  0x67   :  { %3731 = shalt.err (!%p3728_p5)
}
  0x68   :  { %53 = dma.hbm_to_vmem [thread:$0]  %s4203_s2, 16, %s51_s17, [#allocation5]  }
  0x69   :  { %s3844_s14 = smov [#allocation9]   ;;  %s3845_s3 = smov [#allocation12]  }
  0x6a   :  { %s72_s16 = sshll.u32 %s3844_s14, 4  ;;  %s94_s27 = sshll.u32 %s3845_s3, 4  ;;  %s73_s16 = int_to_ptr.vmem [resolvable:$true] %s72_s16  ;;  %s95_s27 = int_to_ptr.vmem [resolvable:$true] %s94_s27 }
  0x6b   :  { %s3732_s19 = scalar_lea.hbm %s4205_s4, 16 }
  0x6c   :  { %p3733_p6 = scmp.ne.s32.totalorder %s4205_s4, %s3732_s19  ;;  %p3736_p7 = scmp.lt.u32.totalorder %s3732_s19, %s4205_s4 }
  0x6e   :  { %p3738_p8 = pnand %p3736_p7, %p3733_p6 }
  0x70   :  { %3741 = shalt.err (!%p3738_p8)
}
  0x71   :  { %s3742_s2 = scalar_lea.vmem %s73_s16, 16  ;;  %s3746_s17 = scalar_lea.vmem %s73_s16, 32 }
  0x72   :  { %p3743_p9 = scmp.ne.s32.totalorder %s73_s16, %s3742_s2  ;;  %p3747_p10 = scmp.lt.s32.totalorder %s73_s16, %s73_s16 }
  0x73   :  { %p3748_p11 = scmp.lt.s32.totalorder %s3746_s17, %s3742_s2 }
  0x75   :  { %p3749_p12 = por %p3748_p11, %p3747_p10 }
  0x77   :  { %p3750_p13 = pnand %p3749_p12, %p3743_p9 }
  0x79   :  { %3753 = shalt.err (!%p3750_p13)
}
  0x7a   :  { %75 = dma.hbm_to_vmem [thread:$0]  %s4205_s4, 16, %s73_s16, [#allocation8]  }
  0x7b   :  { %s3754_s25 = scalar_lea.hbm %s4207_s6, 112 }
  0x7c   :  { %p3755_p0 = scmp.ne.s32.totalorder %s4207_s6, %s3754_s25  ;;  %p3758_p1 = scmp.lt.u32.totalorder %s3754_s25, %s4207_s6 }
  0x7e   :  { %p3760_p2 = pnand %p3758_p1, %p3755_p0 }
  0x80   :  { %3763 = shalt.err (!%p3760_p2)
}
  0x81   :  { %s3764_s30 = scalar_lea.vmem %s95_s27, 112  ;;  %s3768_s0 = scalar_lea.vmem %s95_s27, 128 }
  0x82   :  { %p3765_p3 = scmp.ne.s32.totalorder %s95_s27, %s3764_s30  ;;  %p3769_p4 = scmp.lt.s32.totalorder %s95_s27, %s95_s27 }
  0x83   :  { %p3770_p5 = scmp.lt.s32.totalorder %s3768_s0, %s3764_s30 }
  0x85   :  { %p3771_p6 = por %p3770_p5, %p3769_p4 }
  0x87   :  { %p3772_p7 = pnand %p3771_p6, %p3765_p3 }
  0x89   :  { %3775 = shalt.err (!%p3772_p7)
}
  0x8a   :  { %97 = dma.hbm_to_vmem [thread:$0]  %s4207_s6, 112, %s95_s27, [#allocation11]  }
  0x8b   :  { %s3846_s14 = smov [#allocation15]   ;;  %s3847_s3 = smov [#allocation16]  }
  0x8c   :  { %s116_s16 = sshll.u32 %s3846_s14, 4  ;;  %s125_s28 = sshll.u32 %s3847_s3, 4  ;;  %s117_s16 = int_to_ptr.vmem [resolvable:$true] %s116_s16  ;;  %s4010_s28 = int_to_ptr.vmem [resolvable:$true] %s125_s28 }
  0x8d   :  { %s3776_s21 = scalar_lea.hbm %s4209_s8, 48 }
  0x8e   :  { %p3777_p8 = scmp.ne.s32.totalorder %s4209_s8, %s3776_s21  ;;  %p3780_p9 = scmp.lt.u32.totalorder %s3776_s21, %s4209_s8 }
  0x90   :  { %p3782_p10 = pnand %p3780_p9, %p3777_p8 }
  0x92   :  { %3785 = shalt.err (!%p3782_p10)
}
  0x93   :  { %s3786_s6 = scalar_lea.vmem %s117_s16, 48  ;;  %s3790_s27 = scalar_lea.vmem %s117_s16, 64 }
  0x94   :  { %p3787_p11 = scmp.ne.s32.totalorder %s117_s16, %s3786_s6  ;;  %p3791_p12 = scmp.lt.s32.totalorder %s117_s16, %s117_s16 }
  0x95   :  { %p3792_p13 = scmp.lt.s32.totalorder %s3790_s27, %s3786_s6 }
  0x97   :  { %p3793_p0 = por %p3792_p13, %p3791_p12 }
  0x99   :  { %p3794_p1 = pnand %p3793_p0, %p3787_p11 }
  0x9b   :  { %3797 = shalt.err (!%p3794_p1)
}
  0x9c   :  { %119 = dma.hbm_to_vmem [thread:$0]  %s4209_s8, 48, %s117_s16, [#allocation14]  }
  0x9d   :  { %s3798_s24 = scalar_lea.hbm %s4210_s9, 36864 }
  0x9e   :  { %p3799_p2 = scmp.ne.s32.totalorder %s4210_s9, %s3798_s24  ;;  %p3802_p3 = scmp.lt.u32.totalorder %s3798_s24, %s4210_s9 }
  0xa0   :  { %p3804_p4 = pnand %p3802_p3, %p3799_p2 }
  0xa2   :  { %3807 = shalt.err (!%p3804_p4)
}
  0xa3   :  { %s3808_s29 = scalar_lea.vmem %s4010_s28, 36864  ;;  %p3813_p6 = scmp.lt.s32.totalorder %s4010_s28, %s4010_s28 }
  0xa4   :  { %p3809_p5 = scmp.ne.s32.totalorder %s4010_s28, %s3808_s29  ;;  %p3814_p7 = scmp.lt.s32.totalorder %s3808_s29, %s3808_s29 }
  0xa6   :  { %p3815_p8 = por %p3814_p7, %p3813_p6 }
  0xa8   :  { %p3816_p9 = pnand %p3815_p8, %p3809_p5 }
  0xaa   :  { %3819 = shalt.err (!%p3816_p9)
}
  0xab   :  { %s3848_s8 = smov 768   ;;  %s3849_s30 = smov 48  }
  0xac   :  { %131 = dma.hbm_to_vmem [thread:$0]  %s4210_s9, 36864, %s4010_s28, [#allocation17], %s3848_s8, %s3848_s8, %s3849_s30  }
  0xad   :  { %3820 = dma.done.wait [#allocation3], 32  }
  0xae   :  { %3821 = vsyncadd [#allocation3], 4294967264 }
  0xaf   :  { %3822 = dma.done.wait [#allocation5], 528  }
  0xb0   :  { %3823 = vsyncadd [#allocation5], 4294966768 }
  0xb1   :  { %3824 = dma.done.wait [#allocation8], 2064  }
  0xb2   :  { %3825 = vsyncadd [#allocation8], 4294965232 }
  0xb3   :  { %3826 = dma.done.wait [#allocation11], 14448  }
  0xb4   :  { %3827 = vsyncadd [#allocation11], 4294952848 }
  0xb5   :  { %3828 = dma.done.wait [#allocation14], 43056  }
  0xb6   :  { %3829 = vsyncadd [#allocation14], 4294924240 }
  0xb7   :  { %3830 = dma.done.wait [#allocation17], 36864  }
  0xb8   :  { %3831 = vsyncadd [#allocation17], 4294930432  ;;  %v3850_v0 = vmov 0.0|0.0   ;;  %vm3851_vm0 = vmmov 0   ;;  %v3852_v1 = vmov 0.0   ;;  %v165_v2 = vld [vmem:[#allocation4] sm:$0xff] }
  0xb9   :  { %2776 = vmatprep.subr.bf16.mxu0 %v3850_v0  ;;  %2668 = vmatprep.mubr.msk.f32.mxu0 %vm3851_vm0, %v3852_v1  ;;  %v166_v3 = vld [vmem:[#allocation4 + $0x8] sm:$0xff]  ;;  %v167_v4 = vld [vmem:[#allocation4 + $0x10] sm:$0xff]  ;;  %v168_v6 = vld [vmem:[#allocation4 + $0x18] sm:$0xff]  ;;  %vm176_vm1 = vcmask 261120  }
  0xba   :  { %2782 = vmatprep.subr.bf16.mxu1 %v3850_v0  ;;  %2703 = vmatprep.mubr.msk.f32.mxu1 %vm3851_vm0, %v3852_v1  ;;  %v2777_v5 = vpack.c.bf16 %v166_v3, %v165_v2  ;;  %v251_v7 = vld [vmem:[#allocation7] sm:$0xff]  ;;  %v252_v8 = vld [vmem:[#allocation7 + $0x8] sm:$0xff]  ;;  %v253_v9 = vld [vmem:[#allocation7 + $0x10] sm:$0xff]  ;;  %v2780_v11 = vpack.c.bf16 %v168_v6, %v167_v4 }
  0xbb   :  { %v254_v10 = vld [vmem:[#allocation7 + $0x18] sm:$0xff]  ;;  %v2783_v12 = vpack.c.bf16 %v252_v8, %v251_v7  ;;  %v255_v14 = vld [vmem:[#allocation7 + $0x20] sm:$0xff]  ;;  %v256_v15 = vld [vmem:[#allocation7 + $0x28] sm:$0xff] }
  0xbc   :  { %2778 = vmatpush3.bf16.msra.mxu0 %v2777_v5  ;;  %v2786_v13 = vpack.c.bf16 %v254_v10, %v253_v9  ;;  %v164_v16 = vld [vmem:[#allocation2] sm:$0x3]  ;;  %v2789_v17 = vpack.c.bf16 %v256_v15, %v255_v14  ;;  %v257_v18 = vld [vmem:[#allocation7 + $0x30] sm:$0xff]  ;;  %v259_v21 = vld [vmem:[#allocation7 + $0x40] sm:$0xff] }
  0xbd   :  { %2779 = vmatprep.subr.bf16.mxu0 %v3850_v0  ;;  %2784 = vmatpush3.bf16.msra.mxu1 %v2783_v12  ;;  %v258_v19 = vld [vmem:[#allocation7 + $0x38] sm:$0xff]  ;;  %v260_v22 = vld [vmem:[#allocation7 + $0x48] sm:$0xff]  ;;  %v261_v24 = vld [vmem:[#allocation7 + $0x50] sm:$0xff] }
  0xbe   :  { %2785 = vmatprep.subr.bf16.mxu1 %v3850_v0  ;;  %v2792_v20 = vpack.c.bf16 %v258_v19, %v257_v18  ;;  %v2795_v23 = vpack.c.bf16 %v260_v22, %v259_v21  ;;  %v262_v25 = vld [vmem:[#allocation7 + $0x58] sm:$0xff]  ;;  %v263_v27 = vld [vmem:[#allocation7 + $0x60] sm:$0xff]  ;;  %v264_v28 = vld [vmem:[#allocation7 + $0x68] sm:$0xff] }
  0xbf   :  { %v2798_v26 = vpack.c.bf16 %v262_v25, %v261_v24  ;;  %v2801_v29 = vpack.c.bf16 %v264_v28, %v263_v27  ;;  %v265_v30 = vld [vmem:[#allocation7 + $0x70] sm:$0xff]  ;;  %v266_v31 = vld [vmem:[#allocation7 + $0x78] sm:$0xff]  ;;  %v353_v34 = vld [vmem:[#allocation10 + $0x40] sm:$0xff] }
  0xc0   :  { %2781 = vmatpush3.bf16.msra.mxu0 %v2780_v11  ;;  %v2804_v32 = vpack.c.bf16 %v266_v31, %v265_v30  ;;  %v346_v33 = vld [vmem:[#allocation10 + $0x8] sm:$0xff]  ;;  %v348_v35 = vld [vmem:[#allocation10 + $0x18] sm:$0xff]  ;;  %v355_v37 = vld [vmem:[#allocation10 + $0x50] sm:$0xff] }
  0xc1   :  { %2787 = vmatpush3.bf16.msra.mxu1 %v2786_v13  ;;  %v2806_v36 = vpack.c.bf16 %v353_v34, %v346_v33  ;;  %v345_v38 = vld [vmem:[#allocation10] sm:$0xff]  ;;  %v352_v39 = vld [vmem:[#allocation10 + $0x38] sm:$0xff]  ;;  %v2838_v40 = vpack.c.bf16 %v355_v37, %v348_v35  ;;  %v367_v43 = vld [vmem:[#allocation10 + $0xb0] sm:$0xff] }
  0xc2   :  { %2788 = vmatprep.subr.bf16.mxu1 %v3850_v0  ;;  %v2808_v41 = vpack.c.bf16 %v352_v39, %v345_v38  ;;  %v360_v42 = vld [vmem:[#allocation10 + $0x78] sm:$0xff]  ;;  %v359_v45 = vld [vmem:[#allocation10 + $0x70] sm:$0xff]  ;;  %v366_v46 = vld [vmem:[#allocation10 + $0xa8] sm:$0xff] }
  0xc3   :  { %2669 = vmatmul.mubr.msk.f32.vlgmr.msra.gmra.mrb[0].mxu0 %vm176_vm1, %v164_v16  ;;  %2807 = vmatprep.subr.bf16.mxu0 %v2806_v36  ;;  %v2810_v44 = vpack.c.bf16 %v367_v43, %v360_v42  ;;  %v2812_v47 = vpack.c.bf16 %v366_v46, %v359_v45  ;;  %v374_v48 = vld [vmem:[#allocation10 + $0xe8] sm:$0xff]  ;;  %v381_v49 = vld [vmem:[#allocation10 + $0x120] sm:$0xff]  ;;  %v380_v52 = vld [vmem:[#allocation10 + $0x118] sm:$0xff] }
  0xc4   :  { %558 = vmatprep.mubr.f32.mxu0 %v3852_v1  ;;  %2809 = vmatpush1.bf16.msra.mxu0 %v2808_v41  ;;  %v2814_v50 = vpack.c.bf16 %v381_v49, %v374_v48  ;;  %v373_v51 = vld [vmem:[#allocation10 + $0xe0] sm:$0xff]  ;;  %v388_v54 = vld [vmem:[#allocation10 + $0x158] sm:$0xff]  ;;  %v395_v55 = vld [vmem:[#allocation10 + $0x190] sm:$0xff] }
  0xc5   :  { %2790 = vmatpush3.bf16.msra.mxu1 %v2789_v17  ;;  %2811 = vmatprep.subr.bf16.mxu0 %v2810_v44  ;;  %v2816_v53 = vpack.c.bf16 %v380_v52, %v373_v51  ;;  %v2818_v56 = vpack.c.bf16 %v395_v55, %v388_v54  ;;  %v387_v57 = vld [vmem:[#allocation10 + $0x150] sm:$0xff]  ;;  %v394_v58 = vld [vmem:[#allocation10 + $0x188] sm:$0xff]  ;;  %v409_v61 = vld [vmem:[#allocation10 + $0x200] sm:$0xff] }
  0xc6   :  { %2791 = vmatprep.subr.bf16.mxu1 %v3850_v0  ;;  %v2820_v59 = vpack.c.bf16 %v394_v58, %v387_v57  ;;  %v402_v60 = vld [vmem:[#allocation10 + $0x1c8] sm:$0xff]  ;;  %v401_v63 = vld [vmem:[#allocation10 + $0x1c0] sm:$0xff]  ;;  %v408_v2 = vld [vmem:[#allocation10 + $0x1f8] sm:$0xff] }
  0xc7   :  { %v2822_v62 = vpack.c.bf16 %v409_v61, %v402_v60  ;;  %v2824_v3 = vpack.c.bf16 %v408_v2, %v401_v63  ;;  %v416_v4 = vld [vmem:[#allocation10 + $0x238] sm:$0xff]  ;;  %v423_v5 = vld [vmem:[#allocation10 + $0x270] sm:$0xff]  ;;  %v422_v8 = vld [vmem:[#allocation10 + $0x268] sm:$0xff] }
  0xc8   :  { %2813 = vmatpush1.bf16.msra.mxu0 %v2812_v47  ;;  %v2826_v6 = vpack.c.bf16 %v423_v5, %v416_v4  ;;  %v415_v7 = vld [vmem:[#allocation10 + $0x230] sm:$0xff]  ;;  %v430_v10 = vld [vmem:[#allocation10 + $0x2a8] sm:$0xff]  ;;  %v437_v11 = vld [vmem:[#allocation10 + $0x2e0] sm:$0xff] }
  0xc9   :  { %2793 = vmatpush3.bf16.msra.mxu1 %v2792_v20  ;;  %2815 = vmatprep.subr.bf16.mxu0 %v2814_v50  ;;  %v2828_v9 = vpack.c.bf16 %v422_v8, %v415_v7  ;;  %v2830_v12 = vpack.c.bf16 %v437_v11, %v430_v10  ;;  %v429_v13 = vld [vmem:[#allocation10 + $0x2a0] sm:$0xff]  ;;  %v436_v14 = vld [vmem:[#allocation10 + $0x2d8] sm:$0xff]  ;;  %v347_v17 = vld [vmem:[#allocation10 + $0x10] sm:$0xff] }
  0xca   :  { %2794 = vmatprep.subr.bf16.mxu1 %v3850_v0  ;;  %v2832_v15 = vpack.c.bf16 %v436_v14, %v429_v13  ;;  %v2495_v16 = vld [vmem:[#allocation6] ss:$0 sm:$0xff]  ;;  %v354_v18 = vld [vmem:[#allocation10 + $0x48] sm:$0xff]  ;;  %v369_v21 = vld [vmem:[#allocation10 + $0xc0] sm:$0xff] }
  0xcb   :  { %v362_v20 = vld [vmem:[#allocation10 + $0x88] sm:$0xff]  ;;  %v2840_v24 = vpack.c.bf16 %v354_v18, %v347_v17  ;;  %v361_v27 = vld [vmem:[#allocation10 + $0x80] sm:$0xff]  ;;  %v368_v28 = vld [vmem:[#allocation10 + $0xb8] sm:$0xff] }
  0xcc   :  { %2817 = vmatpush1.bf16.msra.mxu0 %v2816_v53  ;;  %v383_v30 = vld [vmem:[#allocation10 + $0x130] sm:$0xff]  ;;  %v2844_v31 = vpack.c.bf16 %v368_v28, %v361_v27  ;;  %v382_v34 = vld [vmem:[#allocation10 + $0x128] sm:$0xff]  ;;  %v397_v36 = vld [vmem:[#allocation10 + $0x1a0] sm:$0xff] }
  0xcd   :  { %2796 = vmatpush3.bf16.msra.mxu1 %v2795_v23  ;;  %2819 = vmatprep.subr.bf16.mxu0 %v2818_v56  ;;  %v375_v33 = vld [vmem:[#allocation10 + $0xf0] sm:$0xff]  ;;  %v390_v35 = vld [vmem:[#allocation10 + $0x168] sm:$0xff]  ;;  %v389_v39 = vld [vmem:[#allocation10 + $0x160] sm:$0xff] }
  0xce   :  { %2797 = vmatprep.subr.bf16.mxu1 %v3850_v0  ;;  %v2848_v37 = vpack.c.bf16 %v382_v34, %v375_v33  ;;  %v2850_v38 = vpack.c.bf16 %v397_v36, %v390_v35  ;;  %v404_v41 = vld [vmem:[#allocation10 + $0x1d8] sm:$0xff]  ;;  %v411_v42 = vld [vmem:[#allocation10 + $0x210] sm:$0xff]  ;;  %v410_v46 = vld [vmem:[#allocation10 + $0x208] sm:$0xff] }
  0xcf   :  { %v2854_v44 = vpack.c.bf16 %v411_v42, %v404_v41  ;;  %v403_v45 = vld [vmem:[#allocation10 + $0x1d0] sm:$0xff]  ;;  %v418_v47 = vld [vmem:[#allocation10 + $0x248] sm:$0xff]  ;;  %v425_v48 = vld [vmem:[#allocation10 + $0x280] sm:$0xff] }
  0xd0   :  { %2821 = vmatpush1.bf16.msra.mxu0 %v2820_v59  ;;  %v2856_v49 = vpack.c.bf16 %v410_v46, %v403_v45  ;;  %v2858_v50 = vpack.c.bf16 %v425_v48, %v418_v47  ;;  %v417_v51 = vld [vmem:[#allocation10 + $0x240] sm:$0xff]  ;;  %v424_v52 = vld [vmem:[#allocation10 + $0x278] sm:$0xff]  ;;  %v439_v54 = vld [vmem:[#allocation10 + $0x2f0] sm:$0xff] }
  0xd1   :  { %2799 = vmatpush3.bf16.msra.mxu1 %v2798_v26  ;;  %2823 = vmatprep.subr.bf16.mxu0 %v2822_v62  ;;  %v2842_v26 = vpack.c.bf16 %v369_v21, %v362_v20  ;;  %v432_v53 = vld [vmem:[#allocation10 + $0x2b8] sm:$0xff]  ;;  %v2860_v55 = vpack.c.bf16 %v424_v52, %v417_v51  ;;  %v431_v57 = vld [vmem:[#allocation10 + $0x2b0] sm:$0xff]  ;;  %v438_v58 = vld [vmem:[#allocation10 + $0x2e8] sm:$0xff] }
  0xd2   :  { %2800 = vmatprep.subr.bf16.mxu1 %v3850_v0  ;;  %v2862_v56 = vpack.c.bf16 %v439_v54, %v432_v53  ;;  %v2864_v59 = vpack.c.bf16 %v438_v58, %v431_v57  ;;  %v444_v60 = vld [vmem:[#allocation10 + $0x318] sm:$0xff]  ;;  %v451_v61 = vld [vmem:[#allocation10 + $0x350] sm:$0xff]  ;;  %v446_v62 = vld [vmem:[#allocation10 + $0x328] sm:$0xff] }
  0xd3   :  { %v2834_v63 = vpack.c.bf16 %v451_v61, %v444_v60  ;;  %v453_v2 = vld [vmem:[#allocation10 + $0x360] sm:$0xff]  ;;  %v450_v4 = vld [vmem:[#allocation10 + $0x348] sm:$0xff]  ;;  %v452_v8 = vld [vmem:[#allocation10 + $0x358] sm:$0xff] }
  0xd4   :  { %2825 = vmatpush1.bf16.msra.mxu0 %v2824_v3  ;;  %v443_v3 = vld [vmem:[#allocation10 + $0x310] sm:$0xff]  ;;  %v2866_v5 = vpack.c.bf16 %v453_v2, %v446_v62  ;;  %v445_v7 = vld [vmem:[#allocation10 + $0x320] sm:$0xff]  ;;  %v350_v10 = vld [vmem:[#allocation10 + $0x28] sm:$0xff] }
  0xd5   :  { %2802 = vmatpush3.bf16.msra.mxu1 %v2801_v29  ;;  %2827 = vmatprep.subr.bf16.mxu0 %v2826_v6  ;;  %v376_v29 = vld [vmem:[#allocation10 + $0xf8] sm:$0xff]  ;;  %v2836_v6 = vpack.c.bf16 %v450_v4, %v443_v3  ;;  %v357_v11 = vld [vmem:[#allocation10 + $0x60] sm:$0xff]  ;;  %v358_v17 = vld [vmem:[#allocation10 + $0x68] sm:$0xff] }
  0xd6   :  { %2803 = vmatprep.subr.bf16.mxu1 %v3850_v0  ;;  %v2497_v13 = vld [vmem:[#allocation9] ss:$0 sm:$0xff]  ;;  %v349_v14 = vld [vmem:[#allocation10 + $0x20] sm:$0xff]  ;;  %v371_v20 = vld [vmem:[#allocation10 + $0xd0] sm:$0xff] }
  0xd7   :  { %v370_v28 = vld [vmem:[#allocation10 + $0xc8] sm:$0xff]  ;;  %v377_v35 = vld [vmem:[#allocation10 + $0x100] sm:$0xff]  ;;  %v399_v41 = vld [vmem:[#allocation10 + $0x1b0] sm:$0xff] }
  0xd8   :  { %2829 = vmatpush1.bf16.msra.mxu0 %v2828_v9  ;;  %v2868_v9 = vpack.c.bf16 %v452_v8, %v445_v7  ;;  %v398_v46 = vld [vmem:[#allocation10 + $0x1a8] sm:$0xff]  ;;  %v393_v47 = vld [vmem:[#allocation10 + $0x180] sm:$0xff]  ;;  %v400_v48 = vld [vmem:[#allocation10 + $0x1b8] sm:$0xff] }
  0xd9   :  { %2805 = vmatpush3.bf16.msra.mxu1 %v2804_v32  ;;  %2831 = vmatprep.subr.bf16.mxu0 %v2830_v12  ;;  %v2846_v32 = vpack.c.bf16 %v383_v30, %v376_v29  ;;  %v2870_v12 = vpack.c.bf16 %v357_v11, %v350_v10  ;;  %v365_v29 = vld [vmem:[#allocation10 + $0xa0] sm:$0xff]  ;;  %v372_v30 = vld [vmem:[#allocation10 + $0xd8] sm:$0xff]  ;;  %v2912_v52 = vpack.c.bf16 %v400_v48, %v393_v47  ;;  %v414_v57 = vld [vmem:[#allocation10 + $0x228] sm:$0xff] }
  0xda   :  { %2839 = vmatprep.subr.bf16.mxu1 %v2838_v40  ;;  %v396_v40 = vld [vmem:[#allocation10 + $0x198] sm:$0xff]  ;;  %v2906_v34 = vpack.c.bf16 %v372_v30, %v365_v29  ;;  %v405_v53 = vld [vmem:[#allocation10 + $0x1e0] sm:$0xff]  ;;  %v419_v62 = vld [vmem:[#allocation10 + $0x250] sm:$0xff] }
  0xdb   :  { %v2852_v43 = vpack.c.bf16 %v396_v40, %v389_v39  ;;  %v386_v39 = vld [vmem:[#allocation10 + $0x148] sm:$0xff]  ;;  %v392_v40 = vld [vmem:[#allocation10 + $0x178] sm:$0xff]  ;;  %v421_v3 = vld [vmem:[#allocation10 + $0x260] sm:$0xff] }
  0xdc   :  { %2833 = vmatpush1.bf16.msra.mxu0 %v2832_v15  ;;  %v356_v15 = vld [vmem:[#allocation10 + $0x58] sm:$0xff]  ;;  %v2882_v45 = vpack.c.bf16 %v399_v41, %v392_v40  ;;  %v426_v2 = vld [vmem:[#allocation10 + $0x288] sm:$0xff]  ;;  %v795_v48 = vld [vmem:[#allocation13 + $0x58] sm:$0xff] }
  0xdd   :  { %2835 = vmatprep.subr.bf16.mxu0 %v2834_v63  ;;  %v420_v58 = vld [vmem:[#allocation10 + $0x258] sm:$0xff]  ;;  %v2892_v7 = vpack.c.bf16 %v426_v2, %v419_v62  ;;  %v784_v30 = vld [vmem:[#allocation13] sm:$0xff] }
  0xde   :  { %v428_v4 = vld [vmem:[#allocation10 + $0x298] sm:$0xff]  ;;  %v792_v47 = vld [vmem:[#allocation13 + $0x40] sm:$0xff] }
  0xdf   :  { %v2918_v8 = vpack.c.bf16 %v428_v4, %v421_v3  ;;  %v440_v11 = vld [vmem:[#allocation10 + $0x2f8] sm:$0xff]  ;;  %v852_v62 = vld [vmem:[#allocation13 + $0x220] sm:$0xff] }
  0xe0   :  { %2837 = vmatpush1.bf16.msra.mxu0 %v2836_v6  ;;  %v441_v6 = vld [vmem:[#allocation10 + $0x300] sm:$0xff]  ;;  %v790_v41 = vld [vmem:[#allocation13 + $0x30] sm:$0xff] }
  0xe1   :  { %2871 = vmatprep.subr.bf16.mxu0 %v2870_v12  ;;  %v435_v12 = vld [vmem:[#allocation10 + $0x2d0] sm:$0xff]  ;;  %v802_v3 = vld [vmem:[#allocation13 + $0x90] sm:$0xff] }
 0x196   :  { %v246_v19 = vpop.f32.mrb[0].mxu0 }
 0x197   :  { %v247_v22 = vadd.f32 %v2495_v16, %v246_v19  ;;  %v2670_v23 = vpop.f32.mrb[1].mxu0  ;;  %v351_v16 = vld [vmem:[#allocation10 + $0x30] sm:$0xff]  ;;  %v364_v19 = vld [vmem:[#allocation10 + $0x98] sm:$0xff] }
 0x198   :  { %v2872_v23 = vpack.c.bf16 %v356_v15, %v349_v14  ;;  %v2874_v27 = vpack.c.bf16 %v371_v20, %v364_v19  ;;  %v448_v14 = vld [vmem:[#allocation10 + $0x338] sm:$0xff]  ;;  %v455_v15 = vld [vmem:[#allocation10 + $0x370] sm:$0xff]  ;;  %v454_v19 = vld [vmem:[#allocation10 + $0x368] sm:$0xff] }
 0x199   :  { %v250_v25 = vmax.f32 %v247_v22, 0.0  ;;  %v2898_v20 = vpack.c.bf16 %v455_v15, %v448_v14  ;;  %v808_v14 = vld [vmem:[#allocation13 + $0xc0] sm:$0xff]  ;;  %v811_v15 = vld [vmem:[#allocation13 + $0xd8] sm:$0xff] }
 0x19b   :  { %2704 = vmatmul.mubr.f32.vlgmr.msra.gmra.mrb[0].mxu1 %v250_v25  ;;  %v363_v25 = vld [vmem:[#allocation10 + $0x90] sm:$0xff] }
 0x19c   :  { %2841 = vmatpush1.bf16.msra.mxu1 %v2840_v24  ;;  %629 = vmatprep.mubr.f32.mxu1 %v3852_v1  ;;  %v2903_v24 = vpack.c.bf16 %v358_v17, %v351_v16  ;;  %v2876_v33 = vpack.c.bf16 %v370_v28, %v363_v25  ;;  %v834_v25 = vld [vmem:[#allocation13 + $0x190] sm:$0xff] }
 0x19d   :  { %2843 = vmatprep.subr.bf16.mxu1 %v2842_v26 }
 0x1a0   :  { %2845 = vmatpush1.bf16.msra.mxu1 %v2844_v31  ;;  %v378_v31 = vld [vmem:[#allocation10 + $0x108] sm:$0xff] }
 0x1a1   :  { %2847 = vmatprep.subr.bf16.mxu1 %v2846_v32  ;;  %v385_v32 = vld [vmem:[#allocation10 + $0x140] sm:$0xff] }
 0x1a2   :  { %v2878_v36 = vpack.c.bf16 %v385_v32, %v378_v31  ;;  %v787_v31 = vld [vmem:[#allocation13 + $0x18] sm:$0xff] }
 0x1a3   :  { %v2928_v40 = vpack.c.bf16 %v787_v31, %v784_v30  ;;  %v821_v31 = vld [vmem:[#allocation13 + $0x128] sm:$0xff] }
 0x1a4   :  { %2849 = vmatpush1.bf16.msra.mxu1 %v2848_v37  ;;  %v384_v37 = vld [vmem:[#allocation10 + $0x138] sm:$0xff] }
 0x1a5   :  { %2851 = vmatprep.subr.bf16.mxu1 %v2850_v38  ;;  %v379_v38 = vld [vmem:[#allocation10 + $0x110] sm:$0xff]  ;;  %v2880_v42 = vpack.c.bf16 %v384_v37, %v377_v35  ;;  %v786_v35 = vld [vmem:[#allocation13 + $0x10] sm:$0xff] }
 0x1a6   :  { %v794_v37 = vld [vmem:[#allocation13 + $0x50] sm:$0xff] }
 0x1a8   :  { %2853 = vmatpush1.bf16.msra.mxu1 %v2852_v43  ;;  %v2909_v43 = vpack.c.bf16 %v386_v39, %v379_v38  ;;  %v840_v38 = vld [vmem:[#allocation13 + $0x1c0] sm:$0xff]  ;;  %v843_v39 = vld [vmem:[#allocation13 + $0x1d8] sm:$0xff] }
 0x1a9   :  { %2855 = vmatprep.subr.bf16.mxu1 %v2854_v44  ;;  %v391_v44 = vld [vmem:[#allocation10 + $0x170] sm:$0xff] }
 0x1aa   :  { %v2884_v51 = vpack.c.bf16 %v398_v46, %v391_v44  ;;  %v3154_v46 = vpack.c.bf16 %v843_v39, %v840_v38  ;;  %v820_v39 = vld [vmem:[#allocation13 + $0x120] sm:$0xff] }
 0x1ac   :  { %2857 = vmatpush1.bf16.msra.mxu1 %v2856_v49  ;;  %v406_v49 = vld [vmem:[#allocation10 + $0x1e8] sm:$0xff] }
 0x1ad   :  { %2859 = vmatprep.subr.bf16.mxu1 %v2858_v50  ;;  %v413_v50 = vld [vmem:[#allocation10 + $0x220] sm:$0xff] }
 0x1ae   :  { %v2886_v54 = vpack.c.bf16 %v413_v50, %v406_v49  ;;  %v800_v49 = vld [vmem:[#allocation13 + $0x80] sm:$0xff]  ;;  %v846_v50 = vld [vmem:[#allocation13 + $0x1f0] sm:$0xff] }
 0x1b0   :  { %2861 = vmatpush1.bf16.msra.mxu1 %v2860_v55  ;;  %v412_v55 = vld [vmem:[#allocation10 + $0x218] sm:$0xff] }
 0x1b1   :  { %2863 = vmatprep.subr.bf16.mxu1 %v2862_v56  ;;  %v407_v56 = vld [vmem:[#allocation10 + $0x1f0] sm:$0xff]  ;;  %v2888_v60 = vpack.c.bf16 %v412_v55, %v405_v53  ;;  %v796_v53 = vld [vmem:[#allocation13 + $0x60] sm:$0xff]  ;;  %v3156_v55 = vpack.c.bf16 %v795_v48, %v792_v47  ;;  %v830_v47 = vld [vmem:[#allocation13 + $0x170] sm:$0xff] }
 0x1b2   :  { %v2915_v61 = vpack.c.bf16 %v414_v57, %v407_v56  ;;  %v803_v57 = vld [vmem:[#allocation13 + $0x98] sm:$0xff] }
 0x1b4   :  { %2865 = vmatpush1.bf16.msra.mxu1 %v2864_v59  ;;  %v427_v59 = vld [vmem:[#allocation10 + $0x290] sm:$0xff] }
 0x1b5   :  { %2867 = vmatprep.subr.bf16.mxu1 %v2866_v5  ;;  %v2890_v63 = vpack.c.bf16 %v427_v59, %v420_v58  ;;  %v434_v5 = vld [vmem:[#allocation10 + $0x2c8] sm:$0xff]  ;;  %v798_v59 = vld [vmem:[#allocation13 + $0x70] sm:$0xff] }
 0x1b6   :  { %v2894_v10 = vpack.c.bf16 %v441_v6, %v434_v5  ;;  %v809_v6 = vld [vmem:[#allocation13 + $0xc8] sm:$0xff] }
 0x1b8   :  { %2869 = vmatpush1.bf16.msra.mxu1 %v2868_v9  ;;  %v433_v9 = vld [vmem:[#allocation10 + $0x2c0] sm:$0xff] }
 0x1b9   :  { %2902 = vmatprep.subr.bf16.mxu1 %v3850_v0  ;;  %v2896_v16 = vpack.c.bf16 %v440_v11, %v433_v9  ;;  %v807_v9 = vld [vmem:[#allocation13 + $0xb8] sm:$0xff]  ;;  %v858_v11 = vld [vmem:[#allocation13 + $0x250] sm:$0xff] }
 0x26e   :  { %v340_v18 = vpop.f32.mrb[0].mxu1 }
 0x26f   :  { %v341_v21 = vadd.f32 %v2497_v13, %v340_v18  ;;  %v2705_v22 = vpop.f32.mrb[1].mxu1  ;;  %v442_v13 = vld [vmem:[#allocation10 + $0x308] sm:$0xff]  ;;  %v447_v18 = vld [vmem:[#allocation10 + $0x330] sm:$0xff] }
 0x270   :  { %v2921_v17 = vpack.c.bf16 %v442_v13, %v435_v12  ;;  %v456_v22 = vld [vmem:[#allocation10 + $0x378] sm:$0xff]  ;;  %v2900_v28 = vpack.c.bf16 %v454_v19, %v447_v18  ;;  %v861_v12 = vld [vmem:[#allocation13 + $0x268] sm:$0xff]  ;;  %v815_v18 = vld [vmem:[#allocation13 + $0xf8] sm:$0xff] }
 0x271   :  { %v4058_v26 = vmax.f32 %v341_v21, 0.0  ;;  %v449_v21 = vld [vmem:[#allocation10 + $0x340] sm:$0xff]  ;;  %v3166_v19 = vpack.c.bf16 %v861_v12, %v858_v11  ;;  %v850_v12 = vld [vmem:[#allocation13 + $0x210] sm:$0xff] }
 0x272   :  { %v2924_v29 = vpack.c.bf16 %v456_v22, %v449_v21  ;;  %v813_v21 = vld [vmem:[#allocation13 + $0xe8] sm:$0xff]  ;;  %v818_v22 = vld [vmem:[#allocation13 + $0x110] sm:$0xff] }
 0x273   :  { %559 = vmatmul.mubr.f32.vlgmr.msra.gmra.mrb[2].mxu0 %v4058_v26  ;;  %630 = vmatmul.mubr.f32.vlgmr.msra.gmra.mrb[2].mxu1 %v4058_v26  ;;  %v2946_v30 = vpack.c.bf16 %v818_v22, %v815_v18  ;;  %v856_v18 = vld [vmem:[#allocation13 + $0x240] sm:$0xff] }
 0x274   :  { %2873 = vmatpush1.bf16.msra.mxu0 %v2872_v23  ;;  %2904 = vmatpush3.bf16.msra.mxu1 %v2903_v24  ;;  %v785_v23 = vld [vmem:[#allocation13 + $0x8] sm:$0xff]  ;;  %v788_v24 = vld [vmem:[#allocation13 + $0x20] sm:$0xff] }
 0x275   :  { %2875 = vmatprep.subr.bf16.mxu0 %v2874_v27  ;;  %2905 = vmatprep.subr.bf16.mxu1 %v3850_v0  ;;  %v837_v27 = vld [vmem:[#allocation13 + $0x1a8] sm:$0xff]  ;;  %v2926_v32 = vpack.c.bf16 %v788_v24, %v785_v23  ;;  %v864_v23 = vld [vmem:[#allocation13 + $0x280] sm:$0xff]  ;;  %v867_v24 = vld [vmem:[#allocation13 + $0x298] sm:$0xff] }
 0x276   :  { %700 = vmatprep.mubr.f32.mxu0 %v3852_v1  ;;  %2738 = vmatprep.mubr.msk.f32.mxu1 %vm3851_vm0, %v3852_v1 }
 0x278   :  { %2877 = vmatpush1.bf16.msra.mxu0 %v2876_v33  ;;  %2907 = vmatpush3.bf16.msra.mxu1 %v2906_v34  ;;  %v791_v33 = vld [vmem:[#allocation13 + $0x38] sm:$0xff]  ;;  %v3150_v34 = vpack.c.bf16 %v837_v27, %v834_v25  ;;  %v2944_v25 = vpack.c.bf16 %v811_v15, %v808_v14  ;;  %v814_v27 = vld [vmem:[#allocation13 + $0xf0] sm:$0xff]  ;;  %v857_v14 = vld [vmem:[#allocation13 + $0x248] sm:$0xff] }
 0x279   :  { %2879 = vmatprep.subr.bf16.mxu0 %v2878_v36  ;;  %2908 = vmatprep.subr.bf16.mxu1 %v3850_v0  ;;  %v789_v36 = vld [vmem:[#allocation13 + $0x28] sm:$0xff]  ;;  %v2930_v44 = vpack.c.bf16 %v794_v37, %v791_v33  ;;  %v816_v33 = vld [vmem:[#allocation13 + $0x100] sm:$0xff] }
 0x27a   :  { %v873_v37 = vld [vmem:[#allocation13 + $0x2c8] sm:$0xff]  ;;  %v860_v15 = vld [vmem:[#allocation13 + $0x260] sm:$0xff] }
 0x27c   :  { %2881 = vmatpush1.bf16.msra.mxu0 %v2880_v42  ;;  %2910 = vmatpush3.bf16.msra.mxu1 %v2909_v43  ;;  %v793_v42 = vld [vmem:[#allocation13 + $0x48] sm:$0xff]  ;;  %v3152_v43 = vpack.c.bf16 %v789_v36, %v786_v35  ;;  %v824_v35 = vld [vmem:[#allocation13 + $0x140] sm:$0xff]  ;;  %v870_v36 = vld [vmem:[#allocation13 + $0x2b0] sm:$0xff] }
 0x27d   :  { %2883 = vmatprep.subr.bf16.mxu0 %v2882_v45  ;;  %2911 = vmatprep.subr.bf16.mxu1 %v3850_v0  ;;  %v797_v45 = vld [vmem:[#allocation13 + $0x68] sm:$0xff] }
 0x27e   :  { %v2934_v56 = vpack.c.bf16 %v800_v49, %v797_v45  ;;  %v825_v45 = vld [vmem:[#allocation13 + $0x148] sm:$0xff] }
 0x280   :  { %2885 = vmatpush1.bf16.msra.mxu0 %v2884_v51  ;;  %2913 = vmatpush3.bf16.msra.mxu1 %v2912_v52  ;;  %v849_v51 = vld [vmem:[#allocation13 + $0x208] sm:$0xff]  ;;  %v2932_v52 = vpack.c.bf16 %v793_v42, %v790_v41  ;;  %v2950_v41 = vpack.c.bf16 %v824_v35, %v821_v31  ;;  %v823_v42 = vld [vmem:[#allocation13 + $0x138] sm:$0xff]  ;;  %v868_v31 = vld [vmem:[#allocation13 + $0x2a0] sm:$0xff] }
 0x281   :  { %2887 = vmatprep.subr.bf16.mxu0 %v2886_v54  ;;  %2914 = vmatprep.subr.bf16.mxu1 %v3850_v0  ;;  %v799_v54 = vld [vmem:[#allocation13 + $0x78] sm:$0xff]  ;;  %v3158_v58 = vpack.c.bf16 %v849_v51, %v846_v50  ;;  %v2952_v48 = vpack.c.bf16 %v823_v42, %v820_v39  ;;  %v826_v51 = vld [vmem:[#allocation13 + $0x150] sm:$0xff]  ;;  %v876_v35 = vld [vmem:[#allocation13 + $0x2e0] sm:$0xff] }
 0x282   :  { %v2936_v2 = vpack.c.bf16 %v799_v54, %v796_v53  ;;  %v833_v53 = vld [vmem:[#allocation13 + $0x188] sm:$0xff]  ;;  %v836_v54 = vld [vmem:[#allocation13 + $0x1a0] sm:$0xff]  ;;  %v874_v42 = vld [vmem:[#allocation13 + $0x2d0] sm:$0xff] }
 0x283   :  { %v828_v39 = vld [vmem:[#allocation13 + $0x160] sm:$0xff] }
 0x284   :  { %2889 = vmatpush1.bf16.msra.mxu0 %v2888_v60  ;;  %2916 = vmatpush3.bf16.msra.mxu1 %v2915_v61  ;;  %v801_v60 = vld [vmem:[#allocation13 + $0x88] sm:$0xff]  ;;  %v806_v61 = vld [vmem:[#allocation13 + $0xb0] sm:$0xff] }
 0x285   :  { %2891 = vmatprep.subr.bf16.mxu0 %v2890_v63  ;;  %2917 = vmatprep.subr.bf16.mxu1 %v3850_v0  ;;  %v855_v63 = vld [vmem:[#allocation13 + $0x238] sm:$0xff]  ;;  %v3160_v4 = vpack.c.bf16 %v801_v60, %v798_v59  ;;  %v2938_v5 = vpack.c.bf16 %v806_v61, %v803_v57  ;;  %v832_v57 = vld [vmem:[#allocation13 + $0x180] sm:$0xff]  ;;  %v842_v60 = vld [vmem:[#allocation13 + $0x1d0] sm:$0xff] }
 0x286   :  { %v839_v59 = vld [vmem:[#allocation13 + $0x1b8] sm:$0xff] }
 0x288   :  { %2893 = vmatpush1.bf16.msra.mxu0 %v2892_v7  ;;  %2919 = vmatpush3.bf16.msra.mxu1 %v2918_v8  ;;  %v3162_v7 = vpack.c.bf16 %v855_v63, %v852_v62  ;;  %v804_v8 = vld [vmem:[#allocation13 + $0xa0] sm:$0xff]  ;;  %v2962_v62 = vpack.c.bf16 %v842_v60, %v839_v59  ;;  %v838_v63 = vld [vmem:[#allocation13 + $0x1b0] sm:$0xff] }
 0x289   :  { %2895 = vmatprep.subr.bf16.mxu0 %v2894_v10  ;;  %2920 = vmatprep.subr.bf16.mxu1 %v3850_v0  ;;  %v812_v10 = vld [vmem:[#allocation13 + $0xe0] sm:$0xff] }
 0x28c   :  { %2897 = vmatpush1.bf16.msra.mxu0 %v2896_v16  ;;  %2922 = vmatpush3.bf16.msra.mxu1 %v2921_v17  ;;  %v3164_v16 = vpack.c.bf16 %v807_v9, %v804_v8  ;;  %v2942_v17 = vpack.c.bf16 %v812_v10, %v809_v6  ;;  %v844_v6 = vld [vmem:[#allocation13 + $0x1e0] sm:$0xff]  ;;  %v851_v8 = vld [vmem:[#allocation13 + $0x218] sm:$0xff]  ;;  %v854_v9 = vld [vmem:[#allocation13 + $0x230] sm:$0xff] }
 0x28d   :  { %2899 = vmatprep.subr.bf16.mxu0 %v2898_v20  ;;  %2923 = vmatprep.subr.bf16.mxu1 %v3850_v0  ;;  %v810_v20 = vld [vmem:[#allocation13 + $0xd0] sm:$0xff]  ;;  %v2970_v11 = vpack.c.bf16 %v854_v9, %v851_v8  ;;  %v887_v8 = vld [vmem:[#allocation13 + $0x338] sm:$0xff] }
 0x290   :  { %2901 = vmatpush1.bf16.msra.mxu0 %v2900_v28  ;;  %2925 = vmatpush3.bf16.msra.mxu1 %v2924_v29  ;;  %v817_v28 = vld [vmem:[#allocation13 + $0x108] sm:$0xff]  ;;  %v3168_v29 = vpack.c.bf16 %v813_v21, %v810_v20  ;;  %v863_v20 = vld [vmem:[#allocation13 + $0x278] sm:$0xff]  ;;  %v866_v21 = vld [vmem:[#allocation13 + $0x290] sm:$0xff] }
 0x291   :  { %2927 = vmatprep.subr.bf16.mxu0 %v2926_v32  ;;  %3151 = vmatprep.subr.bf16.mxu1 %v3150_v34  ;;  %v3170_v32 = vpack.c.bf16 %v867_v24, %v864_v23  ;;  %v819_v34 = vld [vmem:[#allocation13 + $0x118] sm:$0xff]  ;;  %v2948_v38 = vpack.c.bf16 %v817_v28, %v814_v27  ;;  %v2978_v23 = vpack.c.bf16 %v866_v21, %v863_v20  ;;  %v862_v24 = vld [vmem:[#allocation13 + $0x270] sm:$0xff]  ;;  %v869_v27 = vld [vmem:[#allocation13 + $0x2a8] sm:$0xff] }
 0x292   :  { %v872_v28 = vld [vmem:[#allocation13 + $0x2c0] sm:$0xff]  ;;  %v891_v20 = vld [vmem:[#allocation13 + $0x358] sm:$0xff]  ;;  %v893_v21 = vld [vmem:[#allocation13 + $0x368] sm:$0xff] }
 0x293   :  { %701 = vmatmul.mubr.f32.vlgmr.msra.gmra.mrb[4].mxu0 %v4058_v26  ;;  %2739 = vmatmul.mubr.f32.vlgmr.msra.gmra.mrb[4].mxu1 %v4058_v26  ;;  %v805_v26 = vld [vmem:[#allocation13 + $0xa8] sm:$0xff] }
 0x294   :  { %2929 = vmatpush1.bf16.msra.mxu0 %v2928_v40  ;;  %3153 = vmatpush3.bf16.msra.mxu1 %v3152_v43  ;;  %v2940_v13 = vpack.c.bf16 %v805_v26, %v802_v3  ;;  %v3172_v40 = vpack.c.bf16 %v819_v34, %v816_v33  ;;  %v3174_v43 = vpack.c.bf16 %v873_v37, %v870_v36  ;;  %v845_v3 = vld [vmem:[#allocation13 + $0x1e8] sm:$0xff]  ;;  %v848_v26 = vld [vmem:[#allocation13 + $0x200] sm:$0xff]  ;;  %v875_v33 = vld [vmem:[#allocation13 + $0x2d8] sm:$0xff] }
 0x295   :  { %2931 = vmatprep.subr.bf16.mxu0 %v2930_v44  ;;  %3155 = vmatprep.subr.bf16.mxu1 %v3154_v46  ;;  %v822_v44 = vld [vmem:[#allocation13 + $0x130] sm:$0xff]  ;;  %v827_v46 = vld [vmem:[#allocation13 + $0x158] sm:$0xff] }
 0x296   :  { %v3176_v49 = vpack.c.bf16 %v825_v45, %v822_v44  ;;  %v2954_v50 = vpack.c.bf16 %v830_v47, %v827_v46  ;;  %v878_v34 = vld [vmem:[#allocation13 + $0x2f0] sm:$0xff]  ;;  %v879_v36 = vld [vmem:[#allocation13 + $0x2f8] sm:$0xff]  ;;  %v881_v45 = vld [vmem:[#allocation13 + $0x308] sm:$0xff] }
 0x297   :  { %v884_v46 = vld [vmem:[#allocation13 + $0x320] sm:$0xff]  ;;  %v930_v47 = vld [vmem:[#allocation13 + $0x490] sm:$0xff] }
 0x298   :  { %2933 = vmatpush1.bf16.msra.mxu0 %v2932_v52  ;;  %3157 = vmatpush3.bf16.msra.mxu1 %v3156_v55  ;;  %v829_v52 = vld [vmem:[#allocation13 + $0x168] sm:$0xff] }
 0x299   :  { %2935 = vmatprep.subr.bf16.mxu0 %v2934_v56  ;;  %3159 = vmatprep.subr.bf16.mxu1 %v3158_v58  ;;  %v2956_v55 = vpack.c.bf16 %v829_v52, %v826_v51  ;;  %v2958_v56 = vpack.c.bf16 %v836_v54, %v833_v53  ;;  %v835_v58 = vld [vmem:[#allocation13 + $0x198] sm:$0xff]  ;;  %v2990_v51 = vpack.c.bf16 %v884_v46, %v881_v45  ;;  %v459_v52 = vlaneseq }
 0x29a   :  { %v2960_v61 = vpack.c.bf16 %v835_v58, %v832_v57 }
 0x29b   :  { %v4074_v53 = vshrl.u32 %v459_v52, 7  ;;  %v957_v52 = vld [vmem:[#allocation13 + $0x568] sm:$0xff] }
 0x29c   :  { %2937 = vmatpush1.bf16.msra.mxu0 %v2936_v2  ;;  %3161 = vmatpush3.bf16.msra.mxu1 %v3160_v4  ;;  %v841_v2 = vld [vmem:[#allocation13 + $0x1c8] sm:$0xff] }
 0x29d   :  { %2939 = vmatprep.subr.bf16.mxu0 %v2938_v5  ;;  %3163 = vmatprep.subr.bf16.mxu1 %v3162_v7  ;;  %v2964_v4 = vpack.c.bf16 %v841_v2, %v838_v63  ;;  %v2966_v5 = vpack.c.bf16 %v848_v26, %v845_v3  ;;  %v847_v7 = vld [vmem:[#allocation13 + $0x1f8] sm:$0xff]  ;;  %v4077_v54 = vsub.s32 0, %v4074_v53  ;;  %v473_v57 = vsub.s32 3, %v4074_v53  ;;  %v880_v63 = vld [vmem:[#allocation13 + $0x300] sm:$0xff] }
 0x29e   :  { %v2968_v10 = vpack.c.bf16 %v847_v7, %v844_v6  ;;  %v885_v6 = vld [vmem:[#allocation13 + $0x328] sm:$0xff] }
 0x2a0   :  { %2941 = vmatpush1.bf16.msra.mxu0 %v2940_v13  ;;  %3165 = vmatpush3.bf16.msra.mxu1 %v3164_v16  ;;  %v853_v13 = vld [vmem:[#allocation13 + $0x228] sm:$0xff] }
 0x2a1   :  { %2943 = vmatprep.subr.bf16.mxu0 %v2942_v17  ;;  %3167 = vmatprep.subr.bf16.mxu1 %v3166_v19  ;;  %v2972_v16 = vpack.c.bf16 %v853_v13, %v850_v12  ;;  %v2974_v17 = vpack.c.bf16 %v860_v15, %v857_v14  ;;  %v859_v19 = vld [vmem:[#allocation13 + $0x258] sm:$0xff] }
 0x2a2   :  { %v2976_v22 = vpack.c.bf16 %v859_v19, %v856_v18  ;;  %v939_v12 = vld [vmem:[#allocation13 + $0x4d8] sm:$0xff]  ;;  %v888_v19 = vld [vmem:[#allocation13 + $0x340] sm:$0xff] }
 0x2a4   :  { %2945 = vmatpush1.bf16.msra.mxu0 %v2944_v25  ;;  %3169 = vmatpush3.bf16.msra.mxu1 %v3168_v29  ;;  %v865_v25 = vld [vmem:[#allocation13 + $0x288] sm:$0xff] }
 0x2a5   :  { %2947 = vmatprep.subr.bf16.mxu0 %v2946_v30  ;;  %3171 = vmatprep.subr.bf16.mxu1 %v3170_v32  ;;  %v2980_v29 = vpack.c.bf16 %v865_v25, %v862_v24  ;;  %v2982_v30 = vpack.c.bf16 %v872_v28, %v869_v27  ;;  %v871_v32 = vld [vmem:[#allocation13 + $0x2b8] sm:$0xff]  ;;  %v896_v24 = vld [vmem:[#allocation13 + $0x380] sm:$0xff]  ;;  %v942_v25 = vld [vmem:[#allocation13 + $0x4f0] sm:$0xff] }
 0x2a6   :  { %v2984_v37 = vpack.c.bf16 %v871_v32, %v868_v31  ;;  %v945_v27 = vld [vmem:[#allocation13 + $0x508] sm:$0xff]  ;;  %v892_v31 = vld [vmem:[#allocation13 + $0x360] sm:$0xff]  ;;  %v895_v32 = vld [vmem:[#allocation13 + $0x378] sm:$0xff] }
 0x2a8   :  { %2949 = vmatpush1.bf16.msra.mxu0 %v2948_v38  ;;  %3173 = vmatpush3.bf16.msra.mxu1 %v3172_v40  ;;  %v3178_v38 = vpack.c.bf16 %v879_v36, %v876_v35  ;;  %v831_v40 = vld [vmem:[#allocation13 + $0x178] sm:$0xff]  ;;  %v894_v35 = vld [vmem:[#allocation13 + $0x370] sm:$0xff]  ;;  %v897_v36 = vld [vmem:[#allocation13 + $0x388] sm:$0xff] }
 0x2a9   :  { %2951 = vmatprep.subr.bf16.mxu0 %v2950_v41  ;;  %3175 = vmatprep.subr.bf16.mxu1 %v3174_v43  ;;  %v2986_v41 = vpack.c.bf16 %v878_v34, %v875_v33  ;;  %v877_v43 = vld [vmem:[#allocation13 + $0x2e8] sm:$0xff]  ;;  %v3180_v44 = vpack.c.bf16 %v831_v40, %v828_v39  ;;  %v2998_v33 = vpack.c.bf16 %v896_v24, %v893_v21  ;;  %v948_v39 = vld [vmem:[#allocation13 + $0x520] sm:$0xff]  ;;  %v951_v40 = vld [vmem:[#allocation13 + $0x538] sm:$0xff]  ;;  %v4095_v24 = vsub.s32 2, %v4074_v53 }
 0x2aa   :  { %v3190_v34 = vpack.c.bf16 %v945_v27, %v942_v25  ;;  %v3194_v46 = vpack.c.bf16 %v951_v40, %v948_v39 }
 0x2ac   :  { %2953 = vmatpush1.bf16.msra.mxu0 %v2952_v48  ;;  %3177 = vmatpush3.bf16.msra.mxu1 %v3176_v49  ;;  %v933_v48 = vld [vmem:[#allocation13 + $0x4a8] sm:$0xff]  ;;  %v2988_v49 = vpack.c.bf16 %v877_v43, %v874_v42  ;;  %v3192_v42 = vpack.c.bf16 %v897_v36, %v894_v35  ;;  %v898_v43 = vld [vmem:[#allocation13 + $0x390] sm:$0xff] }
 0x2ad   :  { %2955 = vmatprep.subr.bf16.mxu0 %v2954_v50  ;;  %3179 = vmatprep.subr.bf16.mxu1 %v3178_v38  ;;  %v3182_v50 = vpack.c.bf16 %v933_v48, %v930_v47  ;;  %v902_v38 = vld [vmem:[#allocation13 + $0x3b0] sm:$0xff]  ;;  %v900_v47 = vld [vmem:[#allocation13 + $0x3a0] sm:$0xff]  ;;  %v903_v48 = vld [vmem:[#allocation13 + $0x3b8] sm:$0xff] }
 0x2b0   :  { %2957 = vmatpush1.bf16.msra.mxu0 %v2956_v55  ;;  %3181 = vmatpush3.bf16.msra.mxu1 %v3180_v44  ;;  %v4079_v55 = vld [vmem:[#allocation12] sm:$0xff]  ;;  %v901_v44 = vld [vmem:[#allocation13 + $0x3a8] sm:$0xff] }
 0x2b1   :  { %2959 = vmatprep.subr.bf16.mxu0 %v2958_v56  ;;  %3183 = vmatprep.subr.bf16.mxu1 %v3182_v50  ;;  %v4082_v56 = vsub.s32 1, %v4074_v53  ;;  %v462_v58 = vrot.slane %v4079_v55, %v4077_v54  ;;  %v474_v60 = vrot.slane %v4079_v55, %v473_v57  ;;  %v908_v50 = vld [vmem:[#allocation13 + $0x3e0] sm:$0xff]  ;;  %v470_v39 = vrot.slane %v4079_v55, %v4095_v24 }
 0x2b3   :  { %v466_v59 = vrot.slane %v4079_v55, %v4082_v56 }
 0x2b4   :  { %2961 = vmatpush1.bf16.msra.mxu0 %v2960_v61 }
 0x2b5   :  { %2963 = vmatprep.subr.bf16.mxu0 %v2962_v62 }
 0x2b8   :  { %2965 = vmatpush1.bf16.msra.mxu0 %v2964_v4  ;;  %v883_v4 = vld [vmem:[#allocation13 + $0x318] sm:$0xff] }
 0x2b9   :  { %2967 = vmatprep.subr.bf16.mxu0 %v2966_v5  ;;  %v882_v5 = vld [vmem:[#allocation13 + $0x310] sm:$0xff]  ;;  %v2992_v14 = vpack.c.bf16 %v883_v4, %v880_v63  ;;  %v911_v4 = vld [vmem:[#allocation13 + $0x3f8] sm:$0xff] }
 0x2ba   :  { %v3184_v15 = vpack.c.bf16 %v885_v6, %v882_v5  ;;  %v914_v5 = vld [vmem:[#allocation13 + $0x410] sm:$0xff]  ;;  %v960_v6 = vld [vmem:[#allocation13 + $0x580] sm:$0xff] }
 0x2bc   :  { %2969 = vmatpush1.bf16.msra.mxu0 %v2968_v10  ;;  %v890_v10 = vld [vmem:[#allocation13 + $0x350] sm:$0xff] }
 0x2bd   :  { %2971 = vmatprep.subr.bf16.mxu0 %v2970_v11  ;;  %v936_v11 = vld [vmem:[#allocation13 + $0x4c0] sm:$0xff] }
 0x2c0   :  { %2973 = vmatpush1.bf16.msra.mxu0 %v2972_v16  ;;  %v886_v16 = vld [vmem:[#allocation13 + $0x330] sm:$0xff] }
 0x2c1   :  { %2975 = vmatprep.subr.bf16.mxu0 %v2974_v17  ;;  %v889_v17 = vld [vmem:[#allocation13 + $0x348] sm:$0xff] }
 0x2c4   :  { %2977 = vmatpush1.bf16.msra.mxu0 %v2976_v22  ;;  %v2994_v22 = vpack.c.bf16 %v890_v10, %v887_v8  ;;  %v910_v10 = vld [vmem:[#allocation13 + $0x3f0] sm:$0xff] }
 0x2c5   :  { %2979 = vmatprep.subr.bf16.mxu0 %v2978_v23  ;;  %v3186_v23 = vpack.c.bf16 %v939_v12, %v936_v11  ;;  %v913_v11 = vld [vmem:[#allocation13 + $0x408] sm:$0xff]  ;;  %v3010_v12 = vpack.c.bf16 %v914_v5, %v911_v4  ;;  %v935_v5 = vld [vmem:[#allocation13 + $0x4b8] sm:$0xff] }
 0x2c6   :  { %v981_v4 = vld [vmem:[#allocation13 + $0x628] sm:$0xff] }
 0x2c8   :  { %2981 = vmatpush1.bf16.msra.mxu0 %v2980_v29  ;;  %v2996_v29 = vpack.c.bf16 %v889_v17, %v886_v16  ;;  %v917_v16 = vld [vmem:[#allocation13 + $0x428] sm:$0xff]  ;;  %v920_v17 = vld [vmem:[#allocation13 + $0x440] sm:$0xff] }
 0x2c9   :  { %2983 = vmatprep.subr.bf16.mxu0 %v2982_v30  ;;  %v3188_v30 = vpack.c.bf16 %v891_v20, %v888_v19  ;;  %v969_v19 = vld [vmem:[#allocation13 + $0x5c8] sm:$0xff]  ;;  %v3012_v20 = vpack.c.bf16 %v913_v11, %v910_v10  ;;  %v3014_v25 = vpack.c.bf16 %v920_v17, %v917_v16  ;;  %v934_v11 = vld [vmem:[#allocation13 + $0x4b0] sm:$0xff]  ;;  %v987_v16 = vld [vmem:[#allocation13 + $0x658] sm:$0xff] }
 0x2ca   :  { %v941_v17 = vld [vmem:[#allocation13 + $0x4e8] sm:$0xff] }
 0x2cc   :  { %2985 = vmatpush1.bf16.msra.mxu0 %v2984_v37  ;;  %v899_v37 = vld [vmem:[#allocation13 + $0x398] sm:$0xff] }
 0x2cd   :  { %2987 = vmatprep.subr.bf16.mxu0 %v2986_v41  ;;  %v3000_v41 = vpack.c.bf16 %v895_v32, %v892_v31  ;;  %v3002_v45 = vpack.c.bf16 %v902_v38, %v899_v37  ;;  %v926_v31 = vld [vmem:[#allocation13 + $0x470] sm:$0xff]  ;;  %v972_v32 = vld [vmem:[#allocation13 + $0x5e0] sm:$0xff]  ;;  %v925_v38 = vld [vmem:[#allocation13 + $0x468] sm:$0xff] }
 0x2ce   :  { %v922_v37 = vld [vmem:[#allocation13 + $0x450] sm:$0xff] }
 0x2d0   :  { %2989 = vmatpush1.bf16.msra.mxu0 %v2988_v49  ;;  %v905_v49 = vld [vmem:[#allocation13 + $0x3c8] sm:$0xff] }
 0x2d1   :  { %2991 = vmatprep.subr.bf16.mxu0 %v2990_v51  ;;  %v954_v51 = vld [vmem:[#allocation13 + $0x550] sm:$0xff]  ;;  %v3006_v63 = vpack.c.bf16 %v908_v50, %v905_v49 }
 0x346   :  { %v560_v61 = vpop.f32.mrb[2].mxu0  ;;  %v4092_v62 = vpop.f32.mrb[2].mxu1 }
 0x347   :  { %v561_v2 = vadd.f32 %v560_v61, %v462_v58  ;;  %v562_v3 = vpop.f32.mrb[3].mxu0  ;;  %v633_v26 = vpop.f32.mrb[3].mxu1  ;;  %v3004_v58 = vpack.c.bf16 %v901_v44, %v898_v43  ;;  %v907_v61 = vld [vmem:[#allocation13 + $0x3d8] sm:$0xff]  ;;  %v929_v44 = vld [vmem:[#allocation13 + $0x488] sm:$0xff] }
 0x348   :  { %v563_v7 = vadd.f32 %v562_v3, %v466_v59  ;;  %v634_v9 = vadd.f32 %v633_v26, %v474_v60  ;;  %v3196_v59 = vpack.c.bf16 %v903_v48, %v900_v47  ;;  %v904_v60 = vld [vmem:[#allocation13 + $0x3c0] sm:$0xff]  ;;  %v906_v3 = vld [vmem:[#allocation13 + $0x3d0] sm:$0xff]  ;;  %v909_v26 = vld [vmem:[#allocation13 + $0x3e8] sm:$0xff] }
 0x349   :  { %v777_v18 = vmax.f32 %v561_v2, 0.0  ;;  %v3198_v2 = vpack.c.bf16 %v957_v52, %v954_v51  ;;  %v3008_v8 = vpack.c.bf16 %v907_v61, %v904_v60  ;;  %v927_v43 = vld [vmem:[#allocation13 + $0x478] sm:$0xff]  ;;  %v1029_v47 = vld [vmem:[#allocation13 + $0x7a8] sm:$0xff]  ;;  %v3020_v51 = vpack.c.bf16 %v925_v38, %v922_v37 }
 0x34a   :  { %v778_v13 = vmax.f32 %v563_v7, 0.0  ;;  %v780_v28 = vmax.f32 %v634_v9, 0.0  ;;  %v963_v7 = vld [vmem:[#allocation13 + $0x598] sm:$0xff]  ;;  %v3200_v9 = vpack.c.bf16 %v909_v26, %v906_v3  ;;  %v978_v26 = vld [vmem:[#allocation13 + $0x610] sm:$0xff] }
 0x34b   :  { %v931_v3 = vld [vmem:[#allocation13 + $0x498] sm:$0xff] }
 0x34c   :  { %1201 = vmatprep.mubr.f32.mxu0 %v778_v13  ;;  %1485 = vmatprep.mubr.f32.mxu1 %v778_v13  ;;  %v3202_v13 = vpack.c.bf16 %v963_v7, %v960_v6  ;;  %v938_v6 = vld [vmem:[#allocation13 + $0x4d0] sm:$0xff]  ;;  %v1047_v37 = vld [vmem:[#allocation13 + $0x838] sm:$0xff] }
 0x34d   :  { %1202 = vmatmul.mubr.f32.vlgmr.msra.gmra.mrb[6].mxu0 %v777_v18  ;;  %1486 = vmatmul.mubr.f32.vlgmr.msra.gmra.mrb[6].mxu1 %v777_v18  ;;  %v966_v18 = vld [vmem:[#allocation13 + $0x5b0] sm:$0xff] }
 0x34e   :  { %2993 = vmatpush1.bf16.msra.mxu0 %v2992_v14  ;;  %3185 = vmatpush3.bf16.msra.mxu1 %v3184_v15  ;;  %v912_v14 = vld [vmem:[#allocation13 + $0x400] sm:$0xff]  ;;  %v915_v15 = vld [vmem:[#allocation13 + $0x418] sm:$0xff]  ;;  %v3206_v27 = vpack.c.bf16 %v969_v19, %v966_v18 }
 0x34f   :  { %1272 = vmatprep.mubr.f32.mxu0 %v780_v28  ;;  %1555 = vmatprep.mubr.f32.mxu1 %v780_v28  ;;  %v3204_v21 = vpack.c.bf16 %v915_v15, %v912_v14  ;;  %v918_v28 = vld [vmem:[#allocation13 + $0x430] sm:$0xff]  ;;  %v3026_v14 = vpack.c.bf16 %v938_v6, %v935_v5  ;;  %v984_v15 = vld [vmem:[#allocation13 + $0x640] sm:$0xff] }
 0x350   :  { %2995 = vmatprep.subr.bf16.mxu0 %v2994_v22  ;;  %3187 = vmatprep.subr.bf16.mxu1 %v3186_v23  ;;  %v916_v22 = vld [vmem:[#allocation13 + $0x420] sm:$0xff]  ;;  %v919_v23 = vld [vmem:[#allocation13 + $0x438] sm:$0xff]  ;;  %v962_v5 = vld [vmem:[#allocation13 + $0x590] sm:$0xff] }
 0x351   :  { %v3016_v35 = vpack.c.bf16 %v919_v23, %v916_v22  ;;  %v944_v19 = vld [vmem:[#allocation13 + $0x500] sm:$0xff] }
 0x352   :  { %2997 = vmatpush1.bf16.msra.mxu0 %v2996_v29  ;;  %3189 = vmatpush3.bf16.msra.mxu1 %v3188_v30  ;;  %v921_v29 = vld [vmem:[#allocation13 + $0x448] sm:$0xff]  ;;  %v923_v30 = vld [vmem:[#allocation13 + $0x458] sm:$0xff]  ;;  %v1056_v6 = vld [vmem:[#allocation13 + $0x880] sm:$0xff] }
 0x353   :  { %2999 = vmatprep.subr.bf16.mxu0 %v2998_v33  ;;  %3191 = vmatprep.subr.bf16.mxu1 %v3190_v34  ;;  %v975_v33 = vld [vmem:[#allocation13 + $0x5f8] sm:$0xff]  ;;  %v481_v34 = vsub.s32 5, %v4074_v53  ;;  %v3208_v36 = vpack.c.bf16 %v921_v29, %v918_v28  ;;  %v3018_v40 = vpack.c.bf16 %v926_v31, %v923_v30  ;;  %v3030_v29 = vpack.c.bf16 %v944_v19, %v941_v17  ;;  %v990_v31 = vld [vmem:[#allocation13 + $0x670] sm:$0xff]  ;;  %v965_v17 = vld [vmem:[#allocation13 + $0x5a8] sm:$0xff] }
 0x354   :  { %v943_v28 = vld [vmem:[#allocation13 + $0x4f8] sm:$0xff]  ;;  %v1062_v19 = vld [vmem:[#allocation13 + $0x8b0] sm:$0xff] }
 0x355   :  { %v482_v48 = vrot.slane %v4079_v55, %v481_v34 }
 0x356   :  { %3001 = vmatpush1.bf16.msra.mxu0 %v3000_v41  ;;  %3193 = vmatpush3.bf16.msra.mxu1 %v3192_v42  ;;  %v3210_v41 = vpack.c.bf16 %v975_v33, %v972_v32  ;;  %v924_v42 = vld [vmem:[#allocation13 + $0x460] sm:$0xff]  ;;  %v993_v32 = vld [vmem:[#allocation13 + $0x688] sm:$0xff]  ;;  %v947_v33 = vld [vmem:[#allocation13 + $0x518] sm:$0xff] }
 0x357   :  { %3003 = vmatprep.subr.bf16.mxu0 %v3002_v45  ;;  %3195 = vmatprep.subr.bf16.mxu1 %v3194_v46  ;;  %v932_v45 = vld [vmem:[#allocation13 + $0x4a0] sm:$0xff]  ;;  %v1026_v46 = vld [vmem:[#allocation13 + $0x790] sm:$0xff]  ;;  %v3212_v52 = vpack.c.bf16 %v927_v43, %v924_v42 }
 0x35a   :  { %3005 = vmatpush1.bf16.msra.mxu0 %v3004_v58  ;;  %3197 = vmatpush3.bf16.msra.mxu1 %v3196_v59  ;;  %v928_v58 = vld [vmem:[#allocation13 + $0x480] sm:$0xff]  ;;  %v4108_v59 = vadd.f32 %v4092_v62, %v470_v39  ;;  %v3216_v62 = vpack.c.bf16 %v981_v4, %v978_v26  ;;  %v3224_v39 = vpack.c.bf16 %v993_v32, %v990_v31  ;;  %v1005_v26 = vld [vmem:[#allocation13 + $0x6e8] sm:$0xff]  ;;  %v959_v4 = vld [vmem:[#allocation13 + $0x578] sm:$0xff] }
 0x35b   :  { %3007 = vmatprep.subr.bf16.mxu0 %v3006_v63  ;;  %3199 = vmatprep.subr.bf16.mxu1 %v3198_v2  ;;  %v3022_v63 = vpack.c.bf16 %v932_v45, %v929_v44  ;;  %v3214_v2 = vpack.c.bf16 %v1029_v47, %v1026_v46  ;;  %v3024_v10 = vpack.c.bf16 %v931_v3, %v928_v58  ;;  %v996_v44 = vld [vmem:[#allocation13 + $0x6a0] sm:$0xff]  ;;  %v999_v45 = vld [vmem:[#allocation13 + $0x6b8] sm:$0xff]  ;;  %v953_v46 = vld [vmem:[#allocation13 + $0x548] sm:$0xff] }
 0x35c   :  { %v956_v47 = vld [vmem:[#allocation13 + $0x560] sm:$0xff]  ;;  %v3228_v58 = vpack.c.bf16 %v999_v45, %v996_v44  ;;  %v1002_v3 = vld [vmem:[#allocation13 + $0x6d0] sm:$0xff]  ;;  %v1017_v32 = vld [vmem:[#allocation13 + $0x748] sm:$0xff] }
 0x35d   :  { %v1014_v31 = vld [vmem:[#allocation13 + $0x730] sm:$0xff]  ;;  %v973_v44 = vld [vmem:[#allocation13 + $0x5e8] sm:$0xff]  ;;  %v1020_v45 = vld [vmem:[#allocation13 + $0x760] sm:$0xff] }
 0x35e   :  { %3009 = vmatpush1.bf16.msra.mxu0 %v3008_v8  ;;  %3201 = vmatpush3.bf16.msra.mxu1 %v3200_v9  ;;  %v1032_v8 = vld [vmem:[#allocation13 + $0x7c0] sm:$0xff]  ;;  %v1035_v9 = vld [vmem:[#allocation13 + $0x7d8] sm:$0xff] }
 0x35f   :  { %3011 = vmatprep.subr.bf16.mxu0 %v3010_v12  ;;  %3203 = vmatprep.subr.bf16.mxu1 %v3202_v13  ;;  %v937_v12 = vld [vmem:[#allocation13 + $0x4c8] sm:$0xff]  ;;  %v779_v13 = vmax.f32 %v4108_v59, 0.0  ;;  %v3218_v18 = vpack.c.bf16 %v1035_v9, %v1032_v8  ;;  %v1059_v8 = vld [vmem:[#allocation13 + $0x898] sm:$0xff] }
 0x360   :  { %v3028_v23 = vpack.c.bf16 %v937_v12, %v934_v11  ;;  %v961_v11 = vld [vmem:[#allocation13 + $0x588] sm:$0xff]  ;;  %v3042_v12 = vpack.c.bf16 %v962_v5, %v959_v4  ;;  %v986_v4 = vld [vmem:[#allocation13 + $0x650] sm:$0xff]  ;;  %v995_v59 = vld [vmem:[#allocation13 + $0x698] sm:$0xff] }
 0x362   :  { %3013 = vmatpush1.bf16.msra.mxu0 %v3012_v20  ;;  %3205 = vmatpush3.bf16.msra.mxu1 %v3204_v21  ;;  %v1038_v20 = vld [vmem:[#allocation13 + $0x7f0] sm:$0xff]  ;;  %v1041_v21 = vld [vmem:[#allocation13 + $0x808] sm:$0xff] }
 0x363   :  { %3015 = vmatprep.subr.bf16.mxu0 %v3014_v25  ;;  %3207 = vmatprep.subr.bf16.mxu1 %v3206_v27  ;;  %v3220_v25 = vpack.c.bf16 %v987_v16, %v984_v15  ;;  %v940_v27 = vld [vmem:[#allocation13 + $0x4e0] sm:$0xff]  ;;  %v3222_v30 = vpack.c.bf16 %v1041_v21, %v1038_v20  ;;  %v1011_v16 = vld [vmem:[#allocation13 + $0x718] sm:$0xff]  ;;  %v1065_v20 = vld [vmem:[#allocation13 + $0x8c8] sm:$0xff] }
 0x364   :  { %v3032_v38 = vpack.c.bf16 %v943_v28, %v940_v27  ;;  %v1008_v15 = vld [vmem:[#allocation13 + $0x700] sm:$0xff]  ;;  %v967_v27 = vld [vmem:[#allocation13 + $0x5b8] sm:$0xff]  ;;  %v477_v28 = vsub.s32 4, %v4074_v53 }
 0x366   :  { %v4103_v49 = vpop.f32.mrb[4].mxu0  ;;  %v4105_v50 = vpop.f32.mrb[4].mxu1  ;;  %3017 = vmatpush1.bf16.msra.mxu0 %v3016_v35  ;;  %3209 = vmatpush3.bf16.msra.mxu1 %v3208_v36  ;;  %v950_v35 = vld [vmem:[#allocation13 + $0x530] sm:$0xff]  ;;  %v1044_v36 = vld [vmem:[#allocation13 + $0x820] sm:$0xff] }
 0x367   :  { %v704_v60 = vpop.f32.mrb[5].mxu0  ;;  %v2740_v61 = vpop.f32.mrb[5].mxu1  ;;  %3019 = vmatprep.subr.bf16.mxu0 %v3018_v40  ;;  %3211 = vmatprep.subr.bf16.mxu1 %v3210_v41  ;;  %v946_v40 = vld [vmem:[#allocation13 + $0x510] sm:$0xff]  ;;  %v949_v41 = vld [vmem:[#allocation13 + $0x528] sm:$0xff]  ;;  %v3034_v42 = vpack.c.bf16 %v950_v35, %v947_v33  ;;  %v3226_v43 = vpack.c.bf16 %v1047_v37, %v1044_v36  ;;  %v971_v33 = vld [vmem:[#allocation13 + $0x5d8] sm:$0xff] }
 0x368   :  { %v4110_v7 = vadd.f32 %v704_v60, %v482_v48  ;;  %v1050_v48 = vld [vmem:[#allocation13 + $0x850] sm:$0xff]  ;;  %v952_v60 = vld [vmem:[#allocation13 + $0x540] sm:$0xff]  ;;  %v955_v61 = vld [vmem:[#allocation13 + $0x558] sm:$0xff] }
 0x369   :  { %v3040_v9 = vpack.c.bf16 %v955_v61, %v952_v60  ;;  %v974_v35 = vld [vmem:[#allocation13 + $0x5f0] sm:$0xff]  ;;  %v1068_v36 = vld [vmem:[#allocation13 + $0x8e0] sm:$0xff]  ;;  %v1071_v37 = vld [vmem:[#allocation13 + $0x8f8] sm:$0xff] }
 0x36a   :  { %3021 = vmatpush1.bf16.msra.mxu0 %v3020_v51  ;;  %3213 = vmatpush3.bf16.msra.mxu1 %v3212_v52  ;;  %v782_v22 = vmax.f32 %v4110_v7, 0.0  ;;  %v1053_v51 = vld [vmem:[#allocation13 + $0x868] sm:$0xff]  ;;  %v3036_v52 = vpack.c.bf16 %v949_v41, %v946_v40  ;;  %v970_v40 = vld [vmem:[#allocation13 + $0x5d0] sm:$0xff]  ;;  %v478_v41 = vrot.slane %v4079_v55, %v477_v28  ;;  %v976_v61 = vld [vmem:[#allocation13 + $0x600] sm:$0xff] }
 0x36b   :  { %3023 = vmatprep.subr.bf16.mxu0 %v3022_v63  ;;  %3215 = vmatprep.subr.bf16.mxu1 %v3214_v2  ;;  %v3038_v63 = vpack.c.bf16 %v956_v47, %v953_v46  ;;  %v3230_v2 = vpack.c.bf16 %v1053_v51, %v1050_v48  ;;  %v1023_v46 = vld [vmem:[#allocation13 + $0x778] sm:$0xff]  ;;  %v977_v47 = vld [vmem:[#allocation13 + $0x608] sm:$0xff]  ;;  %v980_v48 = vld [vmem:[#allocation13 + $0x620] sm:$0xff]  ;;  %v3052_v51 = vpack.c.bf16 %v973_v44, %v970_v40 }
 0x36c   :  { %v3054_v60 = vpack.c.bf16 %v980_v48, %v977_v47  ;;  %v1101_v40 = vld [vmem:[#allocation13 + $0x9e8] sm:$0xff]  ;;  %v1104_v48 = vld [vmem:[#allocation13 + $0xa00] sm:$0xff] }
 0x36d   :  { %1556 = vmatmul.mubr.f32.vlgmr.msra.gmra.mrb[8].mxu1 %v779_v13  ;;  %v1009_v47 = vld [vmem:[#allocation13 + $0x708] sm:$0xff] }
 0x36e   :  { %3025 = vmatpush1.bf16.msra.mxu0 %v3024_v10  ;;  %3217 = vmatpush3.bf16.msra.mxu1 %v3216_v62  ;;  %v3232_v10 = vpack.c.bf16 %v1005_v26, %v1002_v3  ;;  %v958_v62 = vld [vmem:[#allocation13 + $0x570] sm:$0xff]  ;;  %v1077_v3 = vld [vmem:[#allocation13 + $0x928] sm:$0xff]  ;;  %v983_v26 = vld [vmem:[#allocation13 + $0x638] sm:$0xff] }
 0x36f   :  { %1625 = vmatprep.mubr.f32.mxu1 %v782_v22  ;;  %3027 = vmatprep.subr.bf16.mxu0 %v3026_v14  ;;  %v3234_v14 = vpack.c.bf16 %v1059_v8, %v1056_v6  ;;  %v3044_v21 = vpack.c.bf16 %v961_v11, %v958_v62  ;;  %v1080_v62 = vld [vmem:[#allocation13 + $0x940] sm:$0xff]  ;;  %v1083_v11 = vld [vmem:[#allocation13 + $0x958] sm:$0xff] }
 0x370   :  { %3219 = vmatprep.subr.bf16.mxu1 %v3218_v18  ;;  %v968_v18 = vld [vmem:[#allocation13 + $0x5c0] sm:$0xff] }
 0x372   :  { %3029 = vmatpush1.bf16.msra.mxu0 %v3028_v23  ;;  %3221 = vmatpush3.bf16.msra.mxu1 %v3220_v25  ;;  %v3236_v23 = vpack.c.bf16 %v1011_v16, %v1008_v15  ;;  %v964_v25 = vld [vmem:[#allocation13 + $0x5a0] sm:$0xff]  ;;  %v3250_v16 = vpack.c.bf16 %v1083_v11, %v1080_v62 }
 0x373   :  { %3031 = vmatprep.subr.bf16.mxu0 %v3030_v29  ;;  %3223 = vmatprep.subr.bf16.mxu1 %v3222_v30  ;;  %v3046_v29 = vpack.c.bf16 %v968_v18, %v965_v17  ;;  %v3238_v30 = vpack.c.bf16 %v1065_v20, %v1062_v19  ;;  %v988_v18 = vld [vmem:[#allocation13 + $0x660] sm:$0xff]  ;;  %v991_v19 = vld [vmem:[#allocation13 + $0x678] sm:$0xff]  ;;  %v1086_v20 = vld [vmem:[#allocation13 + $0x970] sm:$0xff] }
 0x376   :  { %3033 = vmatpush1.bf16.msra.mxu0 %v3032_v38  ;;  %3225 = vmatpush3.bf16.msra.mxu1 %v3224_v39  ;;  %v3048_v38 = vpack.c.bf16 %v967_v27, %v964_v25  ;;  %v3240_v39 = vpack.c.bf16 %v1017_v32, %v1014_v31  ;;  %v994_v25 = vld [vmem:[#allocation13 + $0x690] sm:$0xff]  ;;  %v997_v27 = vld [vmem:[#allocation13 + $0x6a8] sm:$0xff]  ;;  %v1004_v32 = vld [vmem:[#allocation13 + $0x6e0] sm:$0xff] }
 0x377   :  { %3035 = vmatprep.subr.bf16.mxu0 %v3034_v42  ;;  %3227 = vmatprep.subr.bf16.mxu1 %v3226_v43  ;;  %v3050_v42 = vpack.c.bf16 %v974_v35, %v971_v33  ;;  %v3242_v43 = vpack.c.bf16 %v1071_v37, %v1068_v36  ;;  %v1001_v31 = vld [vmem:[#allocation13 + $0x6c8] sm:$0xff]  ;;  %v3068_v33 = vpack.c.bf16 %v997_v27, %v994_v25  ;;  %v1000_v37 = vld [vmem:[#allocation13 + $0x6c0] sm:$0xff] }
 0x378   :  { %v3070_v36 = vpack.c.bf16 %v1004_v32, %v1001_v31  ;;  %v1037_v32 = vld [vmem:[#allocation13 + $0x7e8] sm:$0xff] }
 0x37a   :  { %3037 = vmatpush1.bf16.msra.mxu0 %v3036_v52  ;;  %3229 = vmatpush3.bf16.msra.mxu1 %v3228_v58  ;;  %v3244_v52 = vpack.c.bf16 %v1023_v46, %v1020_v45  ;;  %v4123_v58 = vadd.f32 %v4103_v49, %v478_v41  ;;  %v3058_v49 = vpack.c.bf16 %v986_v4, %v983_v26  ;;  %v1007_v41 = vld [vmem:[#allocation13 + $0x6f8] sm:$0xff]  ;;  %v1006_v46 = vld [vmem:[#allocation13 + $0x6f0] sm:$0xff] }
 0x37b   :  { %3039 = vmatprep.subr.bf16.mxu0 %v3038_v63  ;;  %3231 = vmatprep.subr.bf16.mxu1 %v3230_v2  ;;  %v979_v63 = vld [vmem:[#allocation13 + $0x618] sm:$0xff]  ;;  %v1074_v2 = vld [vmem:[#allocation13 + $0x910] sm:$0xff] }
 0x37c   :  { %v3056_v5 = vpack.c.bf16 %v979_v63, %v976_v61  ;;  %v781_v6 = vmax.f32 %v4123_v58, 0.0  ;;  %v3247_v8 = vpack.c.bf16 %v1077_v3, %v1074_v2  ;;  %v3076_v61 = vpack.c.bf16 %v1009_v47, %v1006_v46  ;;  %v1012_v3 = vld [vmem:[#allocation13 + $0x720] sm:$0xff]  ;;  %v1015_v26 = vld [vmem:[#allocation13 + $0x738] sm:$0xff]  ;;  %v1110_v4 = vld [vmem:[#allocation13 + $0xa30] sm:$0xff] }
 0x37d   :  { %v1048_v47 = vld [vmem:[#allocation13 + $0x840] sm:$0xff] }
 0x37e   :  { %3041 = vmatpush1.bf16.msra.mxu0 %v3040_v9  ;;  %3233 = vmatpush3.bf16.msra.mxu1 %v3232_v10  ;;  %v982_v9 = vld [vmem:[#allocation13 + $0x630] sm:$0xff]  ;;  %v985_v10 = vld [vmem:[#allocation13 + $0x648] sm:$0xff] }
 0x37f   :  { %3043 = vmatprep.subr.bf16.mxu0 %v3042_v12  ;;  %3235 = vmatprep.subr.bf16.mxu1 %v3234_v14  ;;  %v989_v12 = vld [vmem:[#allocation13 + $0x668] sm:$0xff]  ;;  %v992_v14 = vld [vmem:[#allocation13 + $0x680] sm:$0xff]  ;;  %v3060_v15 = vpack.c.bf16 %v985_v10, %v982_v9  ;;  %v1022_v9 = vld [vmem:[#allocation13 + $0x770] sm:$0xff]  ;;  %v3080_v10 = vpack.c.bf16 %v1015_v26, %v1012_v3 }
 0x380   :  { %v3062_v17 = vpack.c.bf16 %v992_v14, %v989_v12  ;;  %v1018_v12 = vld [vmem:[#allocation13 + $0x750] sm:$0xff]  ;;  %v1021_v14 = vld [vmem:[#allocation13 + $0x768] sm:$0xff]  ;;  %v1064_v26 = vld [vmem:[#allocation13 + $0x8c0] sm:$0xff] }
 0x381   :  { %v1061_v3 = vld [vmem:[#allocation13 + $0x8a8] sm:$0xff] }
 0x382   :  { %3045 = vmatpush1.bf16.msra.mxu0 %v3044_v21  ;;  %3237 = vmatpush3.bf16.msra.mxu1 %v3236_v23  ;;  %v1089_v21 = vld [vmem:[#allocation13 + $0x988] sm:$0xff]  ;;  %v3064_v23 = vpack.c.bf16 %v991_v19, %v988_v18  ;;  %v1028_v19 = vld [vmem:[#allocation13 + $0x7a0] sm:$0xff] }
 0x383   :  { %3047 = vmatprep.subr.bf16.mxu0 %v3046_v29  ;;  %3239 = vmatprep.subr.bf16.mxu1 %v3238_v30  ;;  %v3253_v7 = vpack.c.bf16 %v1089_v21, %v1086_v20  ;;  %v1092_v29 = vld [vmem:[#allocation13 + $0x9a0] sm:$0xff]  ;;  %v1095_v30 = vld [vmem:[#allocation13 + $0x9b8] sm:$0xff]  ;;  %v1025_v18 = vld [vmem:[#allocation13 + $0x788] sm:$0xff]  ;;  %v3084_v20 = vpack.c.bf16 %v1021_v14, %v1018_v12 }
 0x384   :  { %v3256_v35 = vpack.c.bf16 %v1095_v30, %v1092_v29  ;;  %v1030_v29 = vld [vmem:[#allocation13 + $0x7b0] sm:$0xff]  ;;  %v1033_v30 = vld [vmem:[#allocation13 + $0x7c8] sm:$0xff] }
 0x385   :  { %v1066_v12 = vld [vmem:[#allocation13 + $0x8d0] sm:$0xff]  ;;  %v1069_v14 = vld [vmem:[#allocation13 + $0x8e8] sm:$0xff] }
 0x386   :  { %3049 = vmatpush1.bf16.msra.mxu0 %v3048_v38  ;;  %3241 = vmatpush3.bf16.msra.mxu1 %v3240_v39  ;;  %v1003_v38 = vld [vmem:[#allocation13 + $0x6d8] sm:$0xff]  ;;  %v1098_v39 = vld [vmem:[#allocation13 + $0x9d0] sm:$0xff] }
 0x387   :  { %3051 = vmatprep.subr.bf16.mxu0 %v3050_v42  ;;  %3243 = vmatprep.subr.bf16.mxu1 %v3242_v43  ;;  %v1010_v42 = vld [vmem:[#allocation13 + $0x710] sm:$0xff]  ;;  %v3072_v43 = vpack.c.bf16 %v1003_v38, %v1000_v37  ;;  %v3259_v44 = vpack.c.bf16 %v1101_v40, %v1098_v39  ;;  %v1043_v37 = vld [vmem:[#allocation13 + $0x818] sm:$0xff] }
 0x388   :  { %v3074_v45 = vpack.c.bf16 %v1010_v42, %v1007_v41  ;;  %v1046_v38 = vld [vmem:[#allocation13 + $0x830] sm:$0xff]  ;;  %v1045_v42 = vld [vmem:[#allocation13 + $0x828] sm:$0xff] }
 0x389   :  { %v3098_v40 = vpack.c.bf16 %v1046_v38, %v1043_v37  ;;  %v1042_v41 = vld [vmem:[#allocation13 + $0x810] sm:$0xff]  ;;  %v1093_v38 = vld [vmem:[#allocation13 + $0x9a8] sm:$0xff] }
 0x38a   :  { %3053 = vmatpush1.bf16.msra.mxu0 %v3052_v51  ;;  %3245 = vmatpush3.bf16.msra.mxu1 %v3244_v52  ;;  %v1107_v51 = vld [vmem:[#allocation13 + $0xa18] sm:$0xff]  ;;  %v1013_v52 = vld [vmem:[#allocation13 + $0x728] sm:$0xff]  ;;  %v1090_v37 = vld [vmem:[#allocation13 + $0x990] sm:$0xff] }
 0x38b   :  { %3055 = vmatprep.subr.bf16.mxu0 %v3054_v60  ;;  %3246 = vmatprep.subr.bf16.mxu1 %v3850_v0  ;;  %v1016_v60 = vld [vmem:[#allocation13 + $0x740] sm:$0xff]  ;;  %v3262_v63 = vpack.c.bf16 %v1107_v51, %v1104_v48  ;;  %v1051_v48 = vld [vmem:[#allocation13 + $0x858] sm:$0xff]  ;;  %v3132_v58 = vpack.c.bf16 %v1093_v38, %v1090_v37 }
 0x38c   :  { %v3078_v2 = vpack.c.bf16 %v1016_v60, %v1013_v52  ;;  %v1055_v51 = vld [vmem:[#allocation13 + $0x878] sm:$0xff]  ;;  %v1058_v52 = vld [vmem:[#allocation13 + $0x890] sm:$0xff]  ;;  %v3104_v60 = vpack.c.bf16 %v1051_v48, %v1048_v47  ;;  %v1105_v48 = vld [vmem:[#allocation13 + $0xa08] sm:$0xff] }
 0x38d   :  { %1273 = vmatmul.mubr.f32.vlgmr.msra.gmra.mrb[6].mxu0 %v779_v13  ;;  %1626 = vmatmul.mubr.f32.vlgmr.msra.gmra.mrb[10].mxu1 %v781_v6  ;;  %v998_v13 = vld [vmem:[#allocation13 + $0x6b0] sm:$0xff]  ;;  %v1728_v37 = vld [vmem:[#allocation16 + $0xc0] sm:$0xff] }
 0x38e   :  { %3057 = vmatpush1.bf16.msra.mxu0 %v3056_v5  ;;  %1343 = vmatprep.mubr.f32.mxu0 %v782_v22  ;;  %v3066_v22 = vpack.c.bf16 %v998_v13, %v995_v59  ;;  %v485_v5 = vsub.s32 6, %v4074_v53  ;;  %v3086_v59 = vpack.c.bf16 %v1028_v19, %v1025_v18  ;;  %v1024_v13 = vld [vmem:[#allocation13 + $0x780] sm:$0xff]  ;;  %v1102_v47 = vld [vmem:[#allocation13 + $0x9f0] sm:$0xff] }
 0x38f   :  { %3248 = vmatpush3.bf16.msra.mxu1 %v3247_v8  ;;  %3059 = vmatprep.subr.bf16.mxu0 %v3058_v49  ;;  %v1113_v8 = vld [vmem:[#allocation13 + $0xa48] sm:$0xff]  ;;  %v1019_v49 = vld [vmem:[#allocation13 + $0x758] sm:$0xff]  ;;  %v1072_v19 = vld [vmem:[#allocation13 + $0x900] sm:$0xff] }
 0x390   :  { %3249 = vmatprep.subr.bf16.mxu1 %v3850_v0  ;;  %2773 = vmatprep.mubr.msk.f32.mxu1 %vm3851_vm0, %v3852_v1  ;;  %v3265_v62 = vpack.c.bf16 %v1113_v8, %v1110_v4  ;;  %v3082_v11 = vpack.c.bf16 %v1022_v9, %v1019_v49  ;;  %v1060_v8 = vld [vmem:[#allocation13 + $0x8a0] sm:$0xff]  ;;  %v1063_v49 = vld [vmem:[#allocation13 + $0x8b8] sm:$0xff] }
 0x391   :  { %v1067_v9 = vld [vmem:[#allocation13 + $0x8d8] sm:$0xff] }
 0x392   :  { %3061 = vmatpush1.bf16.msra.mxu0 %v3060_v15  ;;  %v1116_v15 = vld [vmem:[#allocation13 + $0xa60] sm:$0xff] }
 0x393   :  { %3251 = vmatpush3.bf16.msra.mxu1 %v3250_v16  ;;  %3063 = vmatprep.subr.bf16.mxu0 %v3062_v17  ;;  %v486_v16 = vrot.slane %v4079_v55, %v485_v5  ;;  %v1119_v17 = vld [vmem:[#allocation13 + $0xa78] sm:$0xff]  ;;  %v1034_v55 = vld [vmem:[#allocation13 + $0x7d0] sm:$0xff]  ;;  %v3110_v5 = vpack.c.bf16 %v1064_v26, %v1061_v3 }
 0x394   :  { %3252 = vmatprep.subr.bf16.mxu1 %v3850_v0  ;;  %v3268_v21 = vpack.c.bf16 %v1119_v17, %v1116_v15  ;;  %v1073_v15 = vld [vmem:[#allocation13 + $0x908] sm:$0xff]  ;;  %v3116_v17 = vpack.c.bf16 %v1069_v14, %v1066_v12  ;;  %v1115_v3 = vld [vmem:[#allocation13 + $0xa58] sm:$0xff]  ;;  %v1118_v26 = vld [vmem:[#allocation13 + $0xa70] sm:$0xff] }
 0x395   :  { %v1713_v14 = vld [vmem:[#allocation16 + $0x48] sm:$0xff] }
 0x396   :  { %3065 = vmatpush1.bf16.msra.mxu0 %v3064_v23  ;;  %v1027_v23 = vld [vmem:[#allocation13 + $0x798] sm:$0xff] }
 0x397   :  { %3254 = vmatpush3.bf16.msra.mxu1 %v3253_v7  ;;  %3067 = vmatprep.subr.bf16.mxu0 %v3066_v22  ;;  %v4144_v7 = vadd.f32 %v4105_v50, %v486_v16  ;;  %v1031_v22 = vld [vmem:[#allocation13 + $0x7b8] sm:$0xff]  ;;  %v3088_v25 = vpack.c.bf16 %v1027_v23, %v1024_v13  ;;  %v3092_v50 = vpack.c.bf16 %v1033_v30, %v1030_v29  ;;  %v1076_v16 = vld [vmem:[#allocation13 + $0x920] sm:$0xff] }
 0x398   :  { %3255 = vmatprep.subr.bf16.mxu1 %v3850_v0  ;;  %v3090_v27 = vpack.c.bf16 %v1034_v55, %v1031_v22  ;;  %v3118_v18 = vpack.c.bf16 %v1076_v16, %v1073_v15  ;;  %v1078_v22 = vld [vmem:[#allocation13 + $0x930] sm:$0xff]  ;;  %v1081_v55 = vld [vmem:[#allocation13 + $0x948] sm:$0xff] }
 0x399   :  { %v783_v31 = vmax.f32 %v4144_v7, 0.0  ;;  %v3124_v29 = vpack.c.bf16 %v1081_v55, %v1078_v22  ;;  %v1704_v15 = vld [vmem:[#allocation16] sm:$0xff]  ;;  %v1710_v16 = vld [vmem:[#allocation16 + $0x30] sm:$0xff]  ;;  %v1725_v22 = vld [vmem:[#allocation16 + $0xa8] sm:$0xff] }
 0x39a   :  { %3069 = vmatpush1.bf16.msra.mxu0 %v3068_v33  ;;  %v1040_v33 = vld [vmem:[#allocation13 + $0x800] sm:$0xff] }
 0x39b   :  { %3257 = vmatpush3.bf16.msra.mxu1 %v3256_v35  ;;  %3071 = vmatprep.subr.bf16.mxu0 %v3070_v36  ;;  %v1036_v35 = vld [vmem:[#allocation13 + $0x7e0] sm:$0xff]  ;;  %v1039_v36 = vld [vmem:[#allocation13 + $0x7f8] sm:$0xff] }
 0x39c   :  { %3258 = vmatprep.subr.bf16.mxu1 %v3850_v0  ;;  %v3096_v39 = vpack.c.bf16 %v1039_v36, %v1036_v35  ;;  %v1716_v55 = vld [vmem:[#allocation16 + $0x60] sm:$0xff] }
 0x39e   :  { %3073 = vmatpush1.bf16.msra.mxu0 %v3072_v43  ;;  %v1049_v43 = vld [vmem:[#allocation13 + $0x848] sm:$0xff] }
 0x39f   :  { %3260 = vmatpush3.bf16.msra.mxu1 %v3259_v44  ;;  %3075 = vmatprep.subr.bf16.mxu0 %v3074_v45  ;;  %v1052_v44 = vld [vmem:[#allocation13 + $0x860] sm:$0xff]  ;;  %v3100_v45 = vpack.c.bf16 %v1045_v42, %v1042_v41  ;;  %v1099_v42 = vld [vmem:[#allocation13 + $0x9d8] sm:$0xff] }
 0x3a0   :  { %3261 = vmatprep.subr.bf16.mxu1 %v3850_v0  ;;  %v3102_v46 = vpack.c.bf16 %v1052_v44, %v1049_v43  ;;  %v1096_v41 = vld [vmem:[#allocation13 + $0x9c0] sm:$0xff]  ;;  %v1103_v43 = vld [vmem:[#allocation13 + $0x9f8] sm:$0xff]  ;;  %v1106_v44 = vld [vmem:[#allocation13 + $0xa10] sm:$0xff] }
 0x3a2   :  { %3077 = vmatpush1.bf16.msra.mxu0 %v3076_v61  ;;  %v3106_v61 = vpack.c.bf16 %v1058_v52, %v1055_v51  ;;  %v1109_v51 = vld [vmem:[#allocation13 + $0xa28] sm:$0xff]  ;;  %v1112_v52 = vld [vmem:[#allocation13 + $0xa40] sm:$0xff] }
 0x3a3   :  { %3263 = vmatpush3.bf16.msra.mxu1 %v3262_v63  ;;  %3079 = vmatprep.subr.bf16.mxu0 %v3078_v2  ;;  %v1054_v63 = vld [vmem:[#allocation13 + $0x870] sm:$0xff]  ;;  %v1057_v2 = vld [vmem:[#allocation13 + $0x888] sm:$0xff] }
 0x3a4   :  { %3264 = vmatprep.subr.bf16.mxu1 %v3850_v0  ;;  %v3108_v4 = vpack.c.bf16 %v1057_v2, %v1054_v63  ;;  %v1108_v63 = vld [vmem:[#allocation13 + $0xa20] sm:$0xff]  ;;  %v1111_v2 = vld [vmem:[#allocation13 + $0xa38] sm:$0xff] }
 0x3a6   :  { %3081 = vmatpush1.bf16.msra.mxu0 %v3080_v10  ;;  %v1070_v10 = vld [vmem:[#allocation13 + $0x8f0] sm:$0xff] }
 0x3a7   :  { %3266 = vmatpush3.bf16.msra.mxu1 %v3265_v62  ;;  %3083 = vmatprep.subr.bf16.mxu0 %v3082_v11  ;;  %v3112_v62 = vpack.c.bf16 %v1063_v49, %v1060_v8  ;;  %v3114_v11 = vpack.c.bf16 %v1070_v10, %v1067_v9  ;;  %v1114_v8 = vld [vmem:[#allocation13 + $0xa50] sm:$0xff]  ;;  %v1117_v49 = vld [vmem:[#allocation13 + $0xa68] sm:$0xff] }
 0x3a8   :  { %3267 = vmatprep.subr.bf16.mxu1 %v3850_v0  ;;  %v3094_v0 = vpack.c.bf16 %v1040_v33, %v1037_v32  ;;  %v1084_v32 = vld [vmem:[#allocation13 + $0x960] sm:$0xff]  ;;  %v1087_v33 = vld [vmem:[#allocation13 + $0x978] sm:$0xff]  ;;  %v3148_v9 = vpack.c.bf16 %v1117_v49, %v1114_v8  ;;  %v1705_v10 = vld [vmem:[#allocation16 + $0x8] sm:$0xff] }
 0x3a9   :  { %v3128_v35 = vpack.c.bf16 %v1087_v33, %v1084_v32  ;;  %v1729_v32 = vld [vmem:[#allocation16 + $0xc8] sm:$0xff]  ;;  %v1735_v33 = vld [vmem:[#allocation16 + $0xf8] sm:$0xff]  ;;  %v1752_v8 = vld [vmem:[#allocation16 + $0x180] sm:$0xff] }
 0x3aa   :  { %3085 = vmatpush1.bf16.msra.mxu0 %v3084_v20  ;;  %v1075_v20 = vld [vmem:[#allocation13 + $0x918] sm:$0xff] }
 0x3ab   :  { %3269 = vmatpush3.bf16.msra.mxu1 %v3268_v21  ;;  %3087 = vmatprep.subr.bf16.mxu0 %v3086_v59  ;;  %v1079_v21 = vld [vmem:[#allocation13 + $0x938] sm:$0xff]  ;;  %v1082_v59 = vld [vmem:[#allocation13 + $0x950] sm:$0xff]  ;;  %v3120_v13 = vpack.c.bf16 %v1075_v20, %v1072_v19  ;;  %v1712_v20 = vld [vmem:[#allocation16 + $0x40] sm:$0xff] }
 0x3ac   :  { %v3122_v23 = vpack.c.bf16 %v1082_v59, %v1079_v21  ;;  %v1706_v19 = vld [vmem:[#allocation16 + $0x10] sm:$0xff]  ;;  %v1717_v21 = vld [vmem:[#allocation16 + $0x68] sm:$0xff] }
 0x3ad   :  { %v3368_v59 = vpack.c.bf16 %v1712_v20, %v1706_v19  ;;  %v1758_v49 = vld [vmem:[#allocation16 + $0x1b0] sm:$0xff]  ;;  %v1764_v19 = vld [vmem:[#allocation16 + $0x1e0] sm:$0xff] }
 0x3ae   :  { %2774 = vmatmul.mubr.f32.vlgmr.msra.gmra.mrb[12].mxu1 %v783_v31  ;;  %3089 = vmatpush1.bf16.msra.mxu0 %v3088_v25  ;;  %v1085_v25 = vld [vmem:[#allocation13 + $0x968] sm:$0xff]  ;;  %v1770_v20 = vld [vmem:[#allocation16 + $0x210] sm:$0xff] }
 0x3af   :  { %3091 = vmatprep.subr.bf16.mxu0 %v3090_v27  ;;  %v1088_v27 = vld [vmem:[#allocation13 + $0x980] sm:$0xff] }
 0x3b0   :  { %v3126_v30 = vpack.c.bf16 %v1088_v27, %v1085_v25  ;;  %v1722_v25 = vld [vmem:[#allocation16 + $0x90] sm:$0xff] }
 0x3b1   :  { %v1718_v27 = vld [vmem:[#allocation16 + $0x70] sm:$0xff] }
 0x3b2   :  { %3093 = vmatpush1.bf16.msra.mxu0 %v3092_v50  ;;  %v1091_v50 = vld [vmem:[#allocation13 + $0x998] sm:$0xff] }
 0x3b3   :  { %3095 = vmatprep.subr.bf16.mxu0 %v3094_v0  ;;  %v1094_v0 = vld [vmem:[#allocation13 + $0x9b0] sm:$0xff] }
 0x3b4   :  { %v3130_v36 = vpack.c.bf16 %v1094_v0, %v1091_v50  ;;  %v3278_v0 = vpack.c.bf16 %v1735_v33, %v1729_v32  ;;  %v1778_v32 = vld [vmem:[#allocation16 + $0x250] sm:$0xff] }
 0x3b6   :  { %3097 = vmatpush1.bf16.msra.mxu0 %v3096_v39  ;;  %v1097_v39 = vld [vmem:[#allocation13 + $0x9c8] sm:$0xff] }
 0x3b7   :  { %3099 = vmatprep.subr.bf16.mxu0 %v3098_v40  ;;  %v1100_v40 = vld [vmem:[#allocation13 + $0x9e0] sm:$0xff] }
 0x3ba   :  { %3101 = vmatpush1.bf16.msra.mxu0 %v3100_v45  ;;  %v3136_v45 = vpack.c.bf16 %v1099_v42, %v1096_v41  ;;  %v1741_v41 = vld [vmem:[#allocation16 + $0x128] sm:$0xff]  ;;  %v1747_v42 = vld [vmem:[#allocation16 + $0x158] sm:$0xff] }
 0x3bb   :  { %3103 = vmatprep.subr.bf16.mxu0 %v3102_v46  ;;  %v3138_v46 = vpack.c.bf16 %v1106_v44, %v1103_v43  ;;  %v1743_v43 = vld [vmem:[#allocation16 + $0x138] sm:$0xff] }
 0x3be   :  { %3105 = vmatpush1.bf16.msra.mxu0 %v3104_v60  ;;  %v3140_v60 = vpack.c.bf16 %v1105_v48, %v1102_v47  ;;  %v1740_v47 = vld [vmem:[#allocation16 + $0x120] sm:$0xff]  ;;  %v1746_v48 = vld [vmem:[#allocation16 + $0x150] sm:$0xff] }
 0x3bf   :  { %3107 = vmatprep.subr.bf16.mxu0 %v3106_v61  ;;  %v3142_v61 = vpack.c.bf16 %v1112_v52, %v1109_v51  ;;  %v1742_v52 = vld [vmem:[#allocation16 + $0x130] sm:$0xff] }
 0x3c2   :  { %3109 = vmatpush1.bf16.msra.mxu0 %v3108_v4  ;;  %v3144_v4 = vpack.c.bf16 %v1111_v2, %v1108_v63  ;;  %v1759_v63 = vld [vmem:[#allocation16 + $0x1b8] sm:$0xff] }
 0x3c3   :  { %3111 = vmatprep.subr.bf16.mxu0 %v3110_v5  ;;  %v3146_v5 = vpack.c.bf16 %v1118_v26, %v1115_v3  ;;  %v1755_v2 = vld [vmem:[#allocation16 + $0x198] sm:$0xff]  ;;  %v1761_v3 = vld [vmem:[#allocation16 + $0x1c8] sm:$0xff]  ;;  %v3284_v26 = vpack.c.bf16 %v1746_v48, %v1740_v47 }
 0x3c4   :  { %v1809_v47 = vld [vmem:[#allocation16 + $0x348] sm:$0xff] }
 0x3c6   :  { %3113 = vmatpush1.bf16.msra.mxu0 %v3112_v62  ;;  %v1711_v62 = vld [vmem:[#allocation16 + $0x38] sm:$0xff] }
 0x3c7   :  { %3115 = vmatprep.subr.bf16.mxu0 %v3114_v11  ;;  %v1707_v11 = vld [vmem:[#allocation16 + $0x18] sm:$0xff]  ;;  %v3270_v12 = vpack.c.bf16 %v1711_v62, %v1705_v10  ;;  %v3382_v10 = vpack.c.bf16 %v1761_v3, %v1755_v2  ;;  %v1760_v62 = vld [vmem:[#allocation16 + $0x1c0] sm:$0xff]  ;;  %v1806_v2 = vld [vmem:[#allocation16 + $0x330] sm:$0xff] }
 0x3c8   :  { %v1802_v3 = vld [vmem:[#allocation16 + $0x310] sm:$0xff] }
 0x3c9   :  { %3271 = vmatprep.subr.bf16.mxu1 %v3270_v12  ;;  %v1771_v12 = vld [vmem:[#allocation16 + $0x218] sm:$0xff] }
 0x3ca   :  { %3117 = vmatpush1.bf16.msra.mxu0 %v3116_v17  ;;  %v3366_v17 = vpack.c.bf16 %v1713_v14, %v1707_v11  ;;  %v1765_v11 = vld [vmem:[#allocation16 + $0x1e8] sm:$0xff]  ;;  %v1767_v14 = vld [vmem:[#allocation16 + $0x1f8] sm:$0xff] }
 0x3cb   :  { %3119 = vmatprep.subr.bf16.mxu0 %v3118_v18  ;;  %v3272_v18 = vpack.c.bf16 %v1710_v16, %v1704_v15  ;;  %v1773_v15 = vld [vmem:[#allocation16 + $0x228] sm:$0xff]  ;;  %v3288_v16 = vpack.c.bf16 %v1758_v49, %v1752_v8  ;;  %v1819_v49 = vld [vmem:[#allocation16 + $0x398] sm:$0xff] }
 0x3cc   :  { %v1813_v8 = vld [vmem:[#allocation16 + $0x368] sm:$0xff] }
 0x3cd   :  { %1344 = vmatmul.mubr.f32.vlgmr.msra.gmra.mrb[6].mxu0 %v781_v6  ;;  %v3134_v6 = vpack.c.bf16 %v1100_v40, %v1097_v39  ;;  %3273 = vmatpush1.bf16.msra.mxu1 %v3272_v18  ;;  %v1734_v39 = vld [vmem:[#allocation16 + $0xf0] sm:$0xff]  ;;  %v3290_v18 = vpack.c.bf16 %v1771_v12, %v1765_v11  ;;  %v3306_v12 = vpack.c.bf16 %v1819_v49, %v1813_v8  ;;  %v1860_v8 = vld [vmem:[#allocation16 + $0x4e0] sm:$0xff] }
 0x3ce   :  { %3121 = vmatpush1.bf16.msra.mxu0 %v3120_v13  ;;  %1414 = vmatprep.mubr.f32.mxu0 %v3852_v1  ;;  %v1723_v13 = vld [vmem:[#allocation16 + $0x98] sm:$0xff]  ;;  %v1730_v40 = vld [vmem:[#allocation16 + $0xd0] sm:$0xff] }
 0x3cf   :  { %3123 = vmatprep.subr.bf16.mxu0 %v3122_v23  ;;  %v1719_v23 = vld [vmem:[#allocation16 + $0x78] sm:$0xff]  ;;  %v3274_v7 = vpack.c.bf16 %v1723_v13, %v1717_v21  ;;  %v1766_v21 = vld [vmem:[#allocation16 + $0x1f0] sm:$0xff]  ;;  %v1772_v13 = vld [vmem:[#allocation16 + $0x220] sm:$0xff] }
 0x3d0   :  { %v1866_v49 = vld [vmem:[#allocation16 + $0x510] sm:$0xff] }
 0x3d1   :  { %3275 = vmatprep.subr.bf16.mxu1 %v3274_v7  ;;  %v1779_v7 = vld [vmem:[#allocation16 + $0x258] sm:$0xff] }
 0x3d2   :  { %3125 = vmatpush1.bf16.msra.mxu0 %v3124_v29  ;;  %v3276_v29 = vpack.c.bf16 %v1722_v25, %v1716_v55  ;;  %v3292_v55 = vpack.c.bf16 %v1770_v20, %v1764_v19  ;;  %v3388_v25 = vpack.c.bf16 %v1772_v13, %v1766_v21  ;;  %v1825_v19 = vld [vmem:[#allocation16 + $0x3c8] sm:$0xff]  ;;  %v1831_v20 = vld [vmem:[#allocation16 + $0x3f8] sm:$0xff] }
 0x3d3   :  { %3127 = vmatprep.subr.bf16.mxu0 %v3126_v30  ;;  %v1724_v30 = vld [vmem:[#allocation16 + $0xa0] sm:$0xff]  ;;  %v1827_v21 = vld [vmem:[#allocation16 + $0x3d8] sm:$0xff] }
 0x3d4   :  { %v3372_v50 = vpack.c.bf16 %v1724_v30, %v1718_v27  ;;  %3277 = vmatpush1.bf16.msra.mxu1 %v3276_v29  ;;  %v1776_v29 = vld [vmem:[#allocation16 + $0x240] sm:$0xff]  ;;  %v1782_v30 = vld [vmem:[#allocation16 + $0x270] sm:$0xff] }
 0x3d5   :  { %3279 = vmatprep.subr.bf16.mxu1 %v3278_v0  ;;  %v1789_v0 = vld [vmem:[#allocation16 + $0x2a8] sm:$0xff] }
 0x3d6   :  { %3129 = vmatpush1.bf16.msra.mxu0 %v3128_v35  ;;  %v1731_v35 = vld [vmem:[#allocation16 + $0xd8] sm:$0xff] }
 0x3d7   :  { %3131 = vmatprep.subr.bf16.mxu0 %v3130_v36  ;;  %v1737_v36 = vld [vmem:[#allocation16 + $0x108] sm:$0xff] }
 0x3d8   :  { %v3374_v38 = vpack.c.bf16 %v1737_v36, %v1731_v35  ;;  %v1795_v35 = vld [vmem:[#allocation16 + $0x2d8] sm:$0xff] }
 0x3d9   :  { %v1791_v36 = vld [vmem:[#allocation16 + $0x2b8] sm:$0xff] }
 0x3da   :  { %3133 = vmatpush1.bf16.msra.mxu0 %v3132_v58  ;;  %v1736_v58 = vld [vmem:[#allocation16 + $0x100] sm:$0xff] }
 0x3db   :  { %3135 = vmatprep.subr.bf16.mxu0 %v3134_v6  ;;  %v3280_v6 = vpack.c.bf16 %v1734_v39, %v1728_v37  ;;  %v3376_v44 = vpack.c.bf16 %v1736_v58, %v1730_v40  ;;  %v1797_v37 = vld [vmem:[#allocation16 + $0x2e8] sm:$0xff]  ;;  %v3298_v40 = vpack.c.bf16 %v1795_v35, %v1789_v0  ;;  %v1788_v58 = vld [vmem:[#allocation16 + $0x2a0] sm:$0xff] }
 0x3dd   :  { %3281 = vmatpush1.bf16.msra.mxu1 %v3280_v6  ;;  %v1794_v6 = vld [vmem:[#allocation16 + $0x2d0] sm:$0xff] }
 0x3de   :  { %3137 = vmatpush1.bf16.msra.mxu0 %v3136_v45  ;;  %v3282_v45 = vpack.c.bf16 %v1747_v42, %v1741_v41  ;;  %v1790_v41 = vld [vmem:[#allocation16 + $0x2b0] sm:$0xff]  ;;  %v3394_v42 = vpack.c.bf16 %v1797_v37, %v1791_v36  ;;  %v1836_v36 = vld [vmem:[#allocation16 + $0x420] sm:$0xff] }
 0x3df   :  { %3139 = vmatprep.subr.bf16.mxu0 %v3138_v46  ;;  %v1749_v46 = vld [vmem:[#allocation16 + $0x168] sm:$0xff]  ;;  %v1842_v37 = vld [vmem:[#allocation16 + $0x450] sm:$0xff] }
 0x3e0   :  { %v3378_v51 = vpack.c.bf16 %v1749_v46, %v1743_v43  ;;  %3283 = vmatprep.subr.bf16.mxu1 %v3282_v45  ;;  %v1796_v43 = vld [vmem:[#allocation16 + $0x2e0] sm:$0xff]  ;;  %v1807_v45 = vld [vmem:[#allocation16 + $0x338] sm:$0xff] }
 0x3e1   :  { %3285 = vmatpush1.bf16.msra.mxu1 %v3284_v26  ;;  %v1803_v46 = vld [vmem:[#allocation16 + $0x318] sm:$0xff] }
 0x3e2   :  { %3141 = vmatpush1.bf16.msra.mxu0 %v3140_v60  ;;  %v1748_v60 = vld [vmem:[#allocation16 + $0x160] sm:$0xff] }
 0x3e3   :  { %3143 = vmatprep.subr.bf16.mxu0 %v3142_v61  ;;  %v1753_v61 = vld [vmem:[#allocation16 + $0x188] sm:$0xff] }
 0x3e6   :  { %3145 = vmatpush1.bf16.msra.mxu0 %v3144_v4  ;;  %v3380_v4 = vpack.c.bf16 %v1748_v60, %v1742_v52  ;;  %v3396_v60 = vpack.c.bf16 %v1796_v43, %v1790_v41  ;;  %v1851_v41 = vld [vmem:[#allocation16 + $0x498] sm:$0xff]  ;;  %v3316_v43 = vpack.c.bf16 %v1842_v37, %v1836_v36 }
 0x3e7   :  { %3147 = vmatprep.subr.bf16.mxu0 %v3146_v5  ;;  %v3286_v5 = vpack.c.bf16 %v1759_v63, %v1753_v61  ;;  %v1800_v63 = vld [vmem:[#allocation16 + $0x300] sm:$0xff] }
 0x3e9   :  { %3287 = vmatprep.subr.bf16.mxu1 %v3286_v5  ;;  %v1808_v5 = vld [vmem:[#allocation16 + $0x340] sm:$0xff] }
 0x3ea   :  { %3149 = vmatpush1.bf16.msra.mxu0 %v3148_v9  ;;  %v1754_v9 = vld [vmem:[#allocation16 + $0x190] sm:$0xff]  ;;  %3289 = vmatpush1.bf16.msra.mxu1 %v3288_v16  ;;  %v3400_v11 = vpack.c.bf16 %v1808_v5, %v1802_v3 }
 0x3eb   :  { %3367 = vmatprep.subr.bf16.mxu0 %v3366_v17  ;;  %v3384_v17 = vpack.c.bf16 %v1760_v62, %v1754_v9  ;;  %3291 = vmatprep.subr.bf16.mxu1 %v3290_v18  ;;  %v1815_v9 = vld [vmem:[#allocation16 + $0x378] sm:$0xff]  ;;  %v3304_v62 = vpack.c.bf16 %v1806_v2, %v1800_v63  ;;  %v1814_v16 = vld [vmem:[#allocation16 + $0x370] sm:$0xff]  ;;  %v1820_v18 = vld [vmem:[#allocation16 + $0x3a0] sm:$0xff] }
 0x3ec   :  { %v1863_v63 = vld [vmem:[#allocation16 + $0x4f8] sm:$0xff]  ;;  %v1869_v2 = vld [vmem:[#allocation16 + $0x528] sm:$0xff] }
 0x3ed   :  { %1415 = vmatmul.mubr.f32.vlgmr.msra.gmra.mrb[6].mxu0 %v783_v31  ;;  %v3370_v31 = vpack.c.bf16 %v1725_v22, %v1719_v23  ;;  %v1777_v23 = vld [vmem:[#allocation16 + $0x248] sm:$0xff]  ;;  %v1783_v22 = vld [vmem:[#allocation16 + $0x278] sm:$0xff] }
 0x3ee   :  { %3369 = vmatpush1.bf16.msra.mxu0 %v3368_v59  ;;  %v3386_v59 = vpack.c.bf16 %v1773_v15, %v1767_v14  ;;  %v3294_v27 = vpack.c.bf16 %v1783_v22, %v1777_v23  ;;  %3293 = vmatpush1.bf16.msra.mxu1 %v3292_v55  ;;  %v1812_v14 = vld [vmem:[#allocation16 + $0x360] sm:$0xff]  ;;  %v1818_v15 = vld [vmem:[#allocation16 + $0x390] sm:$0xff]  ;;  %v3404_v23 = vpack.c.bf16 %v1820_v18, %v1814_v16 }
 0x3ef   :  { %3371 = vmatprep.subr.bf16.mxu0 %v3370_v31  ;;  %v1785_v31 = vld [vmem:[#allocation16 + $0x288] sm:$0xff]  ;;  %v3308_v13 = vpack.c.bf16 %v1818_v15, %v1812_v14  ;;  %v3310_v22 = vpack.c.bf16 %v1831_v20, %v1825_v19  ;;  %v1826_v55 = vld [vmem:[#allocation16 + $0x3d0] sm:$0xff]  ;;  %v1875_v14 = vld [vmem:[#allocation16 + $0x558] sm:$0xff]  ;;  %v3324_v16 = vpack.c.bf16 %v1866_v49, %v1860_v8 }
 0x3f0   :  { %v3390_v33 = vpack.c.bf16 %v1785_v31, %v1779_v7  ;;  %3295 = vmatprep.subr.bf16.mxu1 %v3294_v27  ;;  %v1824_v7 = vld [vmem:[#allocation16 + $0x3c0] sm:$0xff]  ;;  %v1830_v31 = vld [vmem:[#allocation16 + $0x3f0] sm:$0xff]  ;;  %v1881_v15 = vld [vmem:[#allocation16 + $0x588] sm:$0xff] }
 0x3f1   :  { %v1832_v27 = vld [vmem:[#allocation16 + $0x400] sm:$0xff]  ;;  %v1878_v20 = vld [vmem:[#allocation16 + $0x570] sm:$0xff] }
 0x3f2   :  { %3373 = vmatpush1.bf16.msra.mxu0 %v3372_v50  ;;  %v1784_v50 = vld [vmem:[#allocation16 + $0x280] sm:$0xff]  ;;  %v3408_v0 = vpack.c.bf16 %v1832_v27, %v1826_v55  ;;  %v1891_v27 = vld [vmem:[#allocation16 + $0x5d8] sm:$0xff] }
 0x3f3   :  { %3375 = vmatprep.subr.bf16.mxu0 %v3374_v38  ;;  %v3296_v38 = vpack.c.bf16 %v1782_v30, %v1776_v29  ;;  %v3392_v39 = vpack.c.bf16 %v1784_v50, %v1778_v32  ;;  %v1837_v29 = vld [vmem:[#allocation16 + $0x428] sm:$0xff]  ;;  %v1843_v30 = vld [vmem:[#allocation16 + $0x458] sm:$0xff]  ;;  %v3312_v50 = vpack.c.bf16 %v1830_v31, %v1824_v7  ;;  %v1872_v19 = vld [vmem:[#allocation16 + $0x540] sm:$0xff] }
 0x3f4   :  { %v1839_v32 = vld [vmem:[#allocation16 + $0x438] sm:$0xff]  ;;  %v3314_v35 = vpack.c.bf16 %v1843_v30, %v1837_v29 }
 0x3f5   :  { %3297 = vmatpush1.bf16.msra.mxu1 %v3296_v38  ;;  %v1838_v38 = vld [vmem:[#allocation16 + $0x430] sm:$0xff]  ;;  %v1887_v29 = vld [vmem:[#allocation16 + $0x5b8] sm:$0xff] }
 0x3f6   :  { %3377 = vmatpush1.bf16.msra.mxu0 %v3376_v44  ;;  %v1801_v44 = vld [vmem:[#allocation16 + $0x308] sm:$0xff]  ;;  %3299 = vmatprep.subr.bf16.mxu1 %v3298_v40  ;;  %v1844_v40 = vld [vmem:[#allocation16 + $0x460] sm:$0xff] }
 0x3f7   :  { %3379 = vmatprep.subr.bf16.mxu0 %v3378_v51  ;;  %v3300_v51 = vpack.c.bf16 %v1794_v6, %v1788_v58  ;;  %v3302_v61 = vpack.c.bf16 %v1807_v45, %v1801_v44  ;;  %v1849_v58 = vld [vmem:[#allocation16 + $0x488] sm:$0xff]  ;;  %v1855_v6 = vld [vmem:[#allocation16 + $0x4b8] sm:$0xff]  ;;  %v3412_v44 = vpack.c.bf16 %v1844_v40, %v1838_v38  ;;  %v1892_v40 = vld [vmem:[#allocation16 + $0x5e0] sm:$0xff] }
 0x3f8   :  { %v3318_v45 = vpack.c.bf16 %v1855_v6, %v1849_v58 }
 0x3f9   :  { %3301 = vmatpush1.bf16.msra.mxu1 %v3300_v51 }
 0x3fa   :  { %3381 = vmatpush1.bf16.msra.mxu0 %v3380_v4  ;;  %v3398_v4 = vpack.c.bf16 %v1809_v47, %v1803_v46  ;;  %3303 = vmatprep.subr.bf16.mxu1 %v3302_v61  ;;  %v1848_v46 = vld [vmem:[#allocation16 + $0x480] sm:$0xff]  ;;  %v1854_v47 = vld [vmem:[#allocation16 + $0x4b0] sm:$0xff]  ;;  %v1867_v61 = vld [vmem:[#allocation16 + $0x518] sm:$0xff] }
 0x3fb   :  { %3383 = vmatprep.subr.bf16.mxu0 %v3382_v10  ;;  %v1821_v10 = vld [vmem:[#allocation16 + $0x3a8] sm:$0xff]  ;;  %v3320_v3 = vpack.c.bf16 %v1854_v47, %v1848_v46 }
 0x3fd   :  { %3305 = vmatpush1.bf16.msra.mxu1 %v3304_v62  ;;  %v1868_v62 = vld [vmem:[#allocation16 + $0x520] sm:$0xff] }
 0x3fe   :  { %3385 = vmatpush1.bf16.msra.mxu0 %v3384_v17  ;;  %v3402_v17 = vpack.c.bf16 %v1821_v10, %v1815_v9  ;;  %3307 = vmatprep.subr.bf16.mxu1 %v3306_v12  ;;  %v1862_v9 = vld [vmem:[#allocation16 + $0x4f0] sm:$0xff]  ;;  %v3418_v10 = vpack.c.bf16 %v1869_v2, %v1863_v63  ;;  %v1879_v12 = vld [vmem:[#allocation16 + $0x578] sm:$0xff] }
 0x3ff   :  { %3387 = vmatprep.subr.bf16.mxu0 %v3386_v59  ;;  %v1833_v59 = vld [vmem:[#allocation16 + $0x408] sm:$0xff] }
 0x401   :  { %3309 = vmatpush1.bf16.msra.mxu1 %v3308_v13  ;;  %v1880_v13 = vld [vmem:[#allocation16 + $0x580] sm:$0xff] }
 0x402   :  { %3389 = vmatpush1.bf16.msra.mxu0 %v3388_v25  ;;  %v3406_v25 = vpack.c.bf16 %v1833_v59, %v1827_v21  ;;  %3311 = vmatprep.subr.bf16.mxu1 %v3310_v22  ;;  %v3422_v21 = vpack.c.bf16 %v1881_v15, %v1875_v14  ;;  %v1874_v59 = vld [vmem:[#allocation16 + $0x550] sm:$0xff]  ;;  %v3328_v22 = vpack.c.bf16 %v1878_v20, %v1872_v19  ;;  %v1911_v14 = vld [vmem:[#allocation16 + $0x678] sm:$0xff]  ;;  %v1917_v15 = vld [vmem:[#allocation16 + $0x6a8] sm:$0xff] }
 0x403   :  { %3391 = vmatprep.subr.bf16.mxu0 %v3390_v33  ;;  %v1845_v33 = vld [vmem:[#allocation16 + $0x468] sm:$0xff]  ;;  %v3424_v7 = vpack.c.bf16 %v1880_v13, %v1874_v59  ;;  %v1908_v19 = vld [vmem:[#allocation16 + $0x660] sm:$0xff]  ;;  %v1914_v20 = vld [vmem:[#allocation16 + $0x690] sm:$0xff]  ;;  %v3434_v13 = vpack.c.bf16 %v1917_v15, %v1911_v14 }
 0x404   :  { %v1962_v14 = vld [vmem:[#allocation16 + $0x810] sm:$0xff] }
 0x405   :  { %3313 = vmatpush1.bf16.msra.mxu1 %v3312_v50  ;;  %v1884_v50 = vld [vmem:[#allocation16 + $0x5a0] sm:$0xff] }
 0x406   :  { %3393 = vmatpush1.bf16.msra.mxu0 %v3392_v39  ;;  %v3410_v39 = vpack.c.bf16 %v1845_v33, %v1839_v32  ;;  %3315 = vmatprep.subr.bf16.mxu1 %v3314_v35  ;;  %v1893_v33 = vld [vmem:[#allocation16 + $0x5e8] sm:$0xff] }
 0x407   :  { %3395 = vmatprep.subr.bf16.mxu0 %v3394_v42  ;;  %v1857_v42 = vld [vmem:[#allocation16 + $0x4c8] sm:$0xff]  ;;  %v3426_v37 = vpack.c.bf16 %v1893_v33, %v1887_v29 }
 0x408   :  { %v3414_v51 = vpack.c.bf16 %v1857_v42, %v1851_v41  ;;  %v1897_v41 = vld [vmem:[#allocation16 + $0x608] sm:$0xff]  ;;  %v1903_v42 = vld [vmem:[#allocation16 + $0x638] sm:$0xff] }
 0x409   :  { %3317 = vmatpush1.bf16.msra.mxu1 %v3316_v43  ;;  %v1899_v43 = vld [vmem:[#allocation16 + $0x618] sm:$0xff] }
 0x40a   :  { %3397 = vmatpush1.bf16.msra.mxu0 %v3396_v60  ;;  %v1861_v60 = vld [vmem:[#allocation16 + $0x4e8] sm:$0xff]  ;;  %3319 = vmatprep.subr.bf16.mxu1 %v3318_v45 }
 0x40b   :  { %3399 = vmatprep.subr.bf16.mxu0 %v3398_v4  ;;  %v3322_v5 = vpack.c.bf16 %v1867_v61, %v1861_v60  ;;  %v1905_v45 = vld [vmem:[#allocation16 + $0x648] sm:$0xff] }
 0x40c   :  { %v3430_v46 = vpack.c.bf16 %v1905_v45, %v1899_v43  ;;  %v1940_v45 = vld [vmem:[#allocation16 + $0x760] sm:$0xff] }
 0x40d   :  { %3321 = vmatpush1.bf16.msra.mxu1 %v3320_v3 }
 0x40e   :  { %3401 = vmatpush1.bf16.msra.mxu0 %v3400_v11  ;;  %v1873_v11 = vld [vmem:[#allocation16 + $0x548] sm:$0xff]  ;;  %3323 = vmatprep.subr.bf16.mxu1 %v3322_v5  ;;  %v1902_v5 = vld [vmem:[#allocation16 + $0x630] sm:$0xff] }
 0x40f   :  { %3403 = vmatprep.subr.bf16.mxu0 %v3402_v17  ;;  %v3420_v17 = vpack.c.bf16 %v1868_v62, %v1862_v9  ;;  %v3326_v18 = vpack.c.bf16 %v1879_v12, %v1873_v11  ;;  %v1898_v9 = vld [vmem:[#allocation16 + $0x610] sm:$0xff]  ;;  %v1909_v62 = vld [vmem:[#allocation16 + $0x668] sm:$0xff]  ;;  %v1915_v12 = vld [vmem:[#allocation16 + $0x698] sm:$0xff] }
 0x410   :  { %v3338_v59 = vpack.c.bf16 %v1915_v12, %v1909_v62  ;;  %v1956_v12 = vld [vmem:[#allocation16 + $0x7e0] sm:$0xff] }
 0x411   :  { %3325 = vmatpush1.bf16.msra.mxu1 %v3324_v16 }
 0x412   :  { %3405 = vmatpush1.bf16.msra.mxu0 %v3404_v23  ;;  %v1120_v23 = vld [vmem:[#allocation15] sm:$0x7]  ;;  %3327 = vmatprep.subr.bf16.mxu1 %v3326_v18 }
 0x413   :  { %3407 = vmatprep.subr.bf16.mxu0 %v3406_v25  ;;  %v1133_v31 = vrot.slane %v1120_v23, %v4095_v24  ;;  %v1885_v25 = vld [vmem:[#allocation16 + $0x5a8] sm:$0xff]  ;;  %v1125_v63 = vrot.slane %v1120_v23, %v4077_v54  ;;  %v1129_v2 = vrot.slane %v1120_v23, %v4082_v56  ;;  %v1910_v23 = vld [vmem:[#allocation16 + $0x670] sm:$0xff] }
 0x414   :  { %v3330_v32 = vpack.c.bf16 %v1891_v27, %v1885_v25  ;;  %v1929_v25 = vld [vmem:[#allocation16 + $0x708] sm:$0xff]  ;;  %v3340_v27 = vpack.c.bf16 %v1914_v20, %v1908_v19  ;;  %v1964_v19 = vld [vmem:[#allocation16 + $0x820] sm:$0xff] }
 0x415   :  { %3329 = vmatpush1.bf16.msra.mxu1 %v3328_v22  ;;  %v1916_v22 = vld [vmem:[#allocation16 + $0x6a0] sm:$0xff]  ;;  %v1969_v20 = vld [vmem:[#allocation16 + $0x848] sm:$0xff] }
 0x416   :  { %3409 = vmatpush1.bf16.msra.mxu0 %v3408_v0  ;;  %v1890_v0 = vld [vmem:[#allocation16 + $0x5d0] sm:$0xff]  ;;  %3331 = vmatprep.subr.bf16.mxu1 %v3330_v32  ;;  %v3436_v29 = vpack.c.bf16 %v1916_v22, %v1910_v23  ;;  %v1977_v23 = vld [vmem:[#allocation16 + $0x888] sm:$0xff]  ;;  %v3356_v22 = vpack.c.bf16 %v1962_v14, %v1956_v12  ;;  %v1744_v12 = vld [vmem:[#allocation16 + $0x140] sm:$0xff] }
 0x417   :  { %3411 = vmatprep.subr.bf16.mxu0 %v3410_v39  ;;  %v3332_v38 = vpack.c.bf16 %v1890_v0, %v1884_v50  ;;  %v1886_v39 = vld [vmem:[#allocation16 + $0x5b0] sm:$0xff] }
 0x418   :  { %v3428_v58 = vpack.c.bf16 %v1892_v40, %v1886_v39  ;;  %v1926_v32 = vld [vmem:[#allocation16 + $0x6f0] sm:$0xff]  ;;  %v1941_v39 = vld [vmem:[#allocation16 + $0x768] sm:$0xff] }
 0x419   :  { %3333 = vmatpush1.bf16.msra.mxu1 %v3332_v38  ;;  %v1922_v0 = vld [vmem:[#allocation16 + $0x6d0] sm:$0xff]  ;;  %v1935_v38 = vld [vmem:[#allocation16 + $0x738] sm:$0xff] }
 0x41a   :  { %3413 = vmatpush1.bf16.msra.mxu0 %v3412_v44  ;;  %v3334_v44 = vpack.c.bf16 %v1903_v42, %v1897_v41  ;;  %v1938_v41 = vld [vmem:[#allocation16 + $0x750] sm:$0xff]  ;;  %v3442_v43 = vpack.c.bf16 %v1941_v39, %v1935_v38 }
 0x41b   :  { %3415 = vmatprep.subr.bf16.mxu0 %v3414_v51  ;;  %v1750_v14 = vld [vmem:[#allocation16 + $0x170] sm:$0xff] }
 0x41c   :  { %3335 = vmatprep.subr.bf16.mxu1 %v3334_v44  ;;  %v1934_v44 = vld [vmem:[#allocation16 + $0x730] sm:$0xff] }
 0x420   :  { %v2570_v48 = vpop.f32.mrb[6].mxu1 }
 0x421   :  { %v2571_v52 = vpop.f32.mrb[7].mxu1 }
 0x422   :  { %v4155_v26 = vadd.f32 %v2571_v52, %v2570_v48  ;;  %v1850_v48 = vld [vmem:[#allocation16 + $0x490] sm:$0xff]  ;;  %v1856_v52 = vld [vmem:[#allocation16 + $0x4c0] sm:$0xff] }
 0x423   :  { %v3416_v4 = vpack.c.bf16 %v1856_v52, %v1850_v48 }
 0x424   :  { %v1488_v35 = vadd.f32 %v4155_v26, %v1133_v31  ;;  %v1927_v31 = vld [vmem:[#allocation16 + $0x6f8] sm:$0xff] }
 0x425   :  { %3417 = vmatpush1.bf16.msra.mxu0 %v3416_v4  ;;  %v1896_v4 = vld [vmem:[#allocation16 + $0x600] sm:$0xff] }
 0x426   :  { %3419 = vmatprep.subr.bf16.mxu0 %v3418_v10  ;;  %v1904_v10 = vld [vmem:[#allocation16 + $0x640] sm:$0xff] }
 0x427   :  { %v3432_v18 = vpack.c.bf16 %v1904_v10, %v1898_v9  ;;  %v1959_v9 = vld [vmem:[#allocation16 + $0x7f8] sm:$0xff]  ;;  %v1965_v10 = vld [vmem:[#allocation16 + $0x828] sm:$0xff] }
 0x429   :  { %3421 = vmatpush1.bf16.msra.mxu0 %v3420_v17  ;;  %v3336_v17 = vpack.c.bf16 %v1902_v5, %v1896_v4  ;;  %v1946_v4 = vld [vmem:[#allocation16 + $0x790] sm:$0xff]  ;;  %v1952_v5 = vld [vmem:[#allocation16 + $0x7c0] sm:$0xff] }
 0x42a   :  { %3423 = vmatprep.subr.bf16.mxu0 %v3422_v21 }
 0x42d   :  { %3425 = vmatpush1.bf16.msra.mxu0 %v3424_v7  ;;  %v1921_v7 = vld [vmem:[#allocation16 + $0x6c8] sm:$0xff] }
 0x42e   :  { %3427 = vmatprep.subr.bf16.mxu0 %v3426_v37  ;;  %v3342_v33 = vpack.c.bf16 %v1927_v31, %v1921_v7  ;;  %v1939_v37 = vld [vmem:[#allocation16 + $0x758] sm:$0xff]  ;;  %v1968_v31 = vld [vmem:[#allocation16 + $0x840] sm:$0xff] }
 0x431   :  { %3429 = vmatpush1.bf16.msra.mxu0 %v3428_v58 }
 0x432   :  { %3431 = vmatprep.subr.bf16.mxu0 %v3430_v46  ;;  %v1945_v46 = vld [vmem:[#allocation16 + $0x788] sm:$0xff] }
 0x440   :  { %v2605_v55 = vpop.f32.mrb[8].mxu1 }
 0x441   :  { %v2606_v30 = vpop.f32.mrb[9].mxu1 }
 0x442   :  { %v2607_v36 = vadd.f32 %v2606_v30, %v2605_v55  ;;  %v1923_v55 = vld [vmem:[#allocation16 + $0x6d8] sm:$0xff]  ;;  %v1920_v30 = vld [vmem:[#allocation16 + $0x6c0] sm:$0xff] }
 0x443   :  { %v3438_v50 = vpack.c.bf16 %v1929_v25, %v1923_v55  ;;  %v3344_v40 = vpack.c.bf16 %v1926_v32, %v1920_v30  ;;  %v1974_v55 = vld [vmem:[#allocation16 + $0x870] sm:$0xff]  ;;  %v1976_v30 = vld [vmem:[#allocation16 + $0x880] sm:$0xff]  ;;  %v1981_v32 = vld [vmem:[#allocation16 + $0x8a8] sm:$0xff] }
 0x444   :  { %v1558_v6 = vadd.f32 %v2607_v36, %v1488_v35  ;;  %v1928_v35 = vld [vmem:[#allocation16 + $0x700] sm:$0xff]  ;;  %v1933_v36 = vld [vmem:[#allocation16 + $0x728] sm:$0xff] }
 0x445   :  { %v3440_v58 = vpack.c.bf16 %v1928_v35, %v1922_v0  ;;  %v3346_v42 = vpack.c.bf16 %v1939_v37, %v1933_v36  ;;  %v1989_v0 = vld [vmem:[#allocation16 + $0x8e8] sm:$0xff]  ;;  %v3360_v35 = vpack.c.bf16 %v1974_v55, %v1968_v31  ;;  %v1980_v37 = vld [vmem:[#allocation16 + $0x8a0] sm:$0xff]  ;;  %v1774_v31 = vld [vmem:[#allocation16 + $0x230] sm:$0xff] }
 0x446   :  { %v1781_v55 = vld [vmem:[#allocation16 + $0x268] sm:$0xff] }
 0x460   :  { %v2640_v26 = vpop.f32.mrb[10].mxu1 }
 0x461   :  { %v2641_v47 = vpop.f32.mrb[11].mxu1 }
 0x462   :  { %v2642_v48 = vadd.f32 %v2641_v47, %v2640_v26  ;;  %v1951_v26 = vld [vmem:[#allocation16 + $0x7b8] sm:$0xff] }
 0x463   :  { %v1947_v47 = vld [vmem:[#allocation16 + $0x798] sm:$0xff] }
 0x464   :  { %v1628_v51 = vadd.f32 %v2642_v48, %v1558_v6  ;;  %v1932_v6 = vld [vmem:[#allocation16 + $0x720] sm:$0xff]  ;;  %v1953_v48 = vld [vmem:[#allocation16 + $0x7c8] sm:$0xff] }
 0x481   :  { %v1697_v52 = vpop.f32.mrb[12].mxu1 }
 0x482   :  { %v4159_v60 = vadd.f32 %v1697_v52, %v1628_v51  ;;  %v2775_v61 = vpop.f32.mrb[13].mxu1  ;;  %v3348_v51 = vpack.c.bf16 %v1938_v41, %v1932_v6  ;;  %v3444_v52 = vpack.c.bf16 %v1940_v45, %v1934_v44  ;;  %v1988_v6 = vld [vmem:[#allocation16 + $0x8e0] sm:$0xff]  ;;  %v1709_v41 = vld [vmem:[#allocation16 + $0x28] sm:$0xff] }
 0x483   :  { %v1944_v61 = vld [vmem:[#allocation16 + $0x780] sm:$0xff] }
 0x4c0   :  { %v1416_v3 = vpop.f32.mrb[6].mxu0 }
 0x4c1   :  { %v3558_v8 = vadd.f32 %v1416_v3, %v1125_v63  ;;  %v1418_v49 = vpop.f32.mrb[7].mxu0  ;;  %v1950_v63 = vld [vmem:[#allocation16 + $0x7b0] sm:$0xff]  ;;  %v3446_v3 = vpack.c.bf16 %v1953_v48, %v1947_v47  ;;  %v1721_v47 = vld [vmem:[#allocation16 + $0x88] sm:$0xff]  ;;  %v1727_v48 = vld [vmem:[#allocation16 + $0xb8] sm:$0xff] }
 0x4c2   :  { %v3559_v11 = vadd.f32 %v1418_v49, %v1129_v2  ;;  %v3350_v2 = vpack.c.bf16 %v1951_v26, %v1945_v46  ;;  %v1963_v49 = vld [vmem:[#allocation16 + $0x818] sm:$0xff]  ;;  %v3352_v62 = vpack.c.bf16 %v1950_v63, %v1944_v61  ;;  %v1708_v46 = vld [vmem:[#allocation16 + $0x20] sm:$0xff]  ;;  %v1714_v26 = vld [vmem:[#allocation16 + $0x50] sm:$0xff]  ;;  %v3466_v61 = vpack.c.bf16 %v1727_v48, %v1721_v47 }
 0x4c3   :  { %v4165_v21 = vmax.f32 %v3558_v8, 0.0  ;;  %v1957_v8 = vld [vmem:[#allocation16 + $0x7e8] sm:$0xff]  ;;  %v1720_v63 = vld [vmem:[#allocation16 + $0x80] sm:$0xff]  ;;  %v1835_v48 = vld [vmem:[#allocation16 + $0x418] sm:$0xff] }
 0x4c4   :  { %v4163_v16 = vmax.f32 %v3559_v11, 0.0  ;;  %v3448_v11 = vpack.c.bf16 %v1952_v5, %v1946_v4  ;;  %v3354_v15 = vpack.c.bf16 %v1963_v49, %v1957_v8  ;;  %v1739_v4 = vld [vmem:[#allocation16 + $0x118] sm:$0xff]  ;;  %v1732_v49 = vld [vmem:[#allocation16 + $0xe0] sm:$0xff]  ;;  %v1829_v47 = vld [vmem:[#allocation16 + $0x3e8] sm:$0xff] }
 0x4c6   :  { %2088 = vmatprep.mubr.f32.mxu1 %v4163_v16  ;;  %2230 = vmatprep.mubr.f32.mxu0 %v4163_v16 }
 0x4c7   :  { %2089 = vmatmul.mubr.f32.vlgmr.msra.gmra.mrb[14].mxu1 %v4165_v21  ;;  %2231 = vmatmul.mubr.f32.vlgmr.msra.gmra.mrb[8].mxu0 %v4165_v21 }
 0x4c8   :  { %3337 = vmatpush1.bf16.msra.mxu1 %v3336_v17  ;;  %3433 = vmatpush1.bf16.msra.mxu0 %v3432_v18  ;;  %v3450_v17 = vpack.c.bf16 %v1965_v10, %v1959_v9  ;;  %v1958_v18 = vld [vmem:[#allocation16 + $0x7f0] sm:$0xff]  ;;  %v1751_v10 = vld [vmem:[#allocation16 + $0x178] sm:$0xff] }
 0x4c9   :  { %3339 = vmatprep.subr.bf16.mxu1 %v3338_v59  ;;  %3435 = vmatprep.subr.bf16.mxu0 %v3434_v13  ;;  %v1975_v59 = vld [vmem:[#allocation16 + $0x878] sm:$0xff]  ;;  %v3452_v7 = vpack.c.bf16 %v1964_v19, %v1958_v18  ;;  %v1738_v9 = vld [vmem:[#allocation16 + $0x110] sm:$0xff]  ;;  %v3476_v18 = vpack.c.bf16 %v1750_v14, %v1744_v12  ;;  %v1852_v12 = vld [vmem:[#allocation16 + $0x4a0] sm:$0xff] }
 0x4ca   :  { %2159 = vmatprep.mubr.f32.mxu1 %v3852_v1  ;;  %2301 = vmatprep.mubr.f32.mxu0 %v3852_v1  ;;  %v1971_v13 = vld [vmem:[#allocation16 + $0x858] sm:$0xff]  ;;  %v3358_v25 = vpack.c.bf16 %v1975_v59, %v1969_v20  ;;  %v1762_v20 = vld [vmem:[#allocation16 + $0x1d0] sm:$0xff]  ;;  %v1769_v59 = vld [vmem:[#allocation16 + $0x208] sm:$0xff] }
 0x4cb   :  { %v1858_v14 = vld [vmem:[#allocation16 + $0x4d0] sm:$0xff] }
 0x4cc   :  { %3341 = vmatpush1.bf16.msra.mxu1 %v3340_v27  ;;  %3437 = vmatpush1.bf16.msra.mxu0 %v3436_v29  ;;  %v3454_v27 = vpack.c.bf16 %v1977_v23, %v1971_v13  ;;  %v1970_v29 = vld [vmem:[#allocation16 + $0x850] sm:$0xff]  ;;  %v1775_v13 = vld [vmem:[#allocation16 + $0x238] sm:$0xff] }
 0x4cd   :  { %3343 = vmatprep.subr.bf16.mxu1 %v3342_v33  ;;  %3439 = vmatprep.subr.bf16.mxu0 %v3438_v50  ;;  %v1987_v33 = vld [vmem:[#allocation16 + $0x8d8] sm:$0xff]  ;;  %v3456_v36 = vpack.c.bf16 %v1976_v30, %v1970_v29  ;;  %v1780_v30 = vld [vmem:[#allocation16 + $0x260] sm:$0xff] }
 0x4ce   :  { %v1983_v50 = vld [vmem:[#allocation16 + $0x8b8] sm:$0xff]  ;;  %v3362_v38 = vpack.c.bf16 %v1987_v33, %v1981_v32  ;;  %v1786_v32 = vld [vmem:[#allocation16 + $0x290] sm:$0xff]  ;;  %v1793_v33 = vld [vmem:[#allocation16 + $0x2c8] sm:$0xff] }
 0x4cf   :  { %v3458_v39 = vpack.c.bf16 %v1989_v0, %v1983_v50  ;;  %v1799_v50 = vld [vmem:[#allocation16 + $0x2f8] sm:$0xff]  ;;  %v3488_v0 = vpack.c.bf16 %v1786_v32, %v1780_v30  ;;  %v1888_v30 = vld [vmem:[#allocation16 + $0x5c0] sm:$0xff]  ;;  %v1894_v32 = vld [vmem:[#allocation16 + $0x5f0] sm:$0xff] }
 0x4d0   :  { %3345 = vmatpush1.bf16.msra.mxu1 %v3344_v40  ;;  %3441 = vmatpush1.bf16.msra.mxu0 %v3440_v58  ;;  %v1986_v40 = vld [vmem:[#allocation16 + $0x8d0] sm:$0xff] }
 0x4d1   :  { %3347 = vmatprep.subr.bf16.mxu1 %v3346_v42  ;;  %3443 = vmatprep.subr.bf16.mxu0 %v3442_v43  ;;  %v1982_v58 = vld [vmem:[#allocation16 + $0x8b0] sm:$0xff]  ;;  %v1715_v42 = vld [vmem:[#allocation16 + $0x58] sm:$0xff]  ;;  %v3364_v43 = vpack.c.bf16 %v1986_v40, %v1980_v37 }
 0x4d2   :  { %v3460_v44 = vpack.c.bf16 %v1988_v6, %v1982_v58  ;;  %v3462_v45 = vpack.c.bf16 %v1715_v42, %v1709_v41  ;;  %v1798_v37 = vld [vmem:[#allocation16 + $0x2f0] sm:$0xff]  ;;  %v1804_v6 = vld [vmem:[#allocation16 + $0x320] sm:$0xff]  ;;  %v1817_v42 = vld [vmem:[#allocation16 + $0x388] sm:$0xff] }
 0x4d3   :  { %v1810_v41 = vld [vmem:[#allocation16 + $0x350] sm:$0xff] }
 0x4d4   :  { %3349 = vmatpush1.bf16.msra.mxu1 %v3348_v51  ;;  %3445 = vmatpush1.bf16.msra.mxu0 %v3444_v52  ;;  %v3464_v51 = vpack.c.bf16 %v1714_v26, %v1708_v46  ;;  %v4174_v52 = vmax.f32 %v4159_v60, 0.0  ;;  %v1745_v60 = vld [vmem:[#allocation16 + $0x148] sm:$0xff]  ;;  %v1816_v46 = vld [vmem:[#allocation16 + $0x380] sm:$0xff]  ;;  %v1822_v26 = vld [vmem:[#allocation16 + $0x3b0] sm:$0xff] }
 0x4d5   :  { %3351 = vmatprep.subr.bf16.mxu1 %v3350_v2  ;;  %3447 = vmatprep.subr.bf16.mxu0 %v3446_v3  ;;  %v1726_v2 = vld [vmem:[#allocation16 + $0xb0] sm:$0xff]  ;;  %v1733_v3 = vld [vmem:[#allocation16 + $0xe8] sm:$0xff] }
 0x4d6   :  { %v3468_v5 = vpack.c.bf16 %v1726_v2, %v1720_v63  ;;  %v3470_v8 = vpack.c.bf16 %v1739_v4, %v1733_v3  ;;  %v1828_v63 = vld [vmem:[#allocation16 + $0x3e0] sm:$0xff]  ;;  %v1834_v2 = vld [vmem:[#allocation16 + $0x410] sm:$0xff]  ;;  %v1841_v3 = vld [vmem:[#allocation16 + $0x448] sm:$0xff] }
 0x4d7   :  { %v1847_v4 = vld [vmem:[#allocation16 + $0x478] sm:$0xff] }
 0x4d8   :  { %3353 = vmatpush1.bf16.msra.mxu1 %v3352_v62  ;;  %3449 = vmatpush1.bf16.msra.mxu0 %v3448_v11  ;;  %v3472_v62 = vpack.c.bf16 %v1738_v9, %v1732_v49  ;;  %v3474_v11 = vpack.c.bf16 %v1751_v10, %v1745_v60  ;;  %v1840_v49 = vld [vmem:[#allocation16 + $0x440] sm:$0xff]  ;;  %v1846_v9 = vld [vmem:[#allocation16 + $0x470] sm:$0xff]  ;;  %v1853_v60 = vld [vmem:[#allocation16 + $0x4a8] sm:$0xff] }
 0x4d9   :  { %3355 = vmatprep.subr.bf16.mxu1 %v3354_v15  ;;  %3451 = vmatprep.subr.bf16.mxu0 %v3450_v17  ;;  %v1757_v15 = vld [vmem:[#allocation16 + $0x1a8] sm:$0xff]  ;;  %v1763_v17 = vld [vmem:[#allocation16 + $0x1d8] sm:$0xff] }
 0x4da   :  { %v3478_v19 = vpack.c.bf16 %v1763_v17, %v1757_v15  ;;  %v1859_v10 = vld [vmem:[#allocation16 + $0x4d8] sm:$0xff]  ;;  %v1865_v15 = vld [vmem:[#allocation16 + $0x508] sm:$0xff] }
 0x4db   :  { %v1871_v17 = vld [vmem:[#allocation16 + $0x538] sm:$0xff] }
 0x4dc   :  { %3357 = vmatpush1.bf16.msra.mxu1 %v3356_v22  ;;  %3453 = vmatpush1.bf16.msra.mxu0 %v3452_v7  ;;  %v3482_v22 = vpack.c.bf16 %v1775_v13, %v1769_v59  ;;  %v1768_v7 = vld [vmem:[#allocation16 + $0x200] sm:$0xff]  ;;  %v1877_v59 = vld [vmem:[#allocation16 + $0x568] sm:$0xff]  ;;  %v1883_v13 = vld [vmem:[#allocation16 + $0x598] sm:$0xff] }
 0x4dd   :  { %3359 = vmatprep.subr.bf16.mxu1 %v3358_v25  ;;  %3455 = vmatprep.subr.bf16.mxu0 %v3454_v27  ;;  %v1787_v25 = vld [vmem:[#allocation16 + $0x298] sm:$0xff]  ;;  %v3484_v27 = vpack.c.bf16 %v1774_v31, %v1768_v7  ;;  %v1876_v7 = vld [vmem:[#allocation16 + $0x560] sm:$0xff]  ;;  %v1882_v31 = vld [vmem:[#allocation16 + $0x590] sm:$0xff] }
 0x4de   :  { %v3486_v29 = vpack.c.bf16 %v1787_v25, %v1781_v55  ;;  %v1889_v55 = vld [vmem:[#allocation16 + $0x5c8] sm:$0xff]  ;;  %v1895_v25 = vld [vmem:[#allocation16 + $0x5f8] sm:$0xff] }
 0x4e0   :  { %3361 = vmatpush1.bf16.msra.mxu1 %v3360_v35  ;;  %3457 = vmatpush1.bf16.msra.mxu0 %v3456_v36  ;;  %v3490_v35 = vpack.c.bf16 %v1799_v50, %v1793_v33  ;;  %v1792_v36 = vld [vmem:[#allocation16 + $0x2c0] sm:$0xff]  ;;  %v1901_v33 = vld [vmem:[#allocation16 + $0x628] sm:$0xff]  ;;  %v1907_v50 = vld [vmem:[#allocation16 + $0x658] sm:$0xff] }
 0x4e1   :  { %3363 = vmatprep.subr.bf16.mxu1 %v3362_v38  ;;  %3459 = vmatprep.subr.bf16.mxu0 %v3458_v39  ;;  %v1805_v38 = vld [vmem:[#allocation16 + $0x328] sm:$0xff]  ;;  %v1811_v39 = vld [vmem:[#allocation16 + $0x358] sm:$0xff]  ;;  %v3492_v40 = vpack.c.bf16 %v1798_v37, %v1792_v36  ;;  %v1900_v36 = vld [vmem:[#allocation16 + $0x620] sm:$0xff] }
 0x4e2   :  { %v3494_v58 = vpack.c.bf16 %v1811_v39, %v1805_v38  ;;  %v1906_v37 = vld [vmem:[#allocation16 + $0x650] sm:$0xff]  ;;  %v1913_v38 = vld [vmem:[#allocation16 + $0x688] sm:$0xff]  ;;  %v1919_v39 = vld [vmem:[#allocation16 + $0x6b8] sm:$0xff] }
 0x4e4   :  { %3365 = vmatpush1.bf16.msra.mxu1 %v3364_v43  ;;  %3461 = vmatpush1.bf16.msra.mxu0 %v3460_v44  ;;  %v1823_v43 = vld [vmem:[#allocation16 + $0x3b8] sm:$0xff]  ;;  %v3496_v44 = vpack.c.bf16 %v1810_v41, %v1804_v6  ;;  %v1912_v6 = vld [vmem:[#allocation16 + $0x680] sm:$0xff]  ;;  %v1918_v41 = vld [vmem:[#allocation16 + $0x6b0] sm:$0xff] }
 0x4e5   :  { %3463 = vmatprep.subr.bf16.mxu1 %v3462_v45  ;;  %v3498_v45 = vpack.c.bf16 %v1823_v43, %v1817_v42  ;;  %v1925_v42 = vld [vmem:[#allocation16 + $0x6e8] sm:$0xff]  ;;  %v1931_v43 = vld [vmem:[#allocation16 + $0x718] sm:$0xff] }
 0x4e7   :  { %2160 = vmatmul.mubr.f32.vlgmr.msra.gmra.mrb[14].mxu1 %v4174_v52  ;;  %2302 = vmatmul.mubr.f32.vlgmr.msra.gmra.mrb[8].mxu0 %v4174_v52 }
 0x4e8   :  { %3465 = vmatpush1.bf16.msra.mxu1 %v3464_v51  ;;  %2372 = vmatprep.mubr.f32.mxu1 %v4163_v16  ;;  %v1756_v16 = vld [vmem:[#allocation16 + $0x1a0] sm:$0xff]  ;;  %v3500_v51 = vpack.c.bf16 %v1822_v26, %v1816_v46  ;;  %v1930_v26 = vld [vmem:[#allocation16 + $0x710] sm:$0xff] }
 0x4e9   :  { %3467 = vmatprep.subr.bf16.mxu1 %v3466_v61  ;;  %v3480_v23 = vpack.c.bf16 %v1762_v20, %v1756_v16  ;;  %v3502_v61 = vpack.c.bf16 %v1835_v48, %v1829_v47  ;;  %v1864_v16 = vld [vmem:[#allocation16 + $0x500] sm:$0xff]  ;;  %v1870_v20 = vld [vmem:[#allocation16 + $0x530] sm:$0xff]  ;;  %v1937_v47 = vld [vmem:[#allocation16 + $0x748] sm:$0xff] }
 0x4ea   :  { %v1924_v46 = vld [vmem:[#allocation16 + $0x6e0] sm:$0xff]  ;;  %v1943_v48 = vld [vmem:[#allocation16 + $0x778] sm:$0xff] }
 0x4ec   :  { %3469 = vmatpush1.bf16.msra.mxu1 %v3468_v5  ;;  %v3504_v5 = vpack.c.bf16 %v1834_v2, %v1828_v63  ;;  %v1936_v63 = vld [vmem:[#allocation16 + $0x740] sm:$0xff]  ;;  %v1942_v2 = vld [vmem:[#allocation16 + $0x770] sm:$0xff] }
 0x4ed   :  { %3471 = vmatprep.subr.bf16.mxu1 %v3470_v8  ;;  %v3506_v8 = vpack.c.bf16 %v1847_v4, %v1841_v3  ;;  %v1949_v3 = vld [vmem:[#allocation16 + $0x7a8] sm:$0xff]  ;;  %v1955_v4 = vld [vmem:[#allocation16 + $0x7d8] sm:$0xff] }
 0x4f0   :  { %3473 = vmatpush1.bf16.msra.mxu1 %v3472_v62  ;;  %v3508_v62 = vpack.c.bf16 %v1846_v9, %v1840_v49  ;;  %v1961_v49 = vld [vmem:[#allocation16 + $0x808] sm:$0xff]  ;;  %v1967_v9 = vld [vmem:[#allocation16 + $0x838] sm:$0xff] }
 0x4f1   :  { %3475 = vmatprep.subr.bf16.mxu1 %v3474_v11  ;;  %v3510_v11 = vpack.c.bf16 %v1859_v10, %v1853_v60  ;;  %v3546_v10 = vpack.c.bf16 %v1967_v9, %v1961_v49 }
 0x4f4   :  { %3477 = vmatpush1.bf16.msra.mxu1 %v3476_v18  ;;  %v3512_v18 = vpack.c.bf16 %v1858_v14, %v1852_v12  ;;  %v1973_v12 = vld [vmem:[#allocation16 + $0x868] sm:$0xff]  ;;  %v1979_v14 = vld [vmem:[#allocation16 + $0x898] sm:$0xff] }
 0x4f5   :  { %3479 = vmatprep.subr.bf16.mxu1 %v3478_v19  ;;  %v3514_v19 = vpack.c.bf16 %v1871_v17, %v1865_v15  ;;  %v3550_v17 = vpack.c.bf16 %v1979_v14, %v1973_v12 }
 0x4f8   :  { %3481 = vmatpush1.bf16.msra.mxu1 %v3480_v23  ;;  %v3516_v23 = vpack.c.bf16 %v1870_v20, %v1864_v16  ;;  %v1985_v16 = vld [vmem:[#allocation16 + $0x8c8] sm:$0xff]  ;;  %v1991_v20 = vld [vmem:[#allocation16 + $0x8f8] sm:$0xff] }
 0x4f9   :  { %3483 = vmatprep.subr.bf16.mxu1 %v3482_v22  ;;  %v3518_v22 = vpack.c.bf16 %v1883_v13, %v1877_v59  ;;  %v3554_v13 = vpack.c.bf16 %v1991_v20, %v1985_v16 }
 0x4fc   :  { %3485 = vmatpush1.bf16.msra.mxu1 %v3484_v27  ;;  %v3520_v27 = vpack.c.bf16 %v1882_v31, %v1876_v7  ;;  %v1992_v31 = vld [vmem:[%s4211_s10] sm:$0x3f] }
 0x4fd   :  { %3487 = vmatprep.subr.bf16.mxu1 %v3486_v29  ;;  %v3522_v29 = vpack.c.bf16 %v1895_v25, %v1889_v55  ;;  %v3853_v55 = vmov 1983009808  }
 0x4fe   :  { %v2459_v25 = vunpack.c.l.s4 %v3853_v55 }
 0x500   :  { %3489 = vmatpush1.bf16.msra.mxu1 %v3488_v0  ;;  %v3524_v0 = vpack.c.bf16 %v1894_v32, %v1888_v30  ;;  %v2001_v30 = vrot.slane %v1992_v31, %v4082_v56  ;;  %v2460_v32 = vunpack.c.0.s8 %v2459_v25  ;;  %v2013_v56 = vrot.slane %v1992_v31, %v477_v28 }
 0x501   :  { %3491 = vmatprep.subr.bf16.mxu1 %v3490_v35  ;;  %v3526_v35 = vpack.c.bf16 %v1907_v50, %v1901_v33  ;;  %v2009_v33 = vrot.slane %v1992_v31, %v473_v57  ;;  %v2017_v57 = vrot.slane %v1992_v31, %v481_v34 }
 0x504   :  { %3493 = vmatpush1.bf16.msra.mxu1 %v3492_v40  ;;  %v3528_v40 = vpack.c.bf16 %v1906_v37, %v1900_v36 }
 0x505   :  { %3495 = vmatprep.subr.bf16.mxu1 %v3494_v58  ;;  %v3530_v58 = vpack.c.bf16 %v1919_v39, %v1913_v38  ;;  %v2463_v39 = vsub.s32 %v2460_v32, %v4074_v53 }
 0x508   :  { %3497 = vmatpush1.bf16.msra.mxu1 %v3496_v44  ;;  %v3532_v44 = vpack.c.bf16 %v1918_v41, %v1912_v6 }
 0x509   :  { %3499 = vmatprep.subr.bf16.mxu1 %v3498_v45  ;;  %v3534_v45 = vpack.c.bf16 %v1931_v43, %v1925_v42 }
 0x50c   :  { %3501 = vmatpush1.bf16.msra.mxu1 %v3500_v51  ;;  %v3536_v51 = vpack.c.bf16 %v1930_v26, %v1924_v46 }
 0x50d   :  { %3503 = vmatprep.subr.bf16.mxu1 %v3502_v61  ;;  %v3538_v61 = vpack.c.bf16 %v1943_v48, %v1937_v47 }
 0x510   :  { %3505 = vmatpush1.bf16.msra.mxu1 %v3504_v5  ;;  %v3542_v5 = vpack.c.bf16 %v1955_v4, %v1949_v3 }
 0x511   :  { %3507 = vmatprep.subr.bf16.mxu1 %v3506_v8  ;;  %v1948_v8 = vld [vmem:[#allocation16 + $0x7a0] sm:$0xff] }
 0x514   :  { %3509 = vmatpush1.bf16.msra.mxu1 %v3508_v62  ;;  %v1960_v62 = vld [vmem:[#allocation16 + $0x800] sm:$0xff] }
 0x515   :  { %3511 = vmatprep.subr.bf16.mxu1 %v3510_v11  ;;  %v1966_v11 = vld [vmem:[#allocation16 + $0x830] sm:$0xff] }
 0x516   :  { %v3548_v15 = vpack.c.bf16 %v1966_v11, %v1960_v62 }
 0x518   :  { %3513 = vmatpush1.bf16.msra.mxu1 %v3512_v18  ;;  %v1972_v18 = vld [vmem:[#allocation16 + $0x860] sm:$0xff] }
 0x519   :  { %3515 = vmatprep.subr.bf16.mxu1 %v3514_v19  ;;  %v1978_v19 = vld [vmem:[#allocation16 + $0x890] sm:$0xff] }
 0x51a   :  { %v3552_v59 = vpack.c.bf16 %v1978_v19, %v1972_v18 }
 0x51c   :  { %3517 = vmatpush1.bf16.msra.mxu1 %v3516_v23  ;;  %v1984_v23 = vld [vmem:[#allocation16 + $0x8c0] sm:$0xff] }
 0x51d   :  { %3519 = vmatprep.subr.bf16.mxu1 %v3518_v22  ;;  %v1990_v22 = vld [vmem:[#allocation16 + $0x8f0] sm:$0xff] }
 0x51e   :  { %v3556_v7 = vpack.c.bf16 %v1990_v22, %v1984_v23 }
 0x520   :  { %3521 = vmatpush1.bf16.msra.mxu1 %v3520_v27  ;;  %v1997_v27 = vrot.slane %v1992_v31, %v4077_v54 }
 0x521   :  { %3523 = vmatprep.subr.bf16.mxu1 %v3522_v29  ;;  %v2005_v29 = vrot.slane %v1992_v31, %v4095_v24 }
 0x524   :  { %3525 = vmatpush1.bf16.msra.mxu1 %v3524_v0 }
 0x525   :  { %3527 = vmatprep.subr.bf16.mxu1 %v3526_v35 }
 0x527   :  { %2373 = vmatmul.mubr.f32.vlgmr.msra.gmra.mrb[16].mxu1 %v4165_v21  ;;  %v3540_v21 = vpack.c.bf16 %v1942_v2, %v1936_v63 }
 0x528   :  { %3529 = vmatpush1.bf16.msra.mxu1 %v3528_v40  ;;  %2443 = vmatprep.mubr.f32.mxu1 %v3852_v1  ;;  %v1954_v1 = vld [vmem:[#allocation16 + $0x7d0] sm:$0xff] }
 0x529   :  { %3531 = vmatprep.subr.bf16.mxu1 %v3530_v58  ;;  %v3544_v60 = vpack.c.bf16 %v1954_v1, %v1948_v8 }
 0x52c   :  { %3533 = vmatpush1.bf16.msra.mxu1 %v3532_v44 }
 0x52d   :  { %3535 = vmatprep.subr.bf16.mxu1 %v3534_v45 }
 0x530   :  { %3537 = vmatpush1.bf16.msra.mxu1 %v3536_v51 }
 0x531   :  { %3539 = vmatprep.subr.bf16.mxu1 %v3538_v61 }
 0x534   :  { %3541 = vmatpush1.bf16.msra.mxu1 %v3540_v21 }
 0x535   :  { %3543 = vmatprep.subr.bf16.mxu1 %v3542_v5 }
 0x538   :  { %3545 = vmatpush1.bf16.msra.mxu1 %v3544_v60 }
 0x539   :  { %3547 = vmatprep.subr.bf16.mxu1 %v3546_v10 }
 0x53c   :  { %3549 = vmatpush1.bf16.msra.mxu1 %v3548_v15 }
 0x53d   :  { %3551 = vmatprep.subr.bf16.mxu1 %v3550_v17 }
 0x540   :  { %3553 = vmatpush1.bf16.msra.mxu1 %v3552_v59 }
 0x541   :  { %3555 = vmatprep.subr.bf16.mxu1 %v3554_v13 }
 0x544   :  { %3557 = vmatpush1.bf16.msra.mxu1 %v3556_v7 }
 0x547   :  { %2444 = vmatmul.mubr.f32.vlgmr.msra.gmra.mrb[16].mxu1 %v4174_v52 }
 0x5ba   :  { %v2161_v50 = vpop.f32.mrb[14].mxu1  ;;  %v2303_v0 = vpop.f32.mrb[8].mxu0 }
 0x5bb   :  { %v3560_v35 = vadd.f32 %v2161_v50, %v1997_v27  ;;  %v3562_v52 = vadd.f32 %v2303_v0, %v2005_v29  ;;  %v2163_v36 = vpop.f32.mrb[15].mxu1  ;;  %v2305_v37 = vpop.f32.mrb[9].mxu0 }
 0x5bc   :  { %v3561_v38 = vadd.f32 %v2163_v36, %v2001_v30  ;;  %v3563_v40 = vadd.f32 %v2305_v37, %v2009_v33 }
 0x5be   :  { %v2456_v58 = vcombine.low %v3560_v35, %v3561_v38  ;;  %v2457_v54 = vcombine.low %v3562_v52, %v3563_v40 }
 0x5c0   :  { %v2464_v6 = vrot.slane %v2456_v58, %v2463_v39  ;;  %v2471_v24 = vrot.slane %v2457_v54, %v2463_v39 }
 0x5c2   :  { %v2472_v41 = vcombine.low %v2464_v6, %v2471_v24 }
 0x5c4   :  { %2483 = vst [vmem:[%s4212_s11] sm:$0xff] %v2472_v41 }
 0x61a   :  { %v2445_v42 = vpop.f32.mrb[16].mxu1 }
 0x61b   :  { %v3564_v43 = vadd.f32 %v2445_v42, %v2013_v56  ;;  %v2447_v44 = vpop.f32.mrb[17].mxu1 }
 0x61c   :  { %v3565_v45 = vadd.f32 %v2447_v44, %v2017_v57 }
 0x61e   :  { %v2473_v46 = vcombine.low %v3564_v43, %v3565_v45 }
 0x620   :  { %2498 = vst.sshfl [vmem:[%s4212_s11 + $0x8] sm:$0x33 pattern:$0x76325410] %v2473_v46 }
 0x621   :  { %2489 = vsyncpa [#allocation3], 1 }
 0x622   :  { %2490 = vsyncpa [#allocation5], 1 }
 0x623   :  { %2491 = vsyncpa [#allocation8], 1 }
 0x624   :  { %2492 = vsyncpa [#allocation11], 1 }
 0x625   :  { %2493 = vsyncpa [#allocation14], 1 }
 0x626   :  { %2494 = vsyncpa [#allocation17], 1 }

</bundles_post_ra>
